<compile_context>
chip_gen: v5e
topology: v5e:2x2
jax: 0.10.0
libtpu: 0.0.40
codegen_flags: <defaults>
</compile_context>

<pallas_src>
import jax
import jax.numpy as jnp
from jax import lax
from jax.experimental import pallas as pl
from jax.experimental.pallas import tpu as pltpu

LANE = 128


def _round_up(x, m):
    return (x + m - 1) // m * m


def _vmem_limit_bytes():
    """Generation-aware VMEM cap: ~half of physical, capped at 64 MiB."""
    try:
        cap = pltpu.get_tpu_info().vmem_capacity_bytes
        return int(min(64 * 1024 * 1024, max(cap // 2, 16 * 1024 * 1024)))
    except Exception:
        return 32 * 1024 * 1024


# --------------------------------------------------------------------------- #
# Kernel: one image per grid step, NHWC, channels padded to a lane multiple.
# --------------------------------------------------------------------------- #
def bottleneck_kernel(x_ref, w1_ref, b1_ref, w2_ref, b2_ref, w3_ref, b3_ref,
                      out_ref, hp_ref):
    H, W, Cin = x_ref.shape            # Cin == Cout (residual, no downsample)
    Cmid = w1_ref.shape[1]
    Cout = w3_ref.shape[1]
    HW = H * W
    K3 = 3 * Cmid

    # ---- conv1 (1x1) + folded-bn1 + relu  (single MXU matmul, bf16 operands)
    x2d = x_ref[...].reshape(HW, Cin)                       # bf16
    h1 = jnp.dot(x2d, w1_ref[...], preferred_element_type=jnp.float32)
    h1 = jnp.maximum(h1 + b1_ref[...], 0.0)
    h1b = h1.astype(jnp.bfloat16).reshape(H, W, Cmid)

    # ---- conv2 (3x3, stride 1, pad 1) + folded-bn2 + relu -------------------
    # Pack the three dx-shifted copies of h1 along the lane axis into the bf16
    # scratch hp (H+2, W, 3*Cmid).  Column shifts are done at the value level
    # (XLU) so every scratch store is lane/sublane aligned.
    zero_col = jnp.zeros((H, 1, Cmid), jnp.bfloat16)
    seg0 = jnp.concatenate([zero_col, h1b[:, :W - 1, :]], axis=1)  # h1p[., x+0]
    seg2 = jnp.concatenate([h1b[:, 1:, :], zero_col], axis=1)      # h1p[., x+2]

    # Halo rows (top/bottom of the padded image) — zeroed every step (cheap,
    # and megacore-safe since the scratch is per-core, per-step self-contained).
    zero_row = jnp.zeros((W, K3), jnp.bfloat16)
    hp_ref[0, :, :] = zero_row
    hp_ref[H + 1, :, :] = zero_row
    # Interior rows (fully overwritten each step); lane slices are 128-aligned.
    hp_ref[1:H + 1, :, 0:Cmid] = seg0
    hp_ref[1:H + 1, :, Cmid:2 * Cmid] = h1b
    hp_ref[1:H + 1, :, 2 * Cmid:3 * Cmid] = seg2

    # Three dy-tap matmuls, K = 3*Cmid, leading-axis (tile-aligned) slices,
    # register accumulation.
    p0 = hp_ref[0:H, :, :].reshape(HW, K3)
    p1 = hp_ref[1:H + 1, :, :].reshape(HW, K3)
    p2 = hp_ref[2:H + 2, :, :].reshape(HW, K3)
    acc = jnp.dot(p0, w2_ref[0], preferred_element_type=jnp.float32)
    acc = acc + jnp.dot(p1, w2_ref[1], preferred_element_type=jnp.float32)
    acc = acc + jnp.dot(p2, w2_ref[2], preferred_element_type=jnp.float32)
    h2 = jnp.maximum(acc + b2_ref[...], 0.0)

    # ---- conv3 (1x1) + folded-bn3 + residual + relu -------------------------
    h3 = jnp.dot(h2.astype(jnp.bfloat16), w3_ref[...],
                 preferred_element_type=jnp.float32) + b3_ref[...]
    identity = x_ref[...].reshape(HW, Cin).astype(jnp.float32)  # fresh load
    out = jnp.maximum(h3 + identity, 0.0)
    out_ref[...] = out.reshape(H, W, Cout).astype(out_ref.dtype)


def _bottleneck_pallas(xp, w1, b1, w2, b2, w3, b3):
    """xp: (N, H, W, Cin_p) NHWC bf16 with lane-padded channels."""
    N, H, W, cin_p = xp.shape
    cmid_p = w1.shape[1]
    cout_p = w3.shape[1]

    def const_spec(a):
        r = a.ndim
        return pl.BlockSpec(a.shape, lambda n, _r=r: (0,) * _r)

    return pl.pallas_call(
        bottleneck_kernel,
        out_shape=jax.ShapeDtypeStruct((N, H, W, cout_p), jnp.bfloat16),
        grid_spec=pltpu.PrefetchScalarGridSpec(
            num_scalar_prefetch=0,
            grid=(N,),
            in_specs=[
                pl.BlockSpec((None, H, W, cin_p), lambda n: (n, 0, 0, 0)),
                const_spec(w1), const_spec(b1),
                const_spec(w2), const_spec(b2),
                const_spec(w3), const_spec(b3),
            ],
            out_specs=pl.BlockSpec((None, H, W, cout_p),
                                   lambda n: (n, 0, 0, 0)),
            scratch_shapes=[
                # dx-packed, zero-row-padded conv1 output (bf16)
                pltpu.VMEM((H + 2, W, 3 * cmid_p), jnp.bfloat16),
            ]),
        compiler_params=pltpu.CompilerParams(
            dimension_semantics=("parallel",),
            vmem_limit_bytes=_vmem_limit_bytes()),
    )(xp, w1, b1, w2, b2, w3, b3)


# --------------------------------------------------------------------------- #
# Host-side parameter preparation: fold BN scale into weights, pad channels,
# pack conv2 taps for the lane-packed scratch layout.
# --------------------------------------------------------------------------- #
def fold_and_pad_params(params):
    w1, s1, b1, w2, s2, b2, w3, s3, b3 = params
    cin, cmid = w1.shape
    cout = w3.shape[1]
    cin_p, cmid_p, cout_p = (_round_up(c, LANE) for c in (cin, cmid, cout))

    w1f = w1 * s1                                  # scale over output channels
    w2f = w2 * s2.reshape(1, 1, 1, -1)
    w3f = w3 * s3

    w1p = jnp.pad(w1f, ((0, cin_p - cin), (0, cmid_p - cmid))).astype(jnp.bfloat16)
    # (3, 3, cmid_p, cmid_p) -> per-dy packed (3, 3*cmid_p, cmid_p):
    # rows [dx*cmid_p:(dx+1)*cmid_p] of w2p[dy] == w2[dy, dx]  (matches hp lane packing)
    w2p = jnp.pad(w2f, ((0, 0), (0, 0), (0, cmid_p - cmid), (0, cmid_p - cmid)))
    w2p = w2p.reshape(3, 3 * cmid_p, cmid_p).astype(jnp.bfloat16)
    w3p = jnp.pad(w3f, ((0, cmid_p - cmid), (0, cout_p - cout))).astype(jnp.bfloat16)

    b1p = jnp.pad(b1, ((0, 0), (0, cmid_p - cmid))).astype(jnp.float32)
    b2p = jnp.pad(b2, ((0, 0), (0, cmid_p - cmid))).astype(jnp.float32)
    b3p = jnp.pad(b3, ((0, 0), (0, cout_p - cout))).astype(jnp.float32)
    return (w1p, b1p, w2p, b2p, w3p, b3p)


def bottleneck_forward_nhwc(x_nhwc, folded):
    """NHWC-native path. Activation I/O at the kernel boundary is bf16."""
    w1, b1, w2, b2, w3, b3 = folded
    cin = x_nhwc.shape[-1]
    cin_p = w1.shape[0]
    xp = x_nhwc.astype(jnp.bfloat16)
    if cin != cin_p:
        xp = jnp.pad(xp, ((0, 0), (0, 0), (0, 0), (0, cin_p - cin)))
    yp = _bottleneck_pallas(xp, w1, b1, w2, b2, w3, b3)
    return yp[..., :cin]   # Cout == Cin for the no-downsample block


def bottleneck_forward(x_nchw, folded):
    """PyTorch-facing wrapper (NCHW in / NCHW out, caller dtype). In an NHWC
    end-to-end bf16 pipeline the transposes and casts below fuse away — use
    bottleneck_forward_nhwc directly."""
    x = jnp.transpose(x_nchw, (0, 2, 3, 1))
    y = bottleneck_forward_nhwc(x, folded)
    return jnp.transpose(y, (0, 3, 1, 2)).astype(x_nchw.dtype)


# --------------------------------------------------------------------------- #
# Synthetic parameters + pure-JAX reference.
# --------------------------------------------------------------------------- #
def init_params(key, in_channels, out_channels, eps=1e-5):
    expansion = 4
    c_out = out_channels * expansion
    assert in_channels == c_out, "no downsample => in_channels == out_channels*4"
    ks = jax.random.split(key, 15)
    w1 = 0.1 * jax.random.normal(ks[0], (in_channels, out_channels), jnp.float32)
    w2 = 0.1 * jax.random.normal(ks[1], (3, 3, out_channels, out_channels), jnp.float32)
    w3 = 0.1 * jax.random.normal(ks[2], (out_channels, c_out), jnp.float32)

    def bn_fold(kg, kb, km, kv, c):
        gamma = 1.0 + 0.1 * jax.random.normal(kg, (1, c), jnp.float32)
        beta = 0.1 * jax.random.normal(kb, (1, c), jnp.float32)
        mean = 0.1 * jax.random.normal(km, (1, c), jnp.float32)
        var = jax.random.uniform(kv, (1, c), jnp.float32, 0.5, 1.5)
        scale = gamma / jnp.sqrt(var + eps)
        bias = beta - mean * scale
        return scale, bias

    s1, b1 = bn_fold(ks[3], ks[4], ks[5], ks[6], out_channels)
    s2, b2 = bn_fold(ks[7], ks[8], ks[9], ks[10], out_channels)
    s3, b3 = bn_fold(ks[11], ks[12], ks[13], ks[14], c_out)
    return (w1, s1, b1, w2, s2, b2, w3, s3, b3)


def reference_forward(x_nchw, params):
    x = jnp.transpose(x_nchw, (0, 2, 3, 1))
    w1, s1, b1, w2, s2, b2, w3, s3, b3 = params
    dn = ('NHWC', 'HWIO', 'NHWC')

    def aff(h, s, b):
        return h * s.reshape(1, 1, 1, -1) + b.reshape(1, 1, 1, -1)

    h = lax.conv_general_dilated(x, w1.reshape(1, 1, *w1.shape), (1, 1), 'VALID',
                                 dimension_numbers=dn)
    h = jnp.maximum(aff(h, s1, b1), 0.0)
    h = lax.conv_general_dilated(h, w2, (1, 1), 'SAME', dimension_numbers=dn)
    h = jnp.maximum(aff(h, s2, b2), 0.0)
    h = lax.conv_general_dilated(h, w3.reshape(1, 1, *w3.shape), (1, 1), 'VALID',
                                 dimension_numbers=dn)
    h = aff(h, s3, b3)
    out = jnp.maximum(h + x, 0.0)
    return jnp.transpose(out, (0, 3, 1, 2))


if __name__ == "__main__":
    key = jax.random.PRNGKey(0)
    kx, kp = jax.random.split(key)

    in_channels = 32          # must equal out_channels * 4 (downsample=None)
    out_channels = 8
    N, H, W = 2, 16, 16

    x = jax.random.normal(kx, (N, in_channels, H, W), jnp.float32)
    params = init_params(kp, in_channels, out_channels)
    folded = fold_and_pad_params(params)

    fwd = jax.jit(bottleneck_forward)
    y = jax.block_until_ready(fwd(x, folded))

    # Reference sees the same bf16-rounded activations the kernel ingests;
    # remaining drift is bf16 matmul operands / bf16 output quantization.
    x_q = x.astype(jnp.bfloat16).astype(jnp.float32)
    y_ref = reference_forward(x_q, params)
    assert y.shape == (N, out_channels * 4, H, W)
    assert jnp.allclose(y.astype(jnp.float32), y_ref, atol=5e-2, rtol=5e-2), \
        "mismatch vs JAX reference"

    print("KERNEL_OK")
</pallas_src>

<mosaic_0001>
module attributes {stable_mosaic.version = 11 : i64} {
  func.func @bottleneck_kernel(%arg0: i32, %arg1: memref<1x16x16x128xbf16, #tpu.memory_space<vmem>>, %arg2: memref<128x128xbf16, #tpu.memory_space<vmem>>, %arg3: memref<1x128xf32, #tpu.memory_space<vmem>>, %arg4: memref<3x384x128xbf16, #tpu.memory_space<vmem>>, %arg5: memref<1x128xf32, #tpu.memory_space<vmem>>, %arg6: memref<128x128xbf16, #tpu.memory_space<vmem>>, %arg7: memref<1x128xf32, #tpu.memory_space<vmem>>, %arg8: memref<1x16x16x128xbf16, #tpu.memory_space<vmem>>, %arg9: memref<18x16x384xbf16, #tpu.memory_space<vmem>>) attributes {dimension_semantics = [#tpu.dimension_semantics<parallel>], iteration_bounds = array<i64: 2>, scalar_prefetch = 0 : i64, scratch_operands = 1 : i64, tpu.core_type = #tpu.core_type<tc>, window_params = [{transform_indices = @transform_0, window_bounds = array<i64: 1, 16, 16, 128>}, {pipeline_mode = #tpu.pipeline_mode<synchronous>, transform_indices = @transform_1, window_bounds = array<i64: 128, 128>}, {pipeline_mode = #tpu.pipeline_mode<synchronous>, transform_indices = @transform_2, window_bounds = array<i64: 1, 128>}, {pipeline_mode = #tpu.pipeline_mode<synchronous>, transform_indices = @transform_3, window_bounds = array<i64: 3, 384, 128>}, {pipeline_mode = #tpu.pipeline_mode<synchronous>, transform_indices = @transform_4, window_bounds = array<i64: 1, 128>}, {pipeline_mode = #tpu.pipeline_mode<synchronous>, transform_indices = @transform_5, window_bounds = array<i64: 128, 128>}, {pipeline_mode = #tpu.pipeline_mode<synchronous>, transform_indices = @transform_6, window_bounds = array<i64: 1, 128>}, {transform_indices = @transform_7, window_bounds = array<i64: 1, 16, 16, 128>}]} {
    %c0 = arith.constant 0 : index
    %c0_0 = arith.constant 0 : index
    %c0_1 = arith.constant 0 : index
    %c0_2 = arith.constant 0 : index
    %0 = vector.load %arg1[%c0, %c0_0, %c0_1, %c0_2] : memref<1x16x16x128xbf16, #tpu.memory_space<vmem>>, vector<1x16x16x128xbf16>
    %1 = vector.shape_cast %0 : vector<1x16x16x128xbf16> to vector<16x16x128xbf16>
    %2 = vector.shape_cast %1 : vector<16x16x128xbf16> to vector<256x128xbf16>
    %c0_3 = arith.constant 0 : index
    %c0_4 = arith.constant 0 : index
    %3 = vector.load %arg2[%c0_3, %c0_4] : memref<128x128xbf16, #tpu.memory_space<vmem>>, vector<128x128xbf16>
    %cst = arith.constant dense<0.000000e+00> : vector<256x128xf32>
    %4 = tpu.matmul %2, %3, %cst {dimension_numbers = #tpu.dot_dimension_numbers<[1], [0], [0], [1], [0, 0, 1, 1], [], []>} : vector<256x128xbf16>, vector<128x128xbf16>, vector<256x128xf32> -> vector<256x128xf32>
    %c0_5 = arith.constant 0 : index
    %c0_6 = arith.constant 0 : index
    %5 = vector.load %arg3[%c0_5, %c0_6] : memref<1x128xf32, #tpu.memory_space<vmem>>, vector<1x128xf32>
    %6 = vector.broadcast %5 : vector<1x128xf32> to vector<256x128xf32>
    %7 = arith.addf %4, %6 : vector<256x128xf32>
    %cst_7 = arith.constant 0.000000e+00 : f32
    %8 = vector.broadcast %cst_7 : f32 to vector<256x128xf32>
    %9 = arith.maximumf %7, %8 : vector<256x128xf32>
    %10 = arith.truncf %9 : vector<256x128xf32> to vector<256x128xbf16>
    %11 = vector.shape_cast %10 : vector<256x128xbf16> to vector<16x16x128xbf16>
    %cst_8 = arith.constant 0.000000e+00 : bf16
    %12 = vector.broadcast %cst_8 : bf16 to vector<16x1x128xbf16>
    %13 = vector.extract_strided_slice %11 {offsets = [0, 0, 0], sizes = [16, 15, 128], strides = [1, 1, 1]} : vector<16x16x128xbf16> to vector<16x15x128xbf16>
    %14 = tpu.concatenate %12, %13 in 1 : vector<16x1x128xbf16>, vector<16x15x128xbf16> -> vector<16x16x128xbf16>
    %15 = vector.extract_strided_slice %11 {offsets = [0, 1, 0], sizes = [16, 15, 128], strides = [1, 1, 1]} : vector<16x16x128xbf16> to vector<16x15x128xbf16>
    %16 = tpu.concatenate %15, %12 in 1 : vector<16x15x128xbf16>, vector<16x1x128xbf16> -> vector<16x16x128xbf16>
    %cst_9 = arith.constant 0.000000e+00 : bf16
    %17 = vector.broadcast %cst_9 : bf16 to vector<16x384xbf16>
    %c0_10 = arith.constant 0 : index
    %c0_11 = arith.constant 0 : index
    %c0_12 = arith.constant 0 : index
    %18 = vector.load %arg9[%c0_10, %c0_11, %c0_12] : memref<18x16x384xbf16, #tpu.memory_space<vmem>>, vector<1x16x384xbf16>
    %19 = vector.shape_cast %18 : vector<1x16x384xbf16> to vector<16x384xbf16>
    %20 = vector.shape_cast %17 : vector<16x384xbf16> to vector<1x16x384xbf16>
    tpu.vector_store %arg9[%c0_10, %c0_11, %c0_12], %20 {strides = array<i32>} : memref<18x16x384xbf16, #tpu.memory_space<vmem>>, vector<1x16x384xbf16>,
    %c17 = arith.constant 17 : index
    %c0_13 = arith.constant 0 : index
    %c0_14 = arith.constant 0 : index
    %21 = vector.load %arg9[%c17, %c0_13, %c0_14] : memref<18x16x384xbf16, #tpu.memory_space<vmem>>, vector<1x16x384xbf16>
    %22 = vector.shape_cast %21 : vector<1x16x384xbf16> to vector<16x384xbf16>
    %23 = vector.shape_cast %17 : vector<16x384xbf16> to vector<1x16x384xbf16>
    tpu.vector_store %arg9[%c17, %c0_13, %c0_14], %23 {strides = array<i32>} : memref<18x16x384xbf16, #tpu.memory_space<vmem>>, vector<1x16x384xbf16>,
    %c1 = arith.constant 1 : index
    %c0_15 = arith.constant 0 : index
    %c0_16 = arith.constant 0 : index
    %24 = vector.load %arg9[%c1, %c0_15, %c0_16] : memref<18x16x384xbf16, #tpu.memory_space<vmem>>, vector<16x16x128xbf16>
    tpu.vector_store %arg9[%c1, %c0_15, %c0_16], %14 {strides = array<i32>} : memref<18x16x384xbf16, #tpu.memory_space<vmem>>, vector<16x16x128xbf16>,
    %c1_17 = arith.constant 1 : index
    %c0_18 = arith.constant 0 : index
    %c128 = arith.constant 128 : index
    %25 = vector.load %arg9[%c1_17, %c0_18, %c128] : memref<18x16x384xbf16, #tpu.memory_space<vmem>>, vector<16x16x128xbf16>
    tpu.vector_store %arg9[%c1_17, %c0_18, %c128], %11 {strides = array<i32>} : memref<18x16x384xbf16, #tpu.memory_space<vmem>>, vector<16x16x128xbf16>,
    %c1_19 = arith.constant 1 : index
    %c0_20 = arith.constant 0 : index
    %c256 = arith.constant 256 : index
    %26 = vector.load %arg9[%c1_19, %c0_20, %c256] : memref<18x16x384xbf16, #tpu.memory_space<vmem>>, vector<16x16x128xbf16>
    tpu.vector_store %arg9[%c1_19, %c0_20, %c256], %16 {strides = array<i32>} : memref<18x16x384xbf16, #tpu.memory_space<vmem>>, vector<16x16x128xbf16>,
    %c0_21 = arith.constant 0 : index
    %c0_22 = arith.constant 0 : index
    %c0_23 = arith.constant 0 : index
    %27 = vector.load %arg9[%c0_21, %c0_22, %c0_23] : memref<18x16x384xbf16, #tpu.memory_space<vmem>>, vector<16x16x384xbf16>
    %28 = vector.shape_cast %27 : vector<16x16x384xbf16> to vector<256x384xbf16>
    %c1_24 = arith.constant 1 : index
    %c0_25 = arith.constant 0 : index
    %c0_26 = arith.constant 0 : index
    %29 = vector.load %arg9[%c1_24, %c0_25, %c0_26] : memref<18x16x384xbf16, #tpu.memory_space<vmem>>, vector<16x16x384xbf16>
    %30 = vector.shape_cast %29 : vector<16x16x384xbf16> to vector<256x384xbf16>
    %c2 = arith.constant 2 : index
    %c0_27 = arith.constant 0 : index
    %c0_28 = arith.constant 0 : index
    %31 = vector.load %arg9[%c2, %c0_27, %c0_28] : memref<18x16x384xbf16, #tpu.memory_space<vmem>>, vector<16x16x384xbf16>
    %32 = vector.shape_cast %31 : vector<16x16x384xbf16> to vector<256x384xbf16>
    %c0_29 = arith.constant 0 : index
    %c0_30 = arith.constant 0 : index
    %c0_31 = arith.constant 0 : index
    %33 = vector.load %arg4[%c0_29, %c0_30, %c0_31] : memref<3x384x128xbf16, #tpu.memory_space<vmem>>, vector<1x384x128xbf16>
    %34 = vector.shape_cast %33 : vector<1x384x128xbf16> to vector<384x128xbf16>
    %cst_32 = arith.constant dense<0.000000e+00> : vector<256x128xf32>
    %35 = tpu.matmul %28, %34, %cst_32 {dimension_numbers = #tpu.dot_dimension_numbers<[1], [0], [0], [1], [0, 0, 1, 1], [], []>} : vector<256x384xbf16>, vector<384x128xbf16>, vector<256x128xf32> -> vector<256x128xf32>
    %c1_33 = arith.constant 1 : index
    %c0_34 = arith.constant 0 : index
    %c0_35 = arith.constant 0 : index
    %36 = vector.load %arg4[%c1_33, %c0_34, %c0_35] : memref<3x384x128xbf16, #tpu.memory_space<vmem>>, vector<1x384x128xbf16>
    %37 = vector.shape_cast %36 : vector<1x384x128xbf16> to vector<384x128xbf16>
    %cst_36 = arith.constant dense<0.000000e+00> : vector<256x128xf32>
    %38 = tpu.matmul %30, %37, %cst_36 {dimension_numbers = #tpu.dot_dimension_numbers<[1], [0], [0], [1], [0, 0, 1, 1], [], []>} : vector<256x384xbf16>, vector<384x128xbf16>, vector<256x128xf32> -> vector<256x128xf32>
    %39 = arith.addf %35, %38 : vector<256x128xf32>
    %c2_37 = arith.constant 2 : index
    %c0_38 = arith.constant 0 : index
    %c0_39 = arith.constant 0 : index
    %40 = vector.load %arg4[%c2_37, %c0_38, %c0_39] : memref<3x384x128xbf16, #tpu.memory_space<vmem>>, vector<1x384x128xbf16>
    %41 = vector.shape_cast %40 : vector<1x384x128xbf16> to vector<384x128xbf16>
    %cst_40 = arith.constant dense<0.000000e+00> : vector<256x128xf32>
    %42 = tpu.matmul %32, %41, %cst_40 {dimension_numbers = #tpu.dot_dimension_numbers<[1], [0], [0], [1], [0, 0, 1, 1], [], []>} : vector<256x384xbf16>, vector<384x128xbf16>, vector<256x128xf32> -> vector<256x128xf32>
    %43 = arith.addf %39, %42 : vector<256x128xf32>
    %c0_41 = arith.constant 0 : index
    %c0_42 = arith.constant 0 : index
    %44 = vector.load %arg5[%c0_41, %c0_42] : memref<1x128xf32, #tpu.memory_space<vmem>>, vector<1x128xf32>
    %45 = vector.broadcast %44 : vector<1x128xf32> to vector<256x128xf32>
    %46 = arith.addf %43, %45 : vector<256x128xf32>
    %cst_43 = arith.constant 0.000000e+00 : f32
    %47 = vector.broadcast %cst_43 : f32 to vector<256x128xf32>
    %48 = arith.maximumf %46, %47 : vector<256x128xf32>
    %49 = arith.truncf %48 : vector<256x128xf32> to vector<256x128xbf16>
    %c0_44 = arith.constant 0 : index
    %c0_45 = arith.constant 0 : index
    %50 = vector.load %arg6[%c0_44, %c0_45] : memref<128x128xbf16, #tpu.memory_space<vmem>>, vector<128x128xbf16>
    %cst_46 = arith.constant dense<0.000000e+00> : vector<256x128xf32>
    %51 = tpu.matmul %49, %50, %cst_46 {dimension_numbers = #tpu.dot_dimension_numbers<[1], [0], [0], [1], [0, 0, 1, 1], [], []>} : vector<256x128xbf16>, vector<128x128xbf16>, vector<256x128xf32> -> vector<256x128xf32>
    %c0_47 = arith.constant 0 : index
    %c0_48 = arith.constant 0 : index
    %52 = vector.load %arg7[%c0_47, %c0_48] : memref<1x128xf32, #tpu.memory_space<vmem>>, vector<1x128xf32>
    %53 = vector.broadcast %52 : vector<1x128xf32> to vector<256x128xf32>
    %54 = arith.addf %51, %53 : vector<256x128xf32>
    %c0_49 = arith.constant 0 : index
    %c0_50 = arith.constant 0 : index
    %c0_51 = arith.constant 0 : index
    %c0_52 = arith.constant 0 : index
    %55 = vector.load %arg1[%c0_49, %c0_50, %c0_51, %c0_52] : memref<1x16x16x128xbf16, #tpu.memory_space<vmem>>, vector<1x16x16x128xbf16>
    %56 = vector.shape_cast %55 : vector<1x16x16x128xbf16> to vector<16x16x128xbf16>
    %57 = vector.shape_cast %56 : vector<16x16x128xbf16> to vector<256x128xbf16>
    %58 = arith.extf %57 : vector<256x128xbf16> to vector<256x128xf32>
    %59 = arith.addf %54, %58 : vector<256x128xf32>
    %cst_53 = arith.constant 0.000000e+00 : f32
    %60 = vector.broadcast %cst_53 : f32 to vector<256x128xf32>
    %61 = arith.maximumf %59, %60 : vector<256x128xf32>
    %62 = vector.shape_cast %61 : vector<256x128xf32> to vector<16x16x128xf32>
    %63 = arith.truncf %62 : vector<16x16x128xf32> to vector<16x16x128xbf16>
    %c0_54 = arith.constant 0 : index
    %c0_55 = arith.constant 0 : index
    %c0_56 = arith.constant 0 : index
    %c0_57 = arith.constant 0 : index
    %64 = vector.load %arg8[%c0_54, %c0_55, %c0_56, %c0_57] : memref<1x16x16x128xbf16, #tpu.memory_space<vmem>>, vector<1x16x16x128xbf16>
    %65 = vector.shape_cast %64 : vector<1x16x16x128xbf16> to vector<16x16x128xbf16>
    %66 = vector.shape_cast %63 : vector<16x16x128xbf16> to vector<1x16x16x128xbf16>
    tpu.vector_store %arg8[%c0_54, %c0_55, %c0_56, %c0_57], %66 {strides = array<i32>} : memref<1x16x16x128xbf16, #tpu.memory_space<vmem>>, vector<1x16x16x128xbf16>,
    return
  }
  func.func @transform_0(%arg0: i32) -> (i32, i32, i32, i32) {
    %c0_i32 = arith.constant 0 : i32
    %c0_i32_0 = arith.constant 0 : i32
    %c0_i32_1 = arith.constant 0 : i32
    %c0_i32_2 = arith.constant 0 : i32
    return %arg0, %c0_i32, %c0_i32_0, %c0_i32_1 : i32, i32, i32, i32
  }
  func.func @transform_1(%arg0: i32) -> (i32, i32) {
    %c0_i32 = arith.constant 0 : i32
    %c0_i32_0 = arith.constant 0 : i32
    %c0_i32_1 = arith.constant 0 : i32
    return %c0_i32, %c0_i32_0 : i32, i32
  }
  func.func @transform_2(%arg0: i32) -> (i32, i32) {
    %c0_i32 = arith.constant 0 : i32
    %c0_i32_0 = arith.constant 0 : i32
    %c0_i32_1 = arith.constant 0 : i32
    return %c0_i32, %c0_i32_0 : i32, i32
  }
  func.func @transform_3(%arg0: i32) -> (i32, i32, i32) {
    %c0_i32 = arith.constant 0 : i32
    %c0_i32_0 = arith.constant 0 : i32
    %c0_i32_1 = arith.constant 0 : i32
    %c0_i32_2 = arith.constant 0 : i32
    return %c0_i32, %c0_i32_0, %c0_i32_1 : i32, i32, i32
  }
  func.func @transform_4(%arg0: i32) -> (i32, i32) {
    %c0_i32 = arith.constant 0 : i32
    %c0_i32_0 = arith.constant 0 : i32
    %c0_i32_1 = arith.constant 0 : i32
    return %c0_i32, %c0_i32_0 : i32, i32
  }
  func.func @transform_5(%arg0: i32) -> (i32, i32) {
    %c0_i32 = arith.constant 0 : i32
    %c0_i32_0 = arith.constant 0 : i32
    %c0_i32_1 = arith.constant 0 : i32
    return %c0_i32, %c0_i32_0 : i32, i32
  }
  func.func @transform_6(%arg0: i32) -> (i32, i32) {
    %c0_i32 = arith.constant 0 : i32
    %c0_i32_0 = arith.constant 0 : i32
    %c0_i32_1 = arith.constant 0 : i32
    return %c0_i32, %c0_i32_0 : i32, i32
  }
  func.func @transform_7(%arg0: i32) -> (i32, i32, i32, i32) {
    %c0_i32 = arith.constant 0 : i32
    %c0_i32_0 = arith.constant 0 : i32
    %c0_i32_1 = arith.constant 0 : i32
    %c0_i32_2 = arith.constant 0 : i32
    return %arg0, %c0_i32, %c0_i32_0, %c0_i32_1 : i32, i32, i32, i32
  }
}

</mosaic_0001>

<bundles_post_ra>
// kernel: bottleneck_forward.1
= control target key start
LH: loop header
LB: loop body
LE: loop exit
PB: predicated region body
PF: predicated region fallthrough
CT: control target
= control target key end

     0   :  { %s5722_s24 = smov 0   ;;  %s6819_s0 = inlined_call_operand.vmem [shape: bf16[2,16,16,128], index: 0, kind: input, shape index: {}]   ;;  %s6820_s1 = inlined_call_operand.vmem [shape: bf16[128,128], index: 1, kind: input, shape index: {}]   ;;  %s6821_s2 = inlined_call_operand.vmem [shape: f32[1,128], index: 2, kind: input, shape index: {}]   ;;  %s6822_s3 = inlined_call_operand.vmem [shape: bf16[3,384,128], index: 3, kind: input, shape index: {}]   ;;  %s6823_s4 = inlined_call_operand.vmem [shape: f32[1,128], index: 4, kind: input, shape index: {}]   ;;  %s6824_s5 = inlined_call_operand.vmem [shape: bf16[128,128], index: 5, kind: input, shape index: {}]   ;;  %s6825_s6 = inlined_call_operand.vmem [shape: f32[1,128], index: 6, kind: input, shape index: {}]   ;;  %s6826_s7 = inlined_call_operand.vmem [shape: bf16[2,16,16,128], index: 7, kind: output, shape index: {}]  }
   0x1 LB: > { %s4113_s25 = sadd.s32 4294967295, %s5679_s24   ;;  %p4117_p0 = scmp.ge.s32.totalorder %s5679_s24, 1  ;;  %s5679_s24 = sphi %s5722_s24, %s17_s24  }
   0x2   : > { %p237_p1 = scmp.lt.s32.totalorder %s5679_s24, 3 }
   0x4   : > { %p238_p2 = pnand %p4117_p0, %p237_p1 }
   0x6   : > { %241 = sbr.rel (%p238_p2) target bundleno = 1193 (0x4a9), region = 48 }
   0xb   : > { %v5237_v0 = vld [vmem:[%s6820_s1 + $0x38] sm:$0xff]  ;;  %v5236_v1 = vld [vmem:[%s6820_s1 + $0x30] sm:$0xff]  ;;  %v5235_v2 = vld [vmem:[%s6820_s1 + $0x28] sm:$0xff]  ;;  %p269_p3 = scmp.lt.s32.totalorder %s4113_s25, 1  ;;  %vm837_vm0 = vcmask 1040384   ;;  %vm904_vm2 = vcmask 1047552  }
   0xc   : > { %476 = vmatpush.bf16.msra.mxu0 %v5237_v0  ;;  %5636 = vmatpush.bf16.msra.mxu3 %v5237_v0  ;;  %v5234_v3 = vld [vmem:[%s6820_s1 + $0x20] sm:$0xff]  ;;  %v5233_v4 = vld [vmem:[%s6820_s1 + $0x18] sm:$0xff]  ;;  %v5232_v5 = vld [vmem:[%s6820_s1 + $0x10] sm:$0xff]  ;;  %vm838_vm1 = vsmask.f32 256 }
   0xd   : > { %s6864_s25 = smov (!%p269_p3, %s4113_s25), 1  ;;  %v5231_v6 = vld [vmem:[%s6820_s1 + $0x8] sm:$0xff]  ;;  %v5230_v7 = vld [vmem:[%s6820_s1] sm:$0xff]  ;;  %v5421_v18 = vld [vmem:[%s6822_s3 + $0x138] sm:$0xff]  ;;  %vm905_vm3 = vsmask.f32 7424 }
   0xe   : > { %s5212_s17 = sshll.u32 %s6864_s25, 7  ;;  %2032 = vmatpush.bf16.msra.mxu2 %v5421_v18  ;;  %v5780_v19 = vld [vmem:[%s6822_s3 + $0x130] sm:$0xff]  ;;  %v5787_v21 = vld [vmem:[%s6822_s3 + $0x128] sm:$0xff]  ;;  %v5793_v22 = vld [vmem:[%s6822_s3 + $0x120] sm:$0xff] }
   0xf   : > { %s5762_s22 = scalar_lea.vmem %s6819_s0, %s5212_s17  ;;  %v5413_v23 = vld [vmem:[%s6822_s3 + $0xf8] sm:$0xff]  ;;  %v5412_v25 = vld [vmem:[%s6822_s3 + $0xf0] sm:$0xff]  ;;  %v5411_v28 = vld [vmem:[%s6822_s3 + $0xe8] sm:$0xff]  ;;  %s6723_s21 = scalar_lea.vmem %s6826_s7, %s5212_s17 }
  0x10   : > { %477 = vmatpush.bf16.msra.mxu0 %v5236_v1  ;;  %5637 = vmatpush.bf16.msra.mxu3 %v5236_v1  ;;  %v5214_v8 = vld [vmem:[%s5762_s22] sm:$0xff]  ;;  %v5215_v10 = vld [vmem:[%s5762_s22 + $0x8] sm:$0xff]  ;;  %v5216_v12 = vld [vmem:[%s5762_s22 + $0x10] sm:$0xff] }
  0x11   : > { %v5226_v9 = vld [vmem:[%s5762_s22 + $0x60] sm:$0xff]  ;;  %v5227_v11 = vld [vmem:[%s5762_s22 + $0x68] sm:$0xff]  ;;  %v5228_v13 = vld [vmem:[%s5762_s22 + $0x70] sm:$0xff]  ;;  %1943 = vmatpush.bf16.msra.mxu1 %v5413_v23 }
  0x12   : > { %v5217_v14 = vld [vmem:[%s5762_s22 + $0x18] sm:$0xff]  ;;  %v5218_v16 = vld [vmem:[%s5762_s22 + $0x20] sm:$0xff]  ;;  %v5219_v17 = vld [vmem:[%s5762_s22 + $0x28] sm:$0xff]  ;;  %2033 = vmatpush.bf16.msra.mxu2 %v5780_v19 }
  0x13   : > { %v5229_v15 = vld [vmem:[%s5762_s22 + $0x78] sm:$0xff]  ;;  %v5220_v20 = vld [vmem:[%s5762_s22 + $0x30] sm:$0xff]  ;;  %v5821_v29 = vld [vmem:[%s6822_s3 + $0x108] sm:$0xff] }
  0x14   : > { %478 = vmatpush.bf16.msra.mxu0 %v5235_v2  ;;  %5638 = vmatpush.bf16.msra.mxu3 %v5235_v2  ;;  %v5802_v24 = vld [vmem:[%s6822_s3 + $0x118] sm:$0xff]  ;;  %v5812_v27 = vld [vmem:[%s6822_s3 + $0x110] sm:$0xff]  ;;  %v5410_v30 = vld [vmem:[%s6822_s3 + $0xe0] sm:$0xff] }
  0x15   : > { %v5221_v26 = vld [vmem:[%s5762_s22 + $0x38] sm:$0xff]  ;;  %1944 = vmatpush.bf16.msra.mxu1 %v5412_v25  ;;  %v5830_v31 = vld [vmem:[%s6822_s3 + $0x100] sm:$0xff]  ;;  %v5408_v36 = vld [vmem:[%s6822_s3 + $0xd0] sm:$0xff] }
  0x16   : > { %2034 = vmatpush.bf16.msra.mxu2 %v5787_v21  ;;  %v5409_v32 = vld [vmem:[%s6822_s3 + $0xd8] sm:$0xff]  ;;  %v5839_v33 = vld [vmem:[%s6821_s2] ss:$0 sm:$0xff]  ;;  %v5407_v39 = vld [vmem:[%s6822_s3 + $0xc8] sm:$0xff] }
  0x17   : > { %v5222_v34 = vld [vmem:[%s5762_s22 + $0x40] sm:$0xff]  ;;  %v5389_v43 = vld [vmem:[%s6822_s3 + $0x38] sm:$0xff]  ;;  %v5388_v50 = vld [vmem:[%s6822_s3 + $0x30] sm:$0xff] }
  0x18   : > { %479 = vmatpush.bf16.msra.mxu0 %v5234_v3  ;;  %5639 = vmatpush.bf16.msra.mxu3 %v5234_v3  ;;  %v5406_v45 = vld [vmem:[%s6822_s3 + $0xc0] sm:$0xff]  ;;  %v5223_v56 = vld [vmem:[%s5762_s22 + $0x48] sm:$0xff]  ;;  %vm5869_vm4 = vmand %vm837_vm0, %vm838_vm1 }
  0x19   : > { %1945 = vmatpush.bf16.msra.mxu1 %v5411_v28  ;;  %v5387_v2 = vld [vmem:[%s6822_s3 + $0x28] sm:$0xff]  ;;  %vm5877_vm5 = vmand %vm904_vm2, %vm905_vm3 }
  0x1a   : > { %2035 = vmatpush.bf16.msra.mxu2 %v5793_v22 }
  0x1c   : > { %480 = vmatpush.bf16.msra.mxu0 %v5233_v4  ;;  %5640 = vmatpush.bf16.msra.mxu3 %v5233_v4 }
  0x1d   : > { %1946 = vmatpush.bf16.msra.mxu1 %v5410_v30 }
  0x1e   : > { %2036 = vmatpush.bf16.msra.mxu2 %v5802_v24 }
  0x20   : > { %481 = vmatpush.bf16.msra.mxu0 %v5232_v5  ;;  %5641 = vmatpush.bf16.msra.mxu3 %v5232_v5 }
  0x21   : > { %1947 = vmatpush.bf16.msra.mxu1 %v5409_v32 }
  0x22   : > { %2037 = vmatpush.bf16.msra.mxu2 %v5812_v27 }
  0x24   : > { %482 = vmatpush.bf16.msra.mxu0 %v5231_v6  ;;  %5642 = vmatpush.bf16.msra.mxu3 %v5231_v6 }
  0x25   : > { %1948 = vmatpush.bf16.msra.mxu1 %v5408_v36 }
  0x26   : > { %2038 = vmatpush.bf16.msra.mxu2 %v5821_v29 }
  0x28   : > { %483 = vmatpush.bf16.msra.mxu0 %v5230_v7  ;;  %5643 = vmatpush.bf16.msra.mxu3 %v5230_v7 }
  0x29   : > { %1949 = vmatpush.bf16.msra.mxu1 %v5407_v39 }
  0x2a   : > { %2039 = vmatpush.bf16.msra.mxu2 %v5830_v31 }
  0x2b   : > { %484 = vmatmul.bf16.vlgmr.msra.gmra.mxu0 %v5214_v8  ;;  %544 = vmatmul.bf16.vlgmr.msra.gmra.mxu3 %v5226_v9 }
  0x2c   : > { %5644 = vmatpush.bf16.msrb.mxu3 %v5413_v23  ;;  %2610 = vmatpush.bf16.msrb.mxu0 %v5389_v43 }
  0x2d   : > { %1950 = vmatpush.bf16.msra.mxu1 %v5406_v45 }
  0x30   : > { %5645 = vmatpush.bf16.msrb.mxu3 %v5412_v25  ;;  %2611 = vmatpush.bf16.msrb.mxu0 %v5388_v50 }
  0x34   : > { %5646 = vmatpush.bf16.msrb.mxu3 %v5411_v28  ;;  %2612 = vmatpush.bf16.msrb.mxu0 %v5387_v2  ;;  %v5383_v2 = vld [vmem:[%s6822_s3 + $0x8] sm:$0xff] }
  0x38   : > { %5647 = vmatpush.bf16.msrb.mxu3 %v5410_v30 }
  0x3b   : > { %489 = vmatmul.bf16.gmra.mxu0 %v5215_v10  ;;  %549 = vmatmul.bf16.gmra.mxu3 %v5227_v11 }
  0x3c   : > { %5648 = vmatpush.bf16.msrb.mxu3 %v5409_v32 }
  0x40   : > { %5649 = vmatpush.bf16.msrb.mxu3 %v5408_v36  ;;  %v5385_v36 = vld [vmem:[%s6822_s3 + $0x18] sm:$0xff] }
  0x44   : > { %5650 = vmatpush.bf16.msrb.mxu3 %v5407_v39 }
  0x48   : > { %5651 = vmatpush.bf16.msrb.mxu3 %v5406_v45 }
  0x4b   : > { %494 = vmatmul.bf16.gmra.mxu0 %v5216_v12  ;;  %554 = vmatmul.bf16.gmra.mxu3 %v5228_v13 }
  0x4c   : > { %5652 = vmatpush.bf16.msra.mxu3 %v5421_v18 }
  0x50   : > { %5653 = vmatpush.bf16.msra.mxu3 %v5780_v19 }
  0x54   : > { %5654 = vmatpush.bf16.msra.mxu3 %v5787_v21 }
  0x58   : > { %5655 = vmatpush.bf16.msra.mxu3 %v5793_v22 }
  0x5b   : > { %499 = vmatmul.bf16.gmra.mxu0 %v5217_v14  ;;  %559 = vmatmul.bf16.gmra.mxu3 %v5229_v15  ;;  %v5386_v15 = vld [vmem:[%s6822_s3 + $0x20] sm:$0xff] }
  0x5c   : > { %2613 = vmatpush.bf16.msrb.mxu0 %v5386_v15  ;;  %5656 = vmatpush.bf16.msra.mxu3 %v5802_v24 }
  0x60   : > { %2614 = vmatpush.bf16.msrb.mxu0 %v5385_v36  ;;  %5657 = vmatpush.bf16.msra.mxu3 %v5812_v27 }
  0x64   : > { %5658 = vmatpush.bf16.msra.mxu3 %v5821_v29  ;;  %v5382_v29 = vld [vmem:[%s6822_s3] sm:$0xff] }
  0x68   : > { %5659 = vmatpush.bf16.msra.mxu3 %v5830_v31 }
  0x6b   : > { %504 = vmatmul.bf16.gmra.mxu0 %v5218_v16 }
  0x7b   : > { %509 = vmatmul.bf16.gmra.mxu0 %v5219_v17 }
  0x8b   : > { %514 = vmatmul.bf16.gmra.mxu0 %v5220_v20 }
  0x9b   : > { %519 = vmatmul.bf16.gmra.mxu0 %v5221_v26 }
  0xa8   : > { %v485_v35 = vpop.f32.mrf.mxu0 }
  0xa9   : > { %v486_v37 = vadd.f32 %v5839_v33, %v485_v35 }
  0xab   : > { %v565_v38 = vmax.f32 %v486_v37, 0.0  ;;  %524 = vmatmul.bf16.gmra.mxu0 %v5222_v34 }
  0xad   : > { %v597_v40 = vpack.c.bf16 %v565_v38, %v565_v38 }
  0xae   : > { %v545_v41 = vpop.f32.mrf.mxu3 }
  0xaf   : > { %1077 = vst [vmem:[#allocation2 + $0x1c] sm:$0xf] %v597_v40  ;;  %v546_v42 = vadd.f32 %v5839_v33, %v545_v41  ;;  %v661_v53 = vunpack.c.l.b16 %v597_v40 }
  0xb0   : > { %v487_v44 = vpop.f32.mrf.mxu0 }
  0xb1   : > { %v589_v46 = vmax.f32 %v546_v42, 0.0  ;;  %v488_v47 = vadd.f32 %v5839_v33, %v487_v44 }
  0xb3   : > { %v621_v48 = vpack.c.bf16 %v589_v46, %v589_v46  ;;  %v566_v49 = vmax.f32 %v488_v47, 0.0 }
  0xb5   : > { %1101 = vst [vmem:[#allocation2 + $0x13c] sm:$0xf] %v621_v48  ;;  %v598_v51 = vpack.c.bf16 %v566_v49, %v566_v49  ;;  %v685_v61 = vunpack.c.l.b16 %v621_v48  ;;  %v5224_v48 = vld [vmem:[%s5762_s22 + $0x50] sm:$0xff] }
  0xb6   : > { %v547_v52 = vpop.f32.mrf.mxu3  ;;  %v5286_v14 = vld [vmem:[#allocation2 + $0x1c] sm:$0xf]  ;;  %v5384_v49 = vld [vmem:[%s6822_s3 + $0x10] sm:$0xff] }
  0xb7   : > { %v662_v54 = vunpack.c.l.b16 %v598_v51  ;;  %1078 = vst [vmem:[#allocation2 + $0x28] sm:$0xf] %v598_v51  ;;  %v548_v55 = vadd.f32 %v5839_v33, %v547_v52  ;;  %2615 = vmatpush.bf16.msrb.mxu0 %v5384_v49 }
  0xb8   : > { %v490_v57 = vpop.f32.mrf.mxu0 }
  0xb9   : > { %v693_v58 = vpack.c.b16 %v662_v54, %v661_v53  ;;  %v590_v59 = vmax.f32 %v548_v55, 0.0  ;;  %v491_v60 = vadd.f32 %v5839_v33, %v490_v57 }
  0xbb   : > { %v710_v62 = vshrl.u32 %v693_v58, 16  ;;  %v713_v63 = vshll.u32 %v693_v58, 16  ;;  %v622_v0 = vpack.c.bf16 %v590_v59, %v590_v59  ;;  %v567_v1 = vmax.f32 %v491_v60, 0.0  ;;  %529 = vmatmul.bf16.gmra.mxu0 %v5223_v56 }
  0xbc   : > { %2616 = vmatpush.bf16.msrb.mxu0 %v5383_v2 }
  0xbd   : > { %v712_v3 = vrot.slane %v710_v62, 7  ;;  %v856_v5 = vrot.slane %v713_v63, 1  ;;  %v686_v6 = vunpack.c.l.b16 %v622_v0  ;;  %1102 = vst [vmem:[#allocation2 + $0x148] sm:$0xf] %v622_v0  ;;  %v5873_v7 = vpack.c.bf16 %v567_v1, %v567_v1  ;;  %v5397_v1 = vld [vmem:[%s6822_s3 + $0x78] sm:$0xff] }
  0xbe   : > { %v550_v9 = vpop.f32.mrf.mxu3  ;;  %v4270_v10 = vld [vmem:[#allocation2 + $0x24] sm:$0xf0]  ;;  %2699 = vmatpush.bf16.msrb.mxu1 %v5397_v1 }
  0xbf   : > { %v715_v11 = vor.u32 %v713_v63, %v712_v3  ;;  %v857_v12 = vor.u32 %v856_v5, %v710_v62  ;;  %v705_v13 = vpack.c.b16 %v686_v6, %v685_v61  ;;  %1079 = vst [vmem:[#allocation2 + $0x34] sm:$0xf] %v5873_v7  ;;  %v551_v16 = vadd.f32 %v5839_v33, %v550_v9 }
  0xc0   : > { %v492_v17 = vpop.f32.mrf.mxu0  ;;  %v4273_v18 = vor.u32 %v5286_v14, %v4270_v10  ;;  %v663_v55 = vunpack.c.l.b16 %v5873_v7  ;;  %2617 = vmatpush.bf16.msrb.mxu0 %v5382_v29 }
  0xc1   : > { %v840_v19 = vsel %vm5869_vm4, 0, %v715_v11  ;;  %v907_v20 = vsel %vm5877_vm5, %v857_v12, 0  ;;  %v794_v21 = vshrl.u32 %v705_v13, 16  ;;  %v797_v23 = vshll.u32 %v705_v13, 16 }
  0xc2   : > { %v948_v25 = vunpack.c.l.b16 %v840_v19  ;;  %v949_v26 = vunpack.c.h.b16 %v840_v19  ;;  %v1125_v28 = vunpack.c.l.b16 %v907_v20  ;;  %v1126_v30 = vunpack.c.h.b16 %v907_v20  ;;  %2040 = vmatmul.bf16.vlgmr.msra.gmra.mxu2 %v4273_v18 }
  0xc3   : > { %v796_v32 = vrot.slane %v794_v21, 7  ;;  %v880_v22 = vrot.slane %v797_v23, 1  ;;  %v591_v34 = vmax.f32 %v551_v16, 0.0  ;;  %v493_v35 = vadd.f32 %v5839_v33, %v492_v17 }
  0xc4   : > { %v980_v37 = vpack.c.b16 %v948_v25, %v948_v25  ;;  %v981_v38 = vpack.c.b16 %v949_v26, %v949_v26  ;;  %v1157_v39 = vpack.c.b16 %v1125_v28, %v1125_v28  ;;  %v1158_v40 = vpack.c.b16 %v1126_v30, %v1126_v30 }
  0xc5   : > { %v799_v41 = vor.u32 %v797_v23, %v796_v32  ;;  %v881_v42 = vor.u32 %v880_v22, %v794_v21  ;;  %v568_v43 = vmax.f32 %v493_v35, 0.0  ;;  %v623_v47 = vpack.c.bf16 %v591_v34, %v591_v34 }
  0xc6   : > { %1045 = vst [vmem:[#allocation2 + $0x18] sm:$0xf] %v980_v37  ;;  %v552_v44 = vpop.f32.mrf.mxu3  ;;  %v5681_v26 = vmov 0  }
  0xc7   : > { %1046 = vst [vmem:[#allocation2 + $0x24] sm:$0xf] %v981_v38  ;;  %v852_v45 = vsel %vm5869_vm4, 0, %v799_v41  ;;  %v919_v46 = vsel %vm5877_vm5, %v881_v42, 0  ;;  %v600_v24 = vpack.c.bf16 %v568_v43, %v568_v43  ;;  %v553_v57 = vadd.f32 %v5839_v33, %v552_v44 }
  0xc8   : > { %1221 = vst [vmem:[#allocation2 + $0x20] sm:$0xf] %v1157_v39  ;;  %v972_v50 = vunpack.c.l.b16 %v852_v45  ;;  %v973_v51 = vunpack.c.h.b16 %v852_v45  ;;  %v1149_v52 = vunpack.c.l.b16 %v919_v46  ;;  %v1150_v53 = vunpack.c.h.b16 %v919_v46  ;;  %v495_v54 = vpop.f32.mrf.mxu0 }
  0xc9   : > { %1222 = vst [vmem:[#allocation2 + $0x2c] sm:$0xf] %v1158_v40  ;;  %v664_v56 = vunpack.c.l.b16 %v600_v24  ;;  %v496_v58 = vadd.f32 %v5839_v33, %v495_v54  ;;  %v592_v63 = vmax.f32 %v553_v57, 0.0  ;;  %v687_v3 = vunpack.c.l.b16 %v623_v47 }
  0xca   : > { %v1004_v59 = vpack.c.b16 %v972_v50, %v972_v50  ;;  %v1005_v60 = vpack.c.b16 %v973_v51, %v973_v51  ;;  %v1181_v61 = vpack.c.b16 %v1149_v52, %v1149_v52  ;;  %1103 = vst [vmem:[#allocation2 + $0x154] sm:$0xf] %v623_v47  ;;  %v1182_v27 = vpack.c.b16 %v1150_v53, %v1150_v53  ;;  %v5289_v51 = vld [vmem:[#allocation2 + $0x34] sm:$0xf]  ;;  %v5225_v52 = vld [vmem:[%s5762_s22 + $0x58] sm:$0xff] }
  0xcb   : > { %v694_v62 = vpack.c.b16 %v664_v56, %v663_v55  ;;  %1080 = vst [vmem:[#allocation2 + $0x40] sm:$0xf] %v600_v24  ;;  %v569_v0 = vmax.f32 %v496_v58, 0.0  ;;  %534 = vmatmul.bf16.gmra.mxu0 %v5224_v48  ;;  %v624_v7 = vpack.c.bf16 %v592_v63, %v592_v63 }
  0xcc   : > { %1069 = vst [vmem:[#allocation2 + $0x138] sm:$0xf] %v1004_v59 }
  0xcd   : > { %1070 = vst [vmem:[#allocation2 + $0x144] sm:$0xf] %v1005_v60  ;;  %v717_v5 = vshrl.u32 %v694_v62, 16  ;;  %v720_v6 = vshll.u32 %v694_v62, 16  ;;  %v5915_v9 = vpack.c.bf16 %v569_v0, %v569_v0  ;;  %v4268_v10 = vld [vmem:[#allocation2 + $0x18] sm:$0xf]  ;;  %v688_v15 = vunpack.c.l.b16 %v624_v7 }
  0xce   : > { %1245 = vst [vmem:[#allocation2 + $0x140] sm:$0xf] %v1181_v61  ;;  %v555_v11 = vpop.f32.mrf.mxu3  ;;  %v5287_v12 = vld [vmem:[#allocation2 + $0x20] sm:$0xf0] }
  0xcf   : > { %1246 = vst [vmem:[#allocation2 + $0x14c] sm:$0xf] %v1182_v27  ;;  %v719_v13 = vrot.slane %v717_v5, 7  ;;  %v858_v14 = vrot.slane %v720_v6, 1  ;;  %v556_v16 = vadd.f32 %v5839_v33, %v555_v11  ;;  %v4269_v18 = vor.u32 %v5287_v12, %v4268_v10 }
  0xd0   : > { %1104 = vst [vmem:[#allocation2 + $0x160] sm:$0xf] %v624_v7  ;;  %v497_v17 = vpop.f32.mrf.mxu0  ;;  %v706_v21 = vpack.c.b16 %v688_v15, %v687_v3  ;;  %v665_v53 = vunpack.c.l.b16 %v5915_v9 }
  0xd1   : > { %v722_v19 = vor.u32 %v720_v6, %v719_v13  ;;  %v859_v20 = vor.u32 %v858_v14, %v717_v5  ;;  %1081 = vst [vmem:[#allocation2 + $0x4c] sm:$0xf] %v5915_v9  ;;  %v498_v23 = vadd.f32 %v5839_v33, %v497_v17  ;;  %v593_v25 = vmax.f32 %v556_v16, 0.0  ;;  %1951 = vmatmul.bf16.vlgmr.msra.gmra.mxu1 %v4269_v18 }
  0xd2   : > { %923 = vst [vmem:[#allocation2] sm:$0xff] %v5681_v26  ;;  %v801_v30 = vshrl.u32 %v706_v21, 16  ;;  %v804_v32 = vshll.u32 %v706_v21, 16  ;;  %v4282_v22 = vld [vmem:[#allocation2 + $0x3c] sm:$0xf0] }
  0xd3   : > { %v841_v31 = vsel %vm5869_vm4, 0, %v722_v19  ;;  %v908_v28 = vsel %vm5877_vm5, %v859_v20, 0  ;;  %v4412_v38 = vld [vmem:[#allocation2 + $0x138] sm:$0xf]  ;;  %925 = vst [vmem:[#allocation2 + $0xc] sm:$0xff] %v5681_v26  ;;  %v5930_v42 = vpack.c.bf16 %v593_v25, %v593_v25  ;;  %v570_v43 = vmax.f32 %v498_v23, 0.0 }
  0xd4   : > { %v950_v34 = vunpack.c.l.b16 %v841_v31  ;;  %v951_v35 = vunpack.c.h.b16 %v841_v31  ;;  %v1127_v36 = vunpack.c.l.b16 %v908_v28  ;;  %v1128_v37 = vunpack.c.h.b16 %v908_v28  ;;  %v5323_v39 = vld [vmem:[#allocation2 + $0x140] sm:$0xf0]  ;;  %924 = vst [vmem:[#allocation2 + $0x8] sm:$0xf] %v5681_v26 }
  0xd5   : > { %v803_v40 = vrot.slane %v801_v30, 7  ;;  %v882_v41 = vrot.slane %v804_v32, 1  ;;  %926 = vst [vmem:[#allocation2 + $0x14] sm:$0xf] %v5681_v26  ;;  %v602_v50 = vpack.c.bf16 %v570_v43, %v570_v43  ;;  %v4285_v54 = vor.u32 %v5289_v51, %v4282_v22 }
  0xd6   : > { %v982_v44 = vpack.c.b16 %v950_v34, %v950_v34  ;;  %v983_v45 = vpack.c.b16 %v951_v35, %v951_v35  ;;  %v1159_v46 = vpack.c.b16 %v1127_v36, %v1127_v36  ;;  %v557_v47 = vpop.f32.mrf.mxu3  ;;  %v1160_v24 = vpack.c.b16 %v1128_v37, %v1128_v37  ;;  %1105 = vst [vmem:[#allocation2 + $0x16c] sm:$0xf] %v5930_v42 }
  0xd7   : > { %v806_v48 = vor.u32 %v804_v32, %v803_v40  ;;  %v883_v49 = vor.u32 %v882_v41, %v801_v30  ;;  %v558_v55 = vadd.f32 %v5839_v33, %v557_v47  ;;  %v4413_v56 = vor.u32 %v5323_v39, %v4412_v38  ;;  %2045 = vmatmul.bf16.gmra.mxu2 %v4285_v54  ;;  %v5396_v30 = vld [vmem:[%s6822_s3 + $0x70] sm:$0xff] }
  0xd8   : > { %1047 = vst [vmem:[#allocation2 + $0x30] sm:$0xf] %v982_v44  ;;  %v500_v57 = vpop.f32.mrf.mxu0  ;;  %v666_v60 = vunpack.c.l.b16 %v602_v50  ;;  %v689_v9 = vunpack.c.l.b16 %v5930_v42  ;;  %2700 = vmatpush.bf16.msrb.mxu1 %v5396_v30 }
  0xd9   : > { %1048 = vst [vmem:[#allocation2 + $0x3c] sm:$0xf] %v983_v45  ;;  %v853_v58 = vsel %vm5869_vm4, 0, %v806_v48  ;;  %v920_v59 = vsel %vm5877_vm5, %v883_v49, 0  ;;  %v501_v61 = vadd.f32 %v5839_v33, %v500_v57  ;;  %2011 = vmatmul.bf16.vlgmr.msrb.gmra.mxu3 %v4413_v56  ;;  %v594_v2 = vmax.f32 %v558_v55, 0.0 }
  0xda   : > { %1223 = vst [vmem:[#allocation2 + $0x38] sm:$0xf] %v1159_v46  ;;  %v974_v27 = vunpack.c.l.b16 %v853_v58  ;;  %v975_v62 = vunpack.c.h.b16 %v853_v58  ;;  %v1151_v63 = vunpack.c.l.b16 %v920_v59  ;;  %v1152_v0 = vunpack.c.h.b16 %v920_v59  ;;  %v4556_v32 = vld [vmem:[#allocation2] sm:$0xf]  ;;  %v5239_v35 = vld [vmem:[#allocation2 + $0x8] sm:$0xf0] }
  0xdb   : > { %1224 = vst [vmem:[#allocation2 + $0x44] sm:$0xf] %v1160_v24  ;;  %v695_v1 = vpack.c.b16 %v666_v60, %v665_v53  ;;  %v571_v3 = vmax.f32 %v501_v61, 0.0  ;;  %539 = vmatmul.bf16.gmra.mxu0 %v5225_v52  ;;  %v626_v13 = vpack.c.bf16 %v594_v2, %v594_v2  ;;  %v4557_v54 = vor.u32 %v5239_v35, %v4556_v32  ;;  %v5292_v59 = vld [vmem:[#allocation2 + $0x4c] sm:$0xf] }
  0xdc   : > { %v1006_v5 = vpack.c.b16 %v974_v27, %v974_v27  ;;  %v1007_v6 = vpack.c.b16 %v975_v62, %v975_v62  ;;  %v1183_v7 = vpack.c.b16 %v1151_v63, %v1151_v63  ;;  %1082 = vst [vmem:[#allocation2 + $0x58] sm:$0xf] %v602_v50  ;;  %v1184_v10 = vpack.c.b16 %v1152_v0, %v1152_v0 }
  0xdd   : > { %v724_v11 = vshrl.u32 %v695_v1, 16  ;;  %v727_v12 = vshll.u32 %v695_v1, 16  ;;  %928 = vst [vmem:[#allocation2 + $0x198] sm:$0xff] %v5681_v26  ;;  %v690_v16 = vunpack.c.l.b16 %v626_v13  ;;  %v5945_v17 = vpack.c.bf16 %v571_v3, %v571_v3 }
  0xde   : > { %1071 = vst [vmem:[#allocation2 + $0x150] sm:$0xf] %v1006_v5  ;;  %v560_v14 = vpop.f32.mrf.mxu3 }
  0xdf   : > { %1072 = vst [vmem:[#allocation2 + $0x15c] sm:$0xf] %v1007_v6  ;;  %v726_v15 = vrot.slane %v724_v11, 7  ;;  %v860_v29 = vrot.slane %v727_v12, 1  ;;  %v4280_v18 = vld [vmem:[#allocation2 + $0x30] sm:$0xf]  ;;  %v561_v19 = vadd.f32 %v5839_v33, %v560_v14  ;;  %v707_v31 = vpack.c.b16 %v690_v16, %v689_v9 }
  0xe0   : > { %1247 = vst [vmem:[#allocation2 + $0x158] sm:$0xf] %v1183_v7  ;;  %v502_v20 = vpop.f32.mrf.mxu0  ;;  %v5290_v21 = vld [vmem:[#allocation2 + $0x38] sm:$0xf0]  ;;  %v667_v60 = vunpack.c.l.b16 %v5945_v17 }
  0xe1   : > { %1248 = vst [vmem:[#allocation2 + $0x164] sm:$0xf] %v1184_v10  ;;  %v729_v23 = vor.u32 %v727_v12, %v726_v15  ;;  %v861_v25 = vor.u32 %v860_v29, %v724_v11  ;;  %v503_v28 = vadd.f32 %v5839_v33, %v502_v20  ;;  %v595_v22 = vmax.f32 %v561_v19, 0.0 }
  0xe2   : > { %1106 = vst [vmem:[#allocation2 + $0x178] sm:$0xf] %v626_v13  ;;  %v4281_v34 = vor.u32 %v5290_v21, %v4280_v18  ;;  %v808_v38 = vshrl.u32 %v707_v31, 16  ;;  %v811_v39 = vshll.u32 %v707_v31, 16 }
  0xe3   : > { %v842_v36 = vsel %vm5869_vm4, 0, %v729_v23  ;;  %v909_v37 = vsel %vm5877_vm5, %v861_v25, 0  ;;  %1083 = vst [vmem:[#allocation2 + $0x64] sm:$0xf] %v5945_v17  ;;  %v4294_v44 = vld [vmem:[#allocation2 + $0x54] sm:$0xf0]  ;;  %v5958_v47 = vpack.c.bf16 %v595_v22, %v595_v22 }
  0xe4   : > { %v952_v40 = vunpack.c.l.b16 %v842_v36  ;;  %v953_v41 = vunpack.c.h.b16 %v842_v36  ;;  %v1129_v42 = vunpack.c.l.b16 %v909_v37  ;;  %v1130_v43 = vunpack.c.h.b16 %v909_v37  ;;  %1956 = vmatmul.bf16.gmra.mxu1 %v4281_v34  ;;  %929 = vst [vmem:[#allocation2 + $0x1a0] sm:$0xf] %v5681_v26 }
  0xe5   : > { %v810_v45 = vrot.slane %v808_v38, 7  ;;  %v884_v46 = vrot.slane %v811_v39, 1  ;;  %v572_v24 = vmax.f32 %v503_v28, 0.0  ;;  %v4424_v48 = vld [vmem:[#allocation2 + $0x150] sm:$0xf]  ;;  %930 = vst [vmem:[#allocation2 + $0x1a4] sm:$0xff] %v5681_v26  ;;  %v4297_v61 = vor.u32 %v5292_v59, %v4294_v44 }
  0xe6   : > { %v984_v49 = vpack.c.b16 %v952_v40, %v952_v40  ;;  %v985_v50 = vpack.c.b16 %v953_v41, %v953_v41  ;;  %v1161_v51 = vpack.c.b16 %v1129_v42, %v1129_v42  ;;  %v562_v52 = vpop.f32.mrf.mxu3  ;;  %v5326_v53 = vld [vmem:[#allocation2 + $0x158] sm:$0xf0]  ;;  %931 = vst [vmem:[#allocation2 + $0x1ac] sm:$0xf] %v5681_v26  ;;  %v1162_v55 = vpack.c.b16 %v1130_v43, %v1130_v43  ;;  %v4568_v40 = vld [vmem:[#allocation2 + $0x18] sm:$0xf] }
  0xe7   : > { %v813_v56 = vor.u32 %v811_v39, %v810_v45  ;;  %v885_v57 = vor.u32 %v884_v46, %v808_v38  ;;  %1107 = vst [vmem:[#allocation2 + $0x184] sm:$0xf] %v5958_v47  ;;  %v604_v58 = vpack.c.bf16 %v572_v24, %v572_v24  ;;  %v563_v27 = vadd.f32 %v5839_v33, %v562_v52 }
  0xe8   : > { %1049 = vst [vmem:[#allocation2 + $0x48] sm:$0xf] %v984_v49  ;;  %v4425_v62 = vor.u32 %v5326_v53, %v4424_v48  ;;  %v505_v63 = vpop.f32.mrf.mxu0  ;;  %2050 = vmatmul.bf16.gmra.mxu2 %v4297_v61  ;;  %v691_v15 = vunpack.c.l.b16 %v5958_v47  ;;  %v5242_v47 = vld [vmem:[#allocation2 + $0x20] sm:$0xf0] }
  0xe9   : > { %1050 = vst [vmem:[#allocation2 + $0x54] sm:$0xf] %v985_v50  ;;  %v854_v0 = vsel %vm5869_vm4, 0, %v813_v56  ;;  %v921_v26 = vsel %vm5877_vm5, %v885_v57, 0  ;;  %v668_v1 = vunpack.c.l.b16 %v604_v58  ;;  %v506_v2 = vadd.f32 %v5839_v33, %v505_v63 }
  0xea   : > { %1225 = vst [vmem:[#allocation2 + $0x50] sm:$0xf] %v1161_v51  ;;  %v976_v3 = vunpack.c.l.b16 %v854_v0  ;;  %v977_v5 = vunpack.c.h.b16 %v854_v0  ;;  %v1153_v6 = vunpack.c.l.b16 %v921_v26  ;;  %v1154_v7 = vunpack.c.h.b16 %v921_v26  ;;  %2016 = vmatmul.bf16.gmra.mxu3 %v4425_v62  ;;  %v5295_v45 = vld [vmem:[#allocation2 + $0x64] sm:$0xf] }
  0xeb   : > { %1226 = vst [vmem:[#allocation2 + $0x5c] sm:$0xf] %v1162_v55  ;;  %v696_v9 = vpack.c.b16 %v668_v1, %v667_v60  ;;  %v596_v10 = vmax.f32 %v563_v27, 0.0  ;;  %v573_v11 = vmax.f32 %v506_v2, 0.0  ;;  %2618 = vmatmul.bf16.vlgmr.msrb.gmra.mxu0 %v4557_v54  ;;  %v4569_v62 = vor.u32 %v5242_v47, %v4568_v40  ;;  %v5395_v2 = vld [vmem:[%s6822_s3 + $0x68] sm:$0xff] }
  0xec   : > { %v1008_v12 = vpack.c.b16 %v976_v3, %v976_v3  ;;  %v1009_v13 = vpack.c.b16 %v977_v5, %v977_v5  ;;  %v1185_v14 = vpack.c.b16 %v1153_v6, %v1153_v6  ;;  %1084 = vst [vmem:[#allocation2 + $0x70] sm:$0xf] %v604_v58  ;;  %v1186_v29 = vpack.c.b16 %v1154_v7, %v1154_v7  ;;  %v4580_v47 = vld [vmem:[#allocation2 + $0x30] sm:$0xf] }
  0xed   : > { %v731_v16 = vshrl.u32 %v696_v9, 16  ;;  %v734_v17 = vshll.u32 %v696_v9, 16  ;;  %v628_v18 = vpack.c.bf16 %v596_v10, %v596_v10  ;;  %v605_v23 = vpack.c.bf16 %v573_v11, %v573_v11  ;;  %2701 = vmatpush.bf16.msrb.mxu1 %v5395_v2 }
  0xee   : > { %1073 = vst [vmem:[#allocation2 + $0x168] sm:$0xf] %v1008_v12 }
  0xef   : > { %1074 = vst [vmem:[#allocation2 + $0x174] sm:$0xf] %v1009_v13  ;;  %v733_v19 = vrot.slane %v731_v16, 7  ;;  %v862_v20 = vrot.slane %v734_v17, 1  ;;  %v692_v21 = vunpack.c.l.b16 %v628_v18  ;;  %v4292_v25 = vld [vmem:[#allocation2 + $0x48] sm:$0xf]  ;;  %v669_v61 = vunpack.c.l.b16 %v605_v23 }
  0xf0   : > { %1249 = vst [vmem:[#allocation2 + $0x170] sm:$0xf] %v1185_v14  ;;  %v507_v31 = vpop.f32.mrf.mxu0  ;;  %v5293_v28 = vld [vmem:[#allocation2 + $0x50] sm:$0xf0] }
  0xf1   : > { %1250 = vst [vmem:[#allocation2 + $0x17c] sm:$0xf] %v1186_v29  ;;  %v736_v30 = vor.u32 %v734_v17, %v733_v19  ;;  %v863_v32 = vor.u32 %v862_v20, %v731_v16  ;;  %v708_v22 = vpack.c.b16 %v692_v21, %v691_v15  ;;  %v508_v34 = vadd.f32 %v5839_v33, %v507_v31 }
  0xf2   : > { %1108 = vst [vmem:[#allocation2 + $0x190] sm:$0xf] %v628_v18  ;;  %v4293_v35 = vor.u32 %v5293_v28, %v4292_v25 }
  0xf3   : > { %v843_v36 = vsel %vm5869_vm4, 0, %v736_v30  ;;  %v910_v37 = vsel %vm5877_vm5, %v863_v32, 0  ;;  %v815_v38 = vshrl.u32 %v708_v22, 16  ;;  %v818_v39 = vshll.u32 %v708_v22, 16  ;;  %1085 = vst [vmem:[#allocation2 + $0x7c] sm:$0xf] %v605_v23 }
  0xf4   : > { %v954_v41 = vunpack.c.l.b16 %v843_v36  ;;  %v955_v42 = vunpack.c.h.b16 %v843_v36  ;;  %v1131_v43 = vunpack.c.l.b16 %v910_v37  ;;  %v1132_v44 = vunpack.c.h.b16 %v910_v37  ;;  %1961 = vmatmul.bf16.gmra.mxu1 %v4293_v35  ;;  %v4306_v46 = vld [vmem:[#allocation2 + $0x6c] sm:$0xf0] }
  0xf5   : > { %v817_v24 = vrot.slane %v815_v38, 7  ;;  %v886_v48 = vrot.slane %v818_v39, 1  ;;  %v574_v49 = vmax.f32 %v508_v34, 0.0  ;;  %v4309_v50 = vor.u32 %v5295_v45, %v4306_v46  ;;  %v4436_v51 = vld [vmem:[#allocation2 + $0x168] sm:$0xf] }
  0xf6   : > { %v986_v52 = vpack.c.b16 %v954_v41, %v954_v41  ;;  %v987_v53 = vpack.c.b16 %v955_v42, %v955_v42  ;;  %v1163_v54 = vpack.c.b16 %v1131_v43, %v1131_v43  ;;  %v1164_v55 = vpack.c.b16 %v1132_v44, %v1132_v44  ;;  %v5329_v56 = vld [vmem:[#allocation2 + $0x170] sm:$0xf0] }
  0xf7   : > { %v820_v57 = vor.u32 %v818_v39, %v817_v24  ;;  %v887_v58 = vor.u32 %v886_v48, %v815_v38  ;;  %v606_v59 = vpack.c.bf16 %v574_v49, %v574_v49  ;;  %v4437_v60 = vor.u32 %v5329_v56, %v4436_v51  ;;  %v5245_v24 = vld [vmem:[#allocation2 + $0x38] sm:$0xf0]  ;;  %v5394_v56 = vld [vmem:[%s6822_s3 + $0x60] sm:$0xff] }
  0xf8   : > { %1051 = vst [vmem:[#allocation2 + $0x60] sm:$0xf] %v986_v52  ;;  %v510_v27 = vpop.f32.mrf.mxu0  ;;  %2055 = vmatmul.bf16.gmra.mxu2 %v4309_v50  ;;  %2702 = vmatpush.bf16.msrb.mxu1 %v5394_v56 }
  0xf9   : > { %1052 = vst [vmem:[#allocation2 + $0x6c] sm:$0xf] %v987_v53  ;;  %v855_v63 = vsel %vm5869_vm4, 0, %v820_v57  ;;  %v922_v0 = vsel %vm5877_vm5, %v887_v58, 0  ;;  %v670_v26 = vunpack.c.l.b16 %v606_v59  ;;  %v511_v1 = vadd.f32 %v5839_v33, %v510_v27 }
  0xfa   : > { %1227 = vst [vmem:[#allocation2 + $0x68] sm:$0xf] %v1163_v54  ;;  %v978_v3 = vunpack.c.l.b16 %v855_v63  ;;  %v979_v5 = vunpack.c.h.b16 %v855_v63  ;;  %v1155_v6 = vunpack.c.l.b16 %v922_v0  ;;  %v1156_v7 = vunpack.c.h.b16 %v922_v0  ;;  %2021 = vmatmul.bf16.gmra.mxu3 %v4437_v60  ;;  %v5298_v40 = vld [vmem:[#allocation2 + $0x7c] sm:$0xf] }
  0xfb   : > { %1228 = vst [vmem:[#allocation2 + $0x74] sm:$0xf] %v1164_v55  ;;  %v697_v9 = vpack.c.b16 %v670_v26, %v669_v61  ;;  %v575_v10 = vmax.f32 %v511_v1, 0.0  ;;  %2623 = vmatmul.bf16.gmra.mxu0 %v4569_v62  ;;  %v4581_v55 = vor.u32 %v5245_v24, %v4580_v47 }
  0xfc   : > { %v1010_v11 = vpack.c.b16 %v978_v3, %v978_v3  ;;  %v1011_v12 = vpack.c.b16 %v979_v5, %v979_v5  ;;  %v1187_v13 = vpack.c.b16 %v1155_v6, %v1155_v6  ;;  %1086 = vst [vmem:[#allocation2 + $0x88] sm:$0xf] %v606_v59  ;;  %v1188_v14 = vpack.c.b16 %v1156_v7, %v1156_v7 }
  0xfd   : > { %v738_v15 = vshrl.u32 %v697_v9, 16  ;;  %v741_v29 = vshll.u32 %v697_v9, 16  ;;  %v607_v16 = vpack.c.bf16 %v575_v10, %v575_v10 }
  0xfe   : > { %1075 = vst [vmem:[#allocation2 + $0x180] sm:$0xf] %v1010_v11 }
  0xff   : > { %1076 = vst [vmem:[#allocation2 + $0x18c] sm:$0xf] %v1011_v12  ;;  %v740_v17 = vrot.slane %v738_v15, 7  ;;  %v864_v18 = vrot.slane %v741_v29, 1  ;;  %v4304_v19 = vld [vmem:[#allocation2 + $0x60] sm:$0xf]  ;;  %v671_v49 = vunpack.c.l.b16 %v607_v16 }
 0x100   : > { %1251 = vst [vmem:[#allocation2 + $0x188] sm:$0xf] %v1187_v13  ;;  %v512_v20 = vpop.f32.mrf.mxu0  ;;  %v5296_v21 = vld [vmem:[#allocation2 + $0x68] sm:$0xf0] }
 0x101   : > { %1252 = vst [vmem:[#allocation2 + $0x194] sm:$0xf] %v1188_v14  ;;  %v743_v23 = vor.u32 %v741_v29, %v740_v17  ;;  %v865_v25 = vor.u32 %v864_v18, %v738_v15  ;;  %v513_v31 = vadd.f32 %v5839_v33, %v512_v20  ;;  %v4305_v28 = vor.u32 %v5296_v21, %v4304_v19  ;;  %v5322_v19 = vld [vmem:[#allocation2 + $0x13c] sm:$0xf]  ;;  %v4414_v20 = vld [vmem:[#allocation2 + $0x144] sm:$0xf0] }
 0x102   : > { %1087 = vst [vmem:[#allocation2 + $0x94] sm:$0xf] %v607_v16 }
 0x103   : > { %v844_v30 = vsel %vm5869_vm4, 0, %v743_v23  ;;  %v911_v32 = vsel %vm5877_vm5, %v865_v25, 0  ;;  %v576_v22 = vmax.f32 %v513_v31, 0.0  ;;  %v4318_v34 = vld [vmem:[#allocation2 + $0x84] sm:$0xf0] }
 0x104   : > { %v956_v35 = vunpack.c.l.b16 %v844_v30  ;;  %v957_v36 = vunpack.c.h.b16 %v844_v30  ;;  %v1133_v37 = vunpack.c.l.b16 %v911_v32  ;;  %v1134_v38 = vunpack.c.h.b16 %v911_v32  ;;  %1966 = vmatmul.bf16.gmra.mxu1 %v4305_v28  ;;  %v4592_v23 = vld [vmem:[#allocation2 + $0x48] sm:$0xf]  ;;  %v5248_v25 = vld [vmem:[#allocation2 + $0x50] sm:$0xf0] }
 0x105   : > { %v608_v39 = vpack.c.bf16 %v576_v22, %v576_v22  ;;  %v4448_v41 = vld [vmem:[#allocation2 + $0x180] sm:$0xf]  ;;  %v4321_v45 = vor.u32 %v5298_v40, %v4318_v34  ;;  %v4417_v30 = vor.u32 %v5322_v19, %v4414_v20 }
 0x106   : > { %v988_v42 = vpack.c.b16 %v956_v35, %v956_v35  ;;  %v989_v43 = vpack.c.b16 %v957_v36, %v957_v36  ;;  %v1165_v44 = vpack.c.b16 %v1133_v37, %v1133_v37  ;;  %v5332_v46 = vld [vmem:[#allocation2 + $0x188] sm:$0xf0]  ;;  %v1166_v48 = vpack.c.b16 %v1134_v38, %v1134_v38 }
 0x107   : > { %v672_v50 = vunpack.c.l.b16 %v608_v39  ;;  %1088 = vst [vmem:[#allocation2 + $0xa0] sm:$0xf] %v608_v39  ;;  %v4449_v51 = vor.u32 %v5332_v46, %v4448_v41  ;;  %v4593_v35 = vor.u32 %v5248_v25, %v4592_v23  ;;  %v5425_v23 = vld [vmem:[%s6822_s3 + $0x158] sm:$0xff] }
 0x108   : > { %1053 = vst [vmem:[#allocation2 + $0x78] sm:$0xf] %v988_v42  ;;  %v515_v52 = vpop.f32.mrf.mxu0  ;;  %2060 = vmatmul.bf16.gmra.mxu2 %v4321_v45 }
 0x109   : > { %1054 = vst [vmem:[#allocation2 + $0x84] sm:$0xf] %v989_v43  ;;  %v698_v53 = vpack.c.b16 %v672_v50, %v671_v49  ;;  %v516_v54 = vadd.f32 %v5839_v33, %v515_v52  ;;  %v5301_v18 = vld [vmem:[#allocation2 + $0x94] sm:$0xf] }
 0x10a   : > { %1229 = vst [vmem:[#allocation2 + $0x80] sm:$0xf] %v1165_v44  ;;  %2026 = vmatmul.bf16.gmra.mxu3 %v4449_v51  ;;  %v5429_v44 = vld [vmem:[%s6822_s3 + $0x178] sm:$0xff] }
 0x10b   : > { %1230 = vst [vmem:[#allocation2 + $0x8c] sm:$0xf] %v1166_v48  ;;  %v745_v57 = vshrl.u32 %v698_v53, 16  ;;  %v748_v58 = vshll.u32 %v698_v53, 16  ;;  %v577_v59 = vmax.f32 %v516_v54, 0.0  ;;  %2628 = vmatmul.bf16.gmra.mxu0 %v4581_v55  ;;  %2121 = vmatpush.bf16.msrb.mxu3 %v5429_v44  ;;  %v5428_v55 = vld [vmem:[%s6822_s3 + $0x170] sm:$0xff] }
 0x10d   : > { %v747_v60 = vrot.slane %v745_v57, 7  ;;  %v866_v61 = vrot.slane %v748_v58, 1  ;;  %v609_v27 = vpack.c.bf16 %v577_v59, %v577_v59 }
 0x10e   : > { %v4330_v13 = vld [vmem:[#allocation2 + $0x9c] sm:$0xf0] }
 0x10f   : > { %v750_v62 = vor.u32 %v748_v58, %v747_v60  ;;  %v867_v63 = vor.u32 %v866_v61, %v745_v57  ;;  %1089 = vst [vmem:[#allocation2 + $0xac] sm:$0xf] %v609_v27  ;;  %v4316_v0 = vld [vmem:[#allocation2 + $0x78] sm:$0xf]  ;;  %v4333_v21 = vor.u32 %v5301_v18, %v4330_v13  ;;  %v673_v31 = vunpack.c.l.b16 %v609_v27  ;;  %v5325_v61 = vld [vmem:[#allocation2 + $0x154] sm:$0xf]  ;;  %2122 = vmatpush.bf16.msrb.mxu3 %v5428_v55 }
 0x110   : > { %v517_v26 = vpop.f32.mrf.mxu0  ;;  %v5299_v1 = vld [vmem:[#allocation2 + $0x80] sm:$0xf0]  ;;  %v5393_v13 = vld [vmem:[%s6822_s3 + $0x58] sm:$0xff] }
 0x111   : > { %v845_v2 = vsel %vm5869_vm4, 0, %v750_v62  ;;  %v912_v3 = vsel %vm5877_vm5, %v867_v63, 0  ;;  %v518_v5 = vadd.f32 %v5839_v33, %v517_v26  ;;  %v4317_v6 = vor.u32 %v5299_v1, %v4316_v0  ;;  %v4426_v0 = vld [vmem:[#allocation2 + $0x15c] sm:$0xf0]  ;;  %v5251_v1 = vld [vmem:[#allocation2 + $0x68] sm:$0xf0]  ;;  %2703 = vmatpush.bf16.msrb.mxu1 %v5393_v13 }
 0x112   : > { %v958_v7 = vunpack.c.l.b16 %v845_v2  ;;  %v959_v9 = vunpack.c.h.b16 %v845_v2  ;;  %v1135_v10 = vunpack.c.l.b16 %v912_v3  ;;  %v1136_v11 = vunpack.c.h.b16 %v912_v3  ;;  %v5427_v2 = vld [vmem:[%s6822_s3 + $0x168] sm:$0xff] }
 0x113   : > { %v578_v12 = vmax.f32 %v518_v5, 0.0  ;;  %2123 = vmatpush.bf16.msrb.mxu3 %v5427_v2 }
 0x114   : > { %v990_v14 = vpack.c.b16 %v958_v7, %v958_v7  ;;  %v991_v15 = vpack.c.b16 %v959_v9, %v959_v9  ;;  %v1167_v29 = vpack.c.b16 %v1135_v10, %v1135_v10  ;;  %1971 = vmatmul.bf16.gmra.mxu1 %v4317_v6  ;;  %v1168_v16 = vpack.c.b16 %v1136_v11, %v1136_v11  ;;  %v6016_v10 = vld [vmem:[%s6821_s2] ss:$0 sm:$0xff] }
 0x115   : > { %v610_v17 = vpack.c.bf16 %v578_v12, %v578_v12  ;;  %v4429_v6 = vor.u32 %v5325_v61, %v4426_v0  ;;  %v5422_v61 = vld [vmem:[%s6822_s3 + $0x140] sm:$0xff] }
 0x116   : > { %1055 = vst [vmem:[#allocation2 + $0x90] sm:$0xf] %v990_v14  ;;  %v5304_v63 = vld [vmem:[#allocation2 + $0xac] sm:$0xf]  ;;  %v5426_v14 = vld [vmem:[%s6822_s3 + $0x160] sm:$0xff] }
 0x117   : > { %1056 = vst [vmem:[#allocation2 + $0x9c] sm:$0xf] %v991_v15  ;;  %v674_v28 = vunpack.c.l.b16 %v610_v17  ;;  %2124 = vmatpush.bf16.msrb.mxu3 %v5426_v14 }
 0x118   : > { %1231 = vst [vmem:[#allocation2 + $0x98] sm:$0xf] %v1167_v29  ;;  %v520_v32 = vpop.f32.mrf.mxu0  ;;  %2065 = vmatmul.bf16.gmra.mxu2 %v4333_v21 }
 0x119   : > { %1232 = vst [vmem:[#allocation2 + $0xa4] sm:$0xf] %v1168_v16  ;;  %v699_v22 = vpack.c.b16 %v674_v28, %v673_v31  ;;  %v521_v34 = vadd.f32 %v5839_v33, %v520_v32 }
 0x11a   : > { %1090 = vst [vmem:[#allocation2 + $0xb8] sm:$0xf] %v610_v17  ;;  %2100 = vmatmul.bf16.vlgmr.msra.gmra.mxu3 %v4417_v30 }
 0x11b   : > { %v752_v36 = vshrl.u32 %v699_v22, 16  ;;  %v755_v37 = vshll.u32 %v699_v22, 16  ;;  %v579_v38 = vmax.f32 %v521_v34, 0.0  ;;  %2633 = vmatmul.bf16.gmra.mxu0 %v4593_v35  ;;  %2125 = vmatpush.bf16.msrb.mxu3 %v5425_v23 }
 0x11d   : > { %v754_v39 = vrot.slane %v752_v36, 7  ;;  %v868_v40 = vrot.slane %v755_v37, 1  ;;  %v611_v41 = vpack.c.bf16 %v579_v38, %v579_v38  ;;  %v4328_v42 = vld [vmem:[#allocation2 + $0x90] sm:$0xf] }
 0x11e   : > { %v5302_v43 = vld [vmem:[#allocation2 + $0x98] sm:$0xf0] }
 0x11f   : > { %v757_v45 = vor.u32 %v755_v37, %v754_v39  ;;  %v869_v46 = vor.u32 %v868_v40, %v752_v36  ;;  %1091 = vst [vmem:[#allocation2 + $0xc4] sm:$0xf] %v611_v41  ;;  %v4329_v24 = vor.u32 %v5302_v43, %v4328_v42  ;;  %v675_v3 = vunpack.c.l.b16 %v611_v41  ;;  %v5424_v39 = vld [vmem:[%s6822_s3 + $0x150] sm:$0xff] }
 0x120   : > { %v522_v47 = vpop.f32.mrf.mxu0  ;;  %2126 = vmatpush.bf16.msrb.mxu3 %v5424_v39 }
 0x121   : > { %v846_v48 = vsel %vm5869_vm4, 0, %v757_v45  ;;  %v913_v49 = vsel %vm5877_vm5, %v869_v46, 0  ;;  %v523_v50 = vadd.f32 %v5839_v33, %v522_v47  ;;  %v4342_v57 = vld [vmem:[#allocation2 + $0xb4] sm:$0xf0]  ;;  %v4604_v33 = vld [vmem:[#allocation2 + $0x60] sm:$0xf] }
 0x122   : > { %v960_v51 = vunpack.c.l.b16 %v846_v48  ;;  %v961_v52 = vunpack.c.h.b16 %v846_v48  ;;  %v1137_v53 = vunpack.c.l.b16 %v913_v49  ;;  %v1138_v54 = vunpack.c.h.b16 %v913_v49  ;;  %v5328_v45 = vld [vmem:[#allocation2 + $0x16c] sm:$0xf]  ;;  %v4438_v48 = vld [vmem:[#allocation2 + $0x174] sm:$0xf0] }
 0x123   : > { %v580_v56 = vmax.f32 %v523_v50, 0.0  ;;  %v4345_v26 = vor.u32 %v5304_v63, %v4342_v57  ;;  %v4605_v12 = vor.u32 %v5251_v1, %v4604_v33  ;;  %v4616_v49 = vld [vmem:[#allocation2 + $0x78] sm:$0xf]  ;;  %v4441_v55 = vor.u32 %v5328_v45, %v4438_v48 }
 0x124   : > { %v992_v58 = vpack.c.b16 %v960_v51, %v960_v51  ;;  %v993_v59 = vpack.c.b16 %v961_v52, %v961_v52  ;;  %v1169_v60 = vpack.c.b16 %v1137_v53, %v1137_v53  ;;  %1976 = vmatmul.bf16.gmra.mxu1 %v4329_v24  ;;  %v1170_v27 = vpack.c.b16 %v1138_v54, %v1138_v54  ;;  %v5254_v51 = vld [vmem:[#allocation2 + $0x80] sm:$0xf0]  ;;  %v5423_v52 = vld [vmem:[%s6822_s3 + $0x148] sm:$0xff] }
 0x125   : > { %v612_v62 = vpack.c.bf16 %v580_v56, %v580_v56  ;;  %2127 = vmatpush.bf16.msrb.mxu3 %v5423_v52 }
 0x126   : > { %1057 = vst [vmem:[#allocation2 + $0xa8] sm:$0xf] %v992_v58  ;;  %v5307_v24 = vld [vmem:[#allocation2 + $0xc4] sm:$0xf] }
 0x127   : > { %1058 = vst [vmem:[#allocation2 + $0xb4] sm:$0xf] %v993_v59  ;;  %v676_v5 = vunpack.c.l.b16 %v612_v62  ;;  %v4617_v59 = vor.u32 %v5254_v51, %v4616_v49 }
 0x128   : > { %1233 = vst [vmem:[#allocation2 + $0xb0] sm:$0xf] %v1169_v60  ;;  %v525_v7 = vpop.f32.mrf.mxu0  ;;  %2070 = vmatmul.bf16.gmra.mxu2 %v4345_v26  ;;  %v5392_v60 = vld [vmem:[%s6822_s3 + $0x50] sm:$0xff] }
 0x129   : > { %1234 = vst [vmem:[#allocation2 + $0xbc] sm:$0xf] %v1170_v27  ;;  %v700_v9 = vpack.c.b16 %v676_v5, %v675_v3  ;;  %v526_v11 = vadd.f32 %v6016_v10, %v525_v7  ;;  %2704 = vmatpush.bf16.msrb.mxu1 %v5392_v60  ;;  %2128 = vmatpush.bf16.msrb.mxu3 %v5422_v61 }
 0x12a   : > { %1092 = vst [vmem:[#allocation2 + $0xd0] sm:$0xf] %v612_v62  ;;  %2105 = vmatmul.bf16.gmra.mxu3 %v4429_v6 }
 0x12b   : > { %v759_v15 = vshrl.u32 %v700_v9, 16  ;;  %v762_v29 = vshll.u32 %v700_v9, 16  ;;  %v581_v16 = vmax.f32 %v526_v11, 0.0  ;;  %2638 = vmatmul.bf16.gmra.mxu0 %v4605_v12 }
 0x12d   : > { %v761_v17 = vrot.slane %v759_v15, 7  ;;  %v870_v18 = vrot.slane %v762_v29, 1  ;;  %v613_v19 = vpack.c.bf16 %v581_v16, %v581_v16  ;;  %v4340_v20 = vld [vmem:[#allocation2 + $0xa8] sm:$0xf] }
 0x12e   : > { %v5305_v21 = vld [vmem:[#allocation2 + $0xb0] sm:$0xf0] }
 0x12f   : > { %v764_v25 = vor.u32 %v762_v29, %v761_v17  ;;  %v871_v31 = vor.u32 %v870_v18, %v759_v15  ;;  %1093 = vst [vmem:[#allocation2 + $0xdc] sm:$0xf] %v613_v19  ;;  %v4341_v30 = vor.u32 %v5305_v21, %v4340_v20  ;;  %v677_v53 = vunpack.c.l.b16 %v613_v19 }
 0x130   : > { %v527_v28 = vpop.f32.mrf.mxu0 }
 0x131   : > { %v847_v32 = vsel %vm5869_vm4, 0, %v764_v25  ;;  %v914_v22 = vsel %vm5877_vm5, %v871_v31, 0  ;;  %v528_v34 = vadd.f32 %v6016_v10, %v527_v28  ;;  %v4354_v41 = vld [vmem:[#allocation2 + $0xcc] sm:$0xf0]  ;;  %v5331_v31 = vld [vmem:[#allocation2 + $0x184] sm:$0xf] }
 0x132   : > { %v962_v35 = vunpack.c.l.b16 %v847_v32  ;;  %v963_v36 = vunpack.c.h.b16 %v847_v32  ;;  %v1139_v37 = vunpack.c.l.b16 %v914_v22  ;;  %v1140_v38 = vunpack.c.h.b16 %v914_v22  ;;  %v4450_v28 = vld [vmem:[#allocation2 + $0x18c] sm:$0xf0]  ;;  %v5257_v22 = vld [vmem:[#allocation2 + $0x98] sm:$0xf0] }
 0x133   : > { %v582_v40 = vmax.f32 %v528_v34, 0.0  ;;  %v4357_v50 = vor.u32 %v5307_v24, %v4354_v41  ;;  %v4628_v32 = vld [vmem:[#allocation2 + $0x90] sm:$0xf] }
 0x134   : > { %v994_v42 = vpack.c.b16 %v962_v35, %v962_v35  ;;  %v995_v43 = vpack.c.b16 %v963_v36, %v963_v36  ;;  %v1171_v44 = vpack.c.b16 %v1139_v37, %v1139_v37  ;;  %1981 = vmatmul.bf16.gmra.mxu1 %v4341_v30  ;;  %v1172_v46 = vpack.c.b16 %v1140_v38, %v1140_v38 }
 0x135   : > { %v614_v47 = vpack.c.bf16 %v582_v40, %v582_v40  ;;  %v4453_v36 = vor.u32 %v5331_v31, %v4450_v28  ;;  %v4629_v41 = vor.u32 %v5257_v22, %v4628_v32  ;;  %v5402_v31 = vld [vmem:[%s6822_s3 + $0xa0] sm:$0xff]  ;;  %v5401_v22 = vld [vmem:[%s6822_s3 + $0x98] sm:$0xff] }
 0x136   : > { %1059 = vst [vmem:[#allocation2 + $0xc0] sm:$0xf] %v994_v42  ;;  %v5310_v25 = vld [vmem:[#allocation2 + $0xdc] sm:$0xf] }
 0x137   : > { %1060 = vst [vmem:[#allocation2 + $0xcc] sm:$0xf] %v995_v43  ;;  %v678_v54 = vunpack.c.l.b16 %v614_v47  ;;  %v5405_v42 = vld [vmem:[%s6822_s3 + $0xb8] sm:$0xff] }
 0x138   : > { %1235 = vst [vmem:[#allocation2 + $0xc8] sm:$0xf] %v1171_v44  ;;  %v530_v56 = vpop.f32.mrf.mxu0  ;;  %2075 = vmatmul.bf16.gmra.mxu2 %v4357_v50 }
 0x139   : > { %1236 = vst [vmem:[#allocation2 + $0xd4] sm:$0xf] %v1172_v46  ;;  %v701_v57 = vpack.c.b16 %v678_v54, %v677_v53  ;;  %v531_v58 = vadd.f32 %v6016_v10, %v530_v56  ;;  %2788 = vmatpush.bf16.msrb.mxu2 %v5405_v42 }
 0x13a   : > { %1094 = vst [vmem:[#allocation2 + $0xe8] sm:$0xf] %v614_v47  ;;  %2110 = vmatmul.bf16.gmra.mxu3 %v4441_v55 }
 0x13b   : > { %v766_v27 = vshrl.u32 %v701_v57, 16  ;;  %v769_v62 = vshll.u32 %v701_v57, 16  ;;  %v583_v63 = vmax.f32 %v531_v58, 0.0  ;;  %2643 = vmatmul.bf16.gmra.mxu0 %v4617_v59  ;;  %v5404_v59 = vld [vmem:[%s6822_s3 + $0xb0] sm:$0xff] }
 0x13d   : > { %v768_v0 = vrot.slane %v766_v27, 7  ;;  %v872_v33 = vrot.slane %v769_v62, 1  ;;  %v615_v26 = vpack.c.bf16 %v583_v63, %v583_v63  ;;  %v4352_v1 = vld [vmem:[#allocation2 + $0xc0] sm:$0xf]  ;;  %2789 = vmatpush.bf16.msrb.mxu2 %v5404_v59 }
 0x13e   : > { %v5308_v2 = vld [vmem:[#allocation2 + $0xc8] sm:$0xf0] }
 0x13f   : > { %v771_v3 = vor.u32 %v769_v62, %v768_v0  ;;  %v873_v5 = vor.u32 %v872_v33, %v766_v27  ;;  %1095 = vst [vmem:[#allocation2 + $0xf4] sm:$0xf] %v615_v26  ;;  %v4353_v7 = vor.u32 %v5308_v2, %v4352_v1  ;;  %v679_v34 = vunpack.c.l.b16 %v615_v26 }
 0x140   : > { %v532_v6 = vpop.f32.mrf.mxu0 }
 0x141   : > { %v848_v9 = vsel %vm5869_vm4, 0, %v771_v3  ;;  %v915_v11 = vsel %vm5877_vm5, %v873_v5, 0  ;;  %v533_v12 = vadd.f32 %v6016_v10, %v532_v6  ;;  %v4366_v17 = vld [vmem:[#allocation2 + $0xe4] sm:$0xf0]  ;;  %v4276_v3 = vld [vmem:[#allocation2 + $0x20] sm:$0xf] }
 0x142   : > { %v964_v13 = vunpack.c.l.b16 %v848_v9  ;;  %v965_v14 = vunpack.c.h.b16 %v848_v9  ;;  %v1141_v15 = vunpack.c.l.b16 %v915_v11  ;;  %v1142_v29 = vunpack.c.h.b16 %v915_v11  ;;  %v5288_v9 = vld [vmem:[#allocation2 + $0x28] sm:$0xf0] }
 0x143   : > { %v584_v16 = vmax.f32 %v533_v12, 0.0  ;;  %v4369_v30 = vor.u32 %v5310_v25, %v4366_v17  ;;  %v5403_v11 = vld [vmem:[%s6822_s3 + $0xa8] sm:$0xff] }
 0x144   : > { %v996_v18 = vpack.c.b16 %v964_v13, %v964_v13  ;;  %v997_v19 = vpack.c.b16 %v965_v14, %v965_v14  ;;  %v1173_v20 = vpack.c.b16 %v1141_v15, %v1141_v15  ;;  %1986 = vmatmul.bf16.gmra.mxu1 %v4353_v7  ;;  %v1174_v21 = vpack.c.b16 %v1142_v29, %v1142_v29  ;;  %v4640_v13 = vld [vmem:[#allocation2 + $0xa8] sm:$0xf]  ;;  %v5260_v14 = vld [vmem:[#allocation2 + $0xb0] sm:$0xf0] }
 0x145   : > { %v616_v23 = vpack.c.bf16 %v584_v16, %v584_v16  ;;  %v2041_v39 = vpop.f32.mrf.mxu2  ;;  %2790 = vmatpush.bf16.msrb.mxu2 %v5403_v11  ;;  %v5391_v25 = vld [vmem:[%s6822_s3 + $0x48] sm:$0xff] }
 0x146   : > { %1061 = vst [vmem:[#allocation2 + $0xd8] sm:$0xf] %v996_v18  ;;  %v5313_v7 = vld [vmem:[#allocation2 + $0xf4] sm:$0xf]  ;;  %v4277_v18 = vor.u32 %v5288_v9, %v4276_v3  ;;  %2705 = vmatpush.bf16.msrb.mxu1 %v5391_v25  ;;  %v5263_v3 = vld [vmem:[#allocation2 + $0xc8] sm:$0xf0] }
 0x147   : > { %1062 = vst [vmem:[#allocation2 + $0xe4] sm:$0xf] %v997_v19  ;;  %v680_v35 = vunpack.c.l.b16 %v616_v23  ;;  %v5437_v25 = vld [vmem:[%s6822_s3 + $0x1b8] sm:$0xff] }
 0x148   : > { %1237 = vst [vmem:[#allocation2 + $0xe0] sm:$0xf] %v1173_v20  ;;  %v535_v37 = vpop.f32.mrf.mxu0  ;;  %2080 = vmatmul.bf16.gmra.mxu2 %v4369_v30  ;;  %3326 = vmatpush.bf16.msra.mxu3 %v5437_v25 }
 0x149   : > { %1238 = vst [vmem:[#allocation2 + $0xec] sm:$0xf] %v1174_v21  ;;  %v702_v38 = vpack.c.b16 %v680_v35, %v679_v34  ;;  %v536_v40 = vadd.f32 %v6016_v10, %v535_v37  ;;  %2791 = vmatpush.bf16.msrb.mxu2 %v5402_v31 }
 0x14a   : > { %1096 = vst [vmem:[#allocation2 + $0x100] sm:$0xf] %v616_v23  ;;  %2115 = vmatmul.bf16.gmra.mxu3 %v4453_v36  ;;  %v4641_v23 = vor.u32 %v5260_v14, %v4640_v13  ;;  %v5398_v14 = vld [vmem:[%s6822_s3 + $0x80] sm:$0xff] }
 0x14b   : > { %v773_v43 = vshrl.u32 %v702_v38, 16  ;;  %v776_v44 = vshll.u32 %v702_v38, 16  ;;  %v585_v45 = vmax.f32 %v536_v40, 0.0  ;;  %2648 = vmatmul.bf16.gmra.mxu0 %v4629_v41  ;;  %v5390_v40 = vld [vmem:[%s6822_s3 + $0x40] sm:$0xff] }
 0x14c   : > { %2706 = vmatpush.bf16.msrb.mxu1 %v5390_v40 }
 0x14d   : > { %v775_v46 = vrot.slane %v773_v43, 7  ;;  %v874_v47 = vrot.slane %v776_v44, 1  ;;  %v617_v24 = vpack.c.bf16 %v585_v45, %v585_v45  ;;  %v4364_v48 = vld [vmem:[#allocation2 + $0xd8] sm:$0xf]  ;;  %v2043_v63 = vpop.f32.mrf.mxu2  ;;  %2792 = vmatpush.bf16.msrb.mxu2 %v5401_v22 }
 0x14e   : > { %v5311_v49 = vld [vmem:[#allocation2 + $0xe0] sm:$0xf0]  ;;  %v1952_v52 = vpop.f32.mrf.mxu1 }
 0x14f   : > { %v778_v50 = vor.u32 %v776_v44, %v775_v46  ;;  %v875_v51 = vor.u32 %v874_v47, %v773_v43  ;;  %1097 = vst [vmem:[#allocation2 + $0x10c] sm:$0xf] %v617_v24  ;;  %v6055_v53 = vadd.f32 %v2041_v39, %v1952_v52  ;;  %v4365_v55 = vor.u32 %v5311_v49, %v4364_v48  ;;  %v5400_v49 = vld [vmem:[%s6822_s3 + $0x90] sm:$0xff] }
 0x150   : > { %v537_v54 = vpop.f32.mrf.mxu0  ;;  %v681_v15 = vunpack.c.l.b16 %v617_v24 }
 0x151   : > { %v849_v56 = vsel %vm5869_vm4, 0, %v778_v50  ;;  %v916_v57 = vsel %vm5877_vm5, %v875_v51, 0  ;;  %v538_v58 = vadd.f32 %v6016_v10, %v537_v54  ;;  %v4378_v33 = vld [vmem:[#allocation2 + $0xfc] sm:$0xf0]  ;;  %2793 = vmatpush.bf16.msrb.mxu2 %v5400_v49 }
 0x152   : > { %v966_v60 = vunpack.c.l.b16 %v849_v56  ;;  %v967_v61 = vunpack.c.h.b16 %v849_v56  ;;  %v1143_v27 = vunpack.c.l.b16 %v916_v57  ;;  %v1144_v62 = vunpack.c.h.b16 %v916_v57 }
 0x153   : > { %v586_v0 = vmax.f32 %v538_v58, 0.0  ;;  %v4381_v12 = vor.u32 %v5313_v7, %v4378_v33  ;;  %v5291_v33 = vld [vmem:[#allocation2 + $0x40] sm:$0xf0] }
 0x154   : > { %v998_v26 = vpack.c.b16 %v966_v60, %v966_v60  ;;  %v999_v1 = vpack.c.b16 %v967_v61, %v967_v61  ;;  %v1175_v2 = vpack.c.b16 %v1143_v27, %v1143_v27  ;;  %1991 = vmatmul.bf16.gmra.mxu1 %v4365_v55  ;;  %v1176_v5 = vpack.c.b16 %v1144_v62, %v1144_v62  ;;  %v4288_v61 = vld [vmem:[#allocation2 + $0x38] sm:$0xf] }
 0x155   : > { %v618_v6 = vpack.c.bf16 %v586_v0, %v586_v0  ;;  %v4289_v7 = vor.u32 %v5291_v33, %v4288_v61 }
 0x156   : > { %1063 = vst [vmem:[#allocation2 + $0xf0] sm:$0xf] %v998_v26  ;;  %v1954_v16 = vpop.f32.mrf.mxu1  ;;  %v5316_v0 = vld [vmem:[#allocation2 + $0x10c] sm:$0xf] }
 0x157   : > { %1064 = vst [vmem:[#allocation2 + $0xfc] sm:$0xf] %v999_v1  ;;  %v682_v29 = vunpack.c.l.b16 %v618_v6  ;;  %v6068_v17 = vadd.f32 %v2043_v63, %v1954_v16  ;;  %v5399_v26 = vld [vmem:[%s6822_s3 + $0x88] sm:$0xff] }
 0x158   : > { %1239 = vst [vmem:[#allocation2 + $0xf8] sm:$0xf] %v1175_v2  ;;  %v540_v19 = vpop.f32.mrf.mxu0  ;;  %2085 = vmatmul.bf16.gmra.mxu2 %v4381_v12  ;;  %v4652_v2 = vld [vmem:[#allocation2 + $0xc0] sm:$0xf] }
 0x159   : > { %1240 = vst [vmem:[#allocation2 + $0x104] sm:$0xf] %v1176_v5  ;;  %v703_v20 = vpack.c.b16 %v682_v29, %v681_v15  ;;  %v541_v21 = vadd.f32 %v6016_v10, %v540_v19  ;;  %v4653_v13 = vor.u32 %v5263_v3, %v4652_v2  ;;  %2794 = vmatpush.bf16.msrb.mxu2 %v5399_v26  ;;  %v4564_v3 = vld [vmem:[#allocation2 + $0x8] sm:$0xf] }
 0x15a   : > { %1098 = vst [vmem:[#allocation2 + $0x118] sm:$0xf] %v618_v6  ;;  %2129 = vmatmul.bf16.vlgmr.msrb.gmra.mxu3 %v4277_v18  ;;  %v2046_v36 = vpop.f32.mrf.mxu2 }
 0x15b   : > { %v780_v28 = vshrl.u32 %v703_v20, 16  ;;  %v783_v30 = vshll.u32 %v703_v20, 16  ;;  %v587_v32 = vmax.f32 %v541_v21, 0.0  ;;  %2653 = vmatmul.bf16.gmra.mxu0 %v4641_v23 }
 0x15c   : > { %v6080_v38 = vpop.f32.mrf.mxu3 }
 0x15d   : > { %v782_v34 = vrot.slane %v780_v28, 7  ;;  %v876_v35 = vrot.slane %v783_v30, 1  ;;  %v619_v37 = vpack.c.bf16 %v587_v32, %v587_v32  ;;  %v4376_v39 = vld [vmem:[#allocation2 + $0xf0] sm:$0xf]  ;;  %2795 = vmatpush.bf16.msrb.mxu2 %v5398_v14 }
 0x15e   : > { %v5314_v41 = vld [vmem:[#allocation2 + $0xf8] sm:$0xf0]  ;;  %v4676_v14 = vld [vmem:[#allocation2 + $0xf0] sm:$0xf] }
 0x15f   : > { %v785_v42 = vor.u32 %v783_v30, %v782_v34  ;;  %v877_v43 = vor.u32 %v876_v35, %v780_v28  ;;  %1099 = vst [vmem:[#allocation2 + $0x124] sm:$0xf] %v619_v37  ;;  %v4377_v45 = vor.u32 %v5314_v41, %v4376_v39  ;;  %v683_v5 = vunpack.c.l.b16 %v619_v37 }
 0x160   : > { %v542_v44 = vpop.f32.mrf.mxu0 }
 0x161   : > { %v850_v46 = vsel %vm5869_vm4, 0, %v785_v42  ;;  %v917_v47 = vsel %vm5877_vm5, %v877_v43, 0  ;;  %v1957_v24 = vpop.f32.mrf.mxu1  ;;  %v543_v48 = vadd.f32 %v6016_v10, %v542_v44  ;;  %v4390_v57 = vld [vmem:[#allocation2 + $0x114] sm:$0xf0] }
 0x162   : > { %v968_v50 = vunpack.c.l.b16 %v850_v46  ;;  %v969_v51 = vunpack.c.h.b16 %v850_v46  ;;  %v1145_v52 = vunpack.c.l.b16 %v917_v47  ;;  %v1146_v54 = vunpack.c.h.b16 %v917_v47  ;;  %v2048_v62 = vpop.f32.mrf.mxu2  ;;  %v4300_v47 = vld [vmem:[#allocation2 + $0x50] sm:$0xf] }
 0x163   : > { %v6093_v55 = vadd.f32 %v2046_v36, %v1957_v24  ;;  %v588_v56 = vmax.f32 %v543_v48, 0.0  ;;  %v4393_v1 = vor.u32 %v5316_v0, %v4390_v57  ;;  %v5294_v24 = vld [vmem:[#allocation2 + $0x58] sm:$0xf0] }
 0x164   : > { %v1000_v58 = vpack.c.b16 %v968_v50, %v968_v50  ;;  %v1001_v59 = vpack.c.b16 %v969_v51, %v969_v51  ;;  %v1177_v60 = vpack.c.b16 %v1145_v52, %v1145_v52  ;;  %1996 = vmatmul.bf16.gmra.mxu1 %v4377_v45  ;;  %v1178_v27 = vpack.c.b16 %v1146_v54, %v1146_v54  ;;  %v6095_v63 = vpop.f32.mrf.mxu3  ;;  %v4664_v50 = vld [vmem:[#allocation2 + $0xd8] sm:$0xf]  ;;  %v5266_v54 = vld [vmem:[#allocation2 + $0xe0] sm:$0xf0] }
 0x165   : > { %v620_v10 = vpack.c.bf16 %v588_v56, %v588_v56  ;;  %v5445_v51 = vld [vmem:[%s6822_s3 + $0x1f8] sm:$0xff]  ;;  %v4301_v57 = vor.u32 %v5294_v24, %v4300_v47  ;;  %v5452_v47 = vld [vmem:[%s6822_s3 + $0x230] sm:$0xff] }
 0x166   : > { %1065 = vst [vmem:[#allocation2 + $0x108] sm:$0xf] %v1000_v58  ;;  %v5319_v8 = vld [vmem:[#allocation2 + $0x124] sm:$0xf]  ;;  %v5453_v56 = vld [vmem:[%s6822_s3 + $0x238] sm:$0xff]  ;;  %3415 = vmatpush.bf16.msra.mxu0 %v5445_v51 }
 0x167   : > { %1066 = vst [vmem:[#allocation2 + $0x114] sm:$0xf] %v1001_v59  ;;  %v684_v6 = vunpack.c.l.b16 %v620_v10  ;;  %3504 = vmatpush.bf16.msra.mxu1 %v5453_v56 }
 0x168   : > { %1241 = vst [vmem:[#allocation2 + $0x110] sm:$0xf] %v1177_v60  ;;  %v6100_v9 = vpop.f32.mrf.mxu0  ;;  %2090 = vmatmul.bf16.gmra.mxu2 %v4393_v1  ;;  %v4665_v60 = vor.u32 %v5266_v54, %v4664_v50 }
 0x169   : > { %1242 = vst [vmem:[#allocation2 + $0x11c] sm:$0xf] %v1178_v27  ;;  %v704_v11 = vpack.c.b16 %v684_v6, %v683_v5  ;;  %v1959_v12 = vpop.f32.mrf.mxu1  ;;  %v5240_v5 = vld [vmem:[#allocation2 + $0x10] sm:$0xf0] }
 0x16a   : > { %1100 = vst [vmem:[#allocation2 + $0x130] sm:$0xf] %v620_v10  ;;  %v6105_v15 = vadd.f32 %v2048_v62, %v1959_v12  ;;  %2134 = vmatmul.bf16.gmra.mxu3 %v4289_v7  ;;  %v5297_v12 = vld [vmem:[#allocation2 + $0x70] sm:$0xf0] }
 0x16b   : > { %v787_v29 = vshrl.u32 %v704_v11, 16  ;;  %v790_v16 = vshll.u32 %v704_v11, 16  ;;  %2658 = vmatmul.bf16.gmra.mxu0 %v4653_v13  ;;  %v2051_v20 = vpop.f32.mrf.mxu2  ;;  %v4312_v11 = vld [vmem:[#allocation2 + $0x68] sm:$0xf]  ;;  %v4565_v13 = vor.u32 %v5240_v5, %v4564_v3  ;;  %3505 = vmatpush.bf16.msra.mxu1 %v5452_v47  ;;  %v4588_v3 = vld [vmem:[#allocation2 + $0x38] sm:$0xf] }
 0x16c   : > { %v4600_v47 = vld [vmem:[#allocation2 + $0x50] sm:$0xf] }
 0x16d   : > { %v789_v18 = vrot.slane %v787_v29, 7  ;;  %v878_v19 = vrot.slane %v790_v16, 1  ;;  %v6107_v21 = vpop.f32.mrf.mxu3  ;;  %v4388_v23 = vld [vmem:[#allocation2 + $0x108] sm:$0xf] }
 0x16e   : > { %v5317_v31 = vld [vmem:[#allocation2 + $0x110] sm:$0xf0]  ;;  %v4688_v24 = vld [vmem:[#allocation2 + $0x108] sm:$0xf] }
 0x16f   : > { %v792_v28 = vor.u32 %v790_v16, %v789_v18  ;;  %v879_v30 = vor.u32 %v878_v19, %v787_v29  ;;  %v4389_v32 = vor.u32 %v5317_v31, %v4388_v23  ;;  %v5269_v29 = vld [vmem:[#allocation2 + $0xf8] sm:$0xf0]  ;;  %v4313_v16 = vor.u32 %v5297_v12, %v4312_v11  ;;  %v5246_v11 = vld [vmem:[#allocation2 + $0x40] sm:$0xf0]  ;;  %v4336_v12 = vld [vmem:[#allocation2 + $0x98] sm:$0xf] }
 0x170   : > { %v6112_v22 = vpop.f32.mrf.mxu0 }
 0x171   : > { %v851_v34 = vsel %vm5869_vm4, 0, %v792_v28  ;;  %v918_v35 = vsel %vm5877_vm5, %v879_v30, 0  ;;  %v1962_v36 = vpop.f32.mrf.mxu1  ;;  %v4402_v43 = vld [vmem:[#allocation2 + $0x12c] sm:$0xf0]  ;;  %v5238_v28 = vld [vmem:[#allocation2 + $0x4] sm:$0xf] }
 0x172   : > { %v970_v37 = vunpack.c.l.b16 %v851_v34  ;;  %v971_v39 = vunpack.c.h.b16 %v851_v34  ;;  %v1147_v40 = vunpack.c.l.b16 %v918_v35  ;;  %v1148_v41 = vunpack.c.h.b16 %v918_v35  ;;  %v4558_v30 = vld [vmem:[#allocation2 + $0xc] sm:$0xf0] }
 0x173   : > { %v6118_v42 = vadd.f32 %v2051_v20, %v1962_v36  ;;  %v2053_v4 = vpop.f32.mrf.mxu2  ;;  %v4405_v52 = vor.u32 %v5319_v8, %v4402_v43  ;;  %v4677_v20 = vor.u32 %v5269_v29, %v4676_v14  ;;  %v4561_v35 = vor.u32 %v5238_v28, %v4558_v30 }
 0x174   : > { %v1002_v44 = vpack.c.b16 %v970_v37, %v970_v37  ;;  %v1003_v45 = vpack.c.b16 %v971_v39, %v971_v39  ;;  %v1179_v46 = vpack.c.b16 %v1147_v40, %v1147_v40  ;;  %2001 = vmatmul.bf16.gmra.mxu1 %v4389_v32  ;;  %v1180_v48 = vpack.c.b16 %v1148_v41, %v1148_v41  ;;  %v5436_v32 = vld [vmem:[%s6822_s3 + $0x1b0] sm:$0xff]  ;;  %v4576_v39 = vld [vmem:[#allocation2 + $0x20] sm:$0xf]  ;;  %v5243_v40 = vld [vmem:[#allocation2 + $0x28] sm:$0xf0] }
 0x175   : > { %v6120_v49 = vpop.f32.mrf.mxu3  ;;  %3327 = vmatpush.bf16.msra.mxu3 %v5436_v32  ;;  %v4324_v41 = vld [vmem:[#allocation2 + $0x80] sm:$0xf] }
 0x176   : > { %1067 = vst [vmem:[#allocation2 + $0x120] sm:$0xf] %v1002_v44 }
 0x177   : > { %1068 = vst [vmem:[#allocation2 + $0x12c] sm:$0xf] %v1003_v45  ;;  %v5300_v45 = vld [vmem:[#allocation2 + $0x88] sm:$0xf0] }
 0x178   : > { %1243 = vst [vmem:[#allocation2 + $0x128] sm:$0xf] %v1179_v46  ;;  %v6128_v58 = vpop.f32.mrf.mxu0  ;;  %2095 = vmatmul.bf16.gmra.mxu2 %v4405_v52  ;;  %v5444_v46 = vld [vmem:[%s6822_s3 + $0x1f0] sm:$0xff]  ;;  %v4325_v8 = vor.u32 %v5300_v45, %v4324_v41 }
 0x179   : > { %1244 = vst [vmem:[#allocation2 + $0x134] sm:$0xf] %v1180_v48  ;;  %v1964_v59 = vpop.f32.mrf.mxu1  ;;  %v5272_v48 = vld [vmem:[#allocation2 + $0x110] sm:$0xf0]  ;;  %3416 = vmatpush.bf16.msra.mxu0 %v5444_v46 }
 0x17a   : > { %v6130_v61 = vadd.f32 %v2053_v4, %v1964_v59  ;;  %2139 = vmatmul.bf16.gmra.mxu3 %v4301_v57  ;;  %v4577_v4 = vor.u32 %v5243_v40, %v4576_v39  ;;  %v4689_v52 = vor.u32 %v5272_v48, %v4688_v24  ;;  %v4582_v39 = vld [vmem:[#allocation2 + $0x3c] sm:$0xf0]  ;;  %v5244_v41 = vld [vmem:[#allocation2 + $0x34] sm:$0xf]  ;;  %v5249_v24 = vld [vmem:[#allocation2 + $0x58] sm:$0xf0] }
 0x17b   : > { %2663 = vmatmul.bf16.gmra.mxu0 %v4665_v60  ;;  %v2056_v27 = vpop.f32.mrf.mxu2  ;;  %v4570_v60 = vld [vmem:[#allocation2 + $0x24] sm:$0xf0]  ;;  %v4585_v46 = vor.u32 %v5244_v41, %v4582_v39  ;;  %v4348_v48 = vld [vmem:[#allocation2 + $0xb0] sm:$0xf]  ;;  %v5441_v41 = vld [vmem:[%s6822_s3 + $0x1d8] sm:$0xff] }
 0x17c   : > { %v4360_v39 = vld [vmem:[#allocation2 + $0xc8] sm:$0xf] }
 0x17d   : > { %v6132_v62 = vpop.f32.mrf.mxu3  ;;  %v4400_v10 = vld [vmem:[#allocation2 + $0x120] sm:$0xf] }
 0x17e   : > { %v5320_v0 = vld [vmem:[#allocation2 + $0x128] sm:$0xf0] }
 0x17f   : > { %v4401_v33 = vor.u32 %v5320_v0, %v4400_v10  ;;  %v5241_v0 = vld [vmem:[#allocation2 + $0x1c] sm:$0xf]  ;;  %v5275_v29 = vld [vmem:[#allocation2 + $0x128] sm:$0xf0] }
 0x180   : > { %v6134_v26 = vpop.f32.mrf.mxu0 }
 0x181   : > { %v1967_v1 = vpop.f32.mrf.mxu1 }
 0x182   : > { %v6136_v2 = vadd.f32 %v2056_v27, %v1967_v1  ;;  %v4573_v1 = vor.u32 %v5241_v0, %v4570_v60  ;;  %v5278_v60 = vld [vmem:[#allocation2 + $0x140] sm:$0xf0] }
 0x183   : > { %v2058_v6 = vpop.f32.mrf.mxu2 }
 0x184   : > { %2006 = vmatmul.bf16.gmra.mxu1 %v4401_v33 }
 0x185   : > { %v6138_v7 = vpop.f32.mrf.mxu3 }
 0x188   : > { %v6140_v18 = vpop.f32.mrf.mxu0  ;;  %2796 = vmatmul.bf16.vlgmr.msrb.gmra.mxu2 %v4565_v13  ;;  %v5303_v13 = vld [vmem:[#allocation2 + $0xa0] sm:$0xf0] }
 0x189   : > { %v1969_v19 = vpop.f32.mrf.mxu1 }
 0x18a   : > { %v6142_v23 = vadd.f32 %v2058_v6, %v1969_v19  ;;  %2144 = vmatmul.bf16.gmra.mxu3 %v4313_v16  ;;  %v4589_v16 = vor.u32 %v5246_v11, %v4588_v3  ;;  %v4337_v19 = vor.u32 %v5303_v13, %v4336_v12 }
 0x18b   : > { %2668 = vmatmul.bf16.gmra.mxu0 %v4677_v20  ;;  %v2061_v25 = vpop.f32.mrf.mxu2 }
 0x18d   : > { %v6144_v31 = vpop.f32.mrf.mxu3 }
 0x190   : > { %v6149_v34 = vpop.f32.mrf.mxu0 }
 0x191   : > { %v1972_v36 = vpop.f32.mrf.mxu1 }
 0x192   : > { %v6151_v37 = vadd.f32 %v2061_v25, %v1972_v36 }
 0x193   : > { %v2063_v43 = vpop.f32.mrf.mxu2 }
 0x194   : > { %2707 = vmatmul.bf16.vlgmr.msrb.gmra.mxu1 %v4561_v35 }
 0x195   : > { %v6153_v44 = vpop.f32.mrf.mxu3 }
 0x198   : > { %v6161_v50 = vpop.f32.mrf.mxu0  ;;  %2801 = vmatmul.bf16.gmra.mxu2 %v4577_v4 }
 0x199   : > { %v1974_v51 = vpop.f32.mrf.mxu1 }
 0x19a   : > { %v6163_v54 = vadd.f32 %v2063_v43, %v1974_v51  ;;  %2149 = vmatmul.bf16.gmra.mxu3 %v4325_v8  ;;  %v5306_v51 = vld [vmem:[#allocation2 + $0xb8] sm:$0xf0] }
 0x19b   : > { %2673 = vmatmul.bf16.gmra.mxu0 %v4689_v52  ;;  %v2066_v56 = vpop.f32.mrf.mxu2  ;;  %v5451_v52 = vld [vmem:[%s6822_s3 + $0x228] sm:$0xff]  ;;  %v4349_v0 = vor.u32 %v5306_v51, %v4348_v48 }
 0x19c   : > { %3506 = vmatpush.bf16.msra.mxu1 %v5451_v52 }
 0x19d   : > { %v2101_v57 = vpop.f32.mrf.mxu3 }
 0x19e   : > { %v6166_v59 = vadd.f32 %v2101_v57, %v6080_v38  ;;  %v4700_v38 = vld [vmem:[#allocation2 + $0x120] sm:$0xf]  ;;  %v4712_v57 = vld [vmem:[#allocation2 + $0x138] sm:$0xf] }
 0x19f   : > { %v4701_v28 = vor.u32 %v5275_v29, %v4700_v38  ;;  %v4713_v3 = vor.u32 %v5278_v60, %v4712_v57  ;;  %v4594_v38 = vld [vmem:[#allocation2 + $0x54] sm:$0xf0]  ;;  %v5439_v60 = vld [vmem:[%s6822_s3 + $0x1c8] sm:$0xff] }
 0x1a0   : > { %v6168_v27 = vpop.f32.mrf.mxu0 }
 0x1a1   : > { %v1977_v10 = vpop.f32.mrf.mxu1 }
 0x1a2   : > { %v6170_v33 = vadd.f32 %v2066_v56, %v1977_v10  ;;  %v4601_v10 = vor.u32 %v5249_v24, %v4600_v47  ;;  %v4724_v47 = vld [vmem:[#allocation2 + $0x150] sm:$0xf]  ;;  %v5281_v24 = vld [vmem:[#allocation2 + $0x158] sm:$0xf0] }
 0x1a3   : > { %v2068_v5 = vpop.f32.mrf.mxu2 }
 0x1a4   : > { %2712 = vmatmul.bf16.gmra.mxu1 %v4573_v1 }
 0x1a5   : > { %v2103_v6 = vpop.f32.mrf.mxu3 }
 0x1a6   : > { %v6173_v14 = vadd.f32 %v2103_v6, %v6095_v63  ;;  %v5435_v63 = vld [vmem:[%s6822_s3 + $0x1a8] sm:$0xff] }
 0x1a7   : > { %3328 = vmatpush.bf16.msra.mxu3 %v5435_v63 }
 0x1a8   : > { %v6175_v20 = vpop.f32.mrf.mxu0  ;;  %2806 = vmatmul.bf16.gmra.mxu2 %v4589_v16  ;;  %v5247_v16 = vld [vmem:[#allocation2 + $0x4c] sm:$0xf] }
 0x1a9   : > { %v1979_v25 = vpop.f32.mrf.mxu1 }
 0x1aa   : > { %v6177_v30 = vadd.f32 %v2068_v5, %v1979_v25  ;;  %2154 = vmatmul.bf16.gmra.mxu3 %v4337_v19  ;;  %v4597_v25 = vor.u32 %v5247_v16, %v4594_v38  ;;  %v4624_v16 = vld [vmem:[#allocation2 + $0x80] sm:$0xf] }
 0x1ab   : > { %2678 = vmatmul.bf16.gmra.mxu0 %v4701_v28  ;;  %v2071_v32 = vpop.f32.mrf.mxu2  ;;  %v4612_v28 = vld [vmem:[#allocation2 + $0x68] sm:$0xf] }
 0x1ad   : > { %v2106_v35 = vpop.f32.mrf.mxu3 }
 0x1ae   : > { %v6183_v36 = vadd.f32 %v2106_v35, %v6107_v21  ;;  %v5443_v21 = vld [vmem:[%s6822_s3 + $0x1e8] sm:$0xff] }
 0x1af   : > { %3417 = vmatpush.bf16.msra.mxu0 %v5443_v21  ;;  %v4725_v21 = vor.u32 %v5281_v24, %v4724_v47 }
 0x1b0   : > { %v6187_v45 = vpop.f32.mrf.mxu0 }
 0x1b1   : > { %v1982_v40 = vpop.f32.mrf.mxu1 }
 0x1b2   : > { %v6185_v43 = vadd.f32 %v2071_v32, %v1982_v40  ;;  %v5252_v32 = vld [vmem:[#allocation2 + $0x70] sm:$0xf0] }
 0x1b3   : > { %v2073_v4 = vpop.f32.mrf.mxu2  ;;  %v5309_v40 = vld [vmem:[#allocation2 + $0xd0] sm:$0xf0]  ;;  %v4613_v48 = vor.u32 %v5252_v32, %v4612_v28  ;;  %v4372_v32 = vld [vmem:[#allocation2 + $0xe0] sm:$0xf] }
 0x1b4   : > { %2717 = vmatmul.bf16.gmra.mxu1 %v4585_v46 }
 0x1b5   : > { %v2108_v8 = vpop.f32.mrf.mxu3 }
 0x1b6   : > { %v6196_v56 = vadd.f32 %v2108_v8, %v6120_v49  ;;  %v5442_v49 = vld [vmem:[%s6822_s3 + $0x1e0] sm:$0xff]  ;;  %v5440_v8 = vld [vmem:[%s6822_s3 + $0x1d0] sm:$0xff] }
 0x1b7   : > { %3418 = vmatpush.bf16.msra.mxu0 %v5442_v49  ;;  %v5250_v49 = vld [vmem:[#allocation2 + $0x64] sm:$0xf] }
 0x1b8   : > { %6831 = vst [vmem:[#allocation3_spill] sm:$0xff] %v6196_v56  ;;  %2811 = vmatmul.bf16.gmra.mxu2 %v4601_v10  ;;  %v6200_v6 = vpop.f32.mrf.mxu0  ;;  %v5434_v10 = vld [vmem:[%s6822_s3 + $0x1a0] sm:$0xff] }
 0x1b9   : > { %v1984_v1 = vpop.f32.mrf.mxu1  ;;  %3329 = vmatpush.bf16.msra.mxu3 %v5434_v10  ;;  %v5253_v10 = vld [vmem:[#allocation2 + $0x7c] sm:$0xf] }
 0x1ba   : > { %v6198_v5 = vadd.f32 %v2073_v4, %v1984_v1  ;;  %2159 = vmatmul.bf16.gmra.mxu3 %v4349_v0  ;;  %v4361_v4 = vor.u32 %v5309_v40, %v4360_v39  ;;  %v4606_v1 = vld [vmem:[#allocation2 + $0x6c] sm:$0xf0]  ;;  %v4736_v40 = vld [vmem:[#allocation2 + $0x168] sm:$0xf] }
 0x1bb   : > { %2683 = vmatmul.bf16.gmra.mxu0 %v4713_v3  ;;  %v2076_v11 = vpop.f32.mrf.mxu2 }
 0x1bc   : > { %3419 = vmatpush.bf16.msra.mxu0 %v5441_v41  ;;  %v5284_v41 = vld [vmem:[#allocation2 + $0x170] sm:$0xf0] }
 0x1bd   : > { %v2111_v12 = vpop.f32.mrf.mxu3 }
 0x1be   : > { %v6206_v13 = vadd.f32 %v2111_v12, %v6132_v62 }
 0x1c0   : > { %6832 = vst [vmem:[#allocation4_spill] sm:$0xff] %v6206_v13  ;;  %v6213_v62 = vpop.f32.mrf.mxu0  ;;  %3420 = vmatpush.bf16.msra.mxu0 %v5440_v8  ;;  %v5267_v13 = vld [vmem:[#allocation2 + $0xe8] sm:$0xf0] }
 0x1c1   : > { %v1987_v29 = vpop.f32.mrf.mxu1 }
 0x1c2   : > { %v6208_v19 = vadd.f32 %v2076_v11, %v1987_v29  ;;  %v5438_v11 = vld [vmem:[%s6822_s3 + $0x1c0] sm:$0xff]  ;;  %v4609_v29 = vor.u32 %v5250_v49, %v4606_v1  ;;  %v4636_v49 = vld [vmem:[#allocation2 + $0x98] sm:$0xf] }
 0x1c3   : > { %v2078_v35 = vpop.f32.mrf.mxu2 }
 0x1c4   : > { %2722 = vmatmul.bf16.gmra.mxu1 %v4597_v25  ;;  %3421 = vmatpush.bf16.msra.mxu0 %v5439_v60  ;;  %v5255_v25 = vld [vmem:[#allocation2 + $0x88] sm:$0xf0] }
 0x1c5   : > { %v2113_v63 = vpop.f32.mrf.mxu3  ;;  %v4625_v47 = vor.u32 %v5255_v25, %v4624_v16  ;;  %v5258_v25 = vld [vmem:[#allocation2 + $0xa0] sm:$0xf0] }
 0x1c6   : > { %v6216_v46 = vadd.f32 %v2113_v63, %v6138_v7  ;;  %v5450_v63 = vld [vmem:[%s6822_s3 + $0x220] sm:$0xff] }
 0x1c7   : > { %3507 = vmatpush.bf16.msra.mxu1 %v5450_v63 }
 0x1c8   : > { %6833 = vst [vmem:[#allocation5_spill] sm:$0xff] %v6216_v46  ;;  %2816 = vmatmul.bf16.gmra.mxu2 %v4613_v48  ;;  %v6232_v3 = vpop.f32.mrf.mxu0  ;;  %3422 = vmatpush.bf16.msra.mxu0 %v5438_v11 }
 0x1c9   : > { %v1989_v51 = vpop.f32.mrf.mxu1 }
 0x1ca   : > { %v6221_v52 = vadd.f32 %v2078_v35, %v1989_v51  ;;  %2164 = vmatmul.bf16.gmra.mxu3 %v4361_v4  ;;  %v5312_v35 = vld [vmem:[#allocation2 + $0xe8] sm:$0xf0]  ;;  %v4737_v4 = vor.u32 %v5284_v41, %v4736_v40  ;;  %v5334_v40 = vld [vmem:[#allocation2 + $0x34] sm:$0xf] }
 0x1cb   : > { %2688 = vmatmul.bf16.gmra.mxu0 %v4725_v21  ;;  %v2081_v57 = vpop.f32.mrf.mxu2  ;;  %v4373_v24 = vor.u32 %v5312_v35, %v4372_v32  ;;  %v4637_v35 = vor.u32 %v5258_v25, %v4636_v49 }
 0x1cd   : > { %v2116_v7 = vpop.f32.mrf.mxu3 }
 0x1ce   : > { %v6230_v0 = vadd.f32 %v2116_v7, %v6144_v31 }
 0x1d0   : > { %6834 = vst [vmem:[#allocation6_spill] sm:$0xff] %v6230_v0  ;;  %v6245_v8 = vpop.f32.mrf.mxu0 }
 0x1d1   : > { %v1992_v12 = vpop.f32.mrf.mxu1 }
 0x1d2   : > { %v6237_v38 = vadd.f32 %v2081_v57, %v1992_v12 }
 0x1d3   : > { %v2083_v31 = vpop.f32.mrf.mxu2 }
 0x1d4   : > { %2727 = vmatmul.bf16.gmra.mxu1 %v4609_v29 }
 0x1d5   : > { %v2118_v28 = vpop.f32.mrf.mxu3 }
 0x1d6   : > { %v6243_v39 = vadd.f32 %v2118_v28, %v6153_v44  ;;  %v4618_v44 = vld [vmem:[#allocation2 + $0x84] sm:$0xf0]  ;;  %v5315_v28 = vld [vmem:[#allocation2 + $0x100] sm:$0xf0] }
 0x1d7   : > { %v4621_v11 = vor.u32 %v5253_v10, %v4618_v44  ;;  %v4630_v44 = vld [vmem:[#allocation2 + $0x9c] sm:$0xf0]  ;;  %v5256_v10 = vld [vmem:[#allocation2 + $0x94] sm:$0xf] }
 0x1d8   : > { %6835 = vst [vmem:[#allocation7_spill] sm:$0xff] %v6243_v39  ;;  %2821 = vmatmul.bf16.gmra.mxu2 %v4625_v47  ;;  %v6254_v12 = vpop.f32.mrf.mxu0  ;;  %v4633_v49 = vor.u32 %v5256_v10, %v4630_v44 }
 0x1d9   : > { %v1994_v48 = vpop.f32.mrf.mxu1 }
 0x1da   : > { %v6247_v51 = vadd.f32 %v2083_v31, %v1994_v48  ;;  %2169 = vmatmul.bf16.gmra.mxu3 %v4373_v24  ;;  %v4384_v31 = vld [vmem:[#allocation2 + $0xf8] sm:$0xf] }
 0x1db   : > { %2693 = vmatmul.bf16.gmra.mxu0 %v4737_v4  ;;  %v2086_v21 = vpop.f32.mrf.mxu2  ;;  %v4385_v63 = vor.u32 %v5315_v28, %v4384_v31  ;;  %v4396_v28 = vld [vmem:[#allocation2 + $0x110] sm:$0xf] }
 0x1dd   : > { %v2130_v57 = vpop.f32.mrf.mxu3 }
 0x1de   : > { %v6250_v7 = vadd.f32 %v2130_v57, %v6055_v53  ;;  %v4894_v53 = vld [vmem:[#allocation2 + $0x3c] sm:$0xf0] }
 0x1df   : > { %v4897_v47 = vor.u32 %v5334_v40, %v4894_v53  ;;  %v5318_v53 = vld [vmem:[#allocation2 + $0x118] sm:$0xf0] }
 0x1e0   : > { %v6264_v57 = vpop.f32.mrf.mxu0 }
 0x1e1   : > { %v1997_v60 = vpop.f32.mrf.mxu1 }
 0x1e2   : > { %v6252_v1 = vadd.f32 %v2086_v21, %v1997_v60  ;;  %v5433_v21 = vld [vmem:[%s6822_s3 + $0x198] sm:$0xff] }
 0x1e3   : > { %v2088_v29 = vpop.f32.mrf.mxu2  ;;  %3330 = vmatpush.bf16.msra.mxu3 %v5433_v21 }
 0x1e4   : > { %2732 = vmatmul.bf16.gmra.mxu1 %v4621_v11 }
 0x1e5   : > { %v2132_v16 = vpop.f32.mrf.mxu3 }
 0x1e6   : > { %v6257_v32 = vadd.f32 %v2132_v16, %v6068_v17  ;;  %v5261_v16 = vld [vmem:[#allocation2 + $0xb8] sm:$0xf0] }
 0x1e8   : > { %2826 = vmatmul.bf16.gmra.mxu2 %v4637_v35  ;;  %v5449_v35 = vld [vmem:[%s6822_s3 + $0x218] sm:$0xff]  ;;  %v6277_v40 = vpop.f32.mrf.mxu0 }
 0x1e9   : > { %v1999_v41 = vpop.f32.mrf.mxu1  ;;  %3508 = vmatpush.bf16.msra.mxu1 %v5449_v35  ;;  %v5259_v35 = vld [vmem:[#allocation2 + $0xac] sm:$0xf] }
 0x1ea   : > { %v6259_v24 = vadd.f32 %v2088_v29, %v1999_v41  ;;  %2174 = vmatmul.bf16.gmra.mxu3 %v4385_v63  ;;  %v4648_v29 = vld [vmem:[#allocation2 + $0xb0] sm:$0xf]  ;;  %v4906_v63 = vld [vmem:[#allocation2 + $0x54] sm:$0xf0] }
 0x1eb   : > { %3423 = vmatmul.bf16.vlgmr.msra.gmra.mxu0 %v4897_v47  ;;  %v2091_v48 = vpop.f32.mrf.mxu2  ;;  %v4649_v41 = vor.u32 %v5261_v16, %v4648_v29  ;;  %v4397_v47 = vor.u32 %v5318_v53, %v4396_v28  ;;  %v4660_v28 = vld [vmem:[#allocation2 + $0xc8] sm:$0xf]  ;;  %v5264_v53 = vld [vmem:[#allocation2 + $0xd0] sm:$0xf0] }
 0x1ed   : > { %v2135_v4 = vpop.f32.mrf.mxu3 }
 0x1ee   : > { %v6267_v17 = vadd.f32 %v2135_v4, %v6093_v55 }
 0x1f0   : > { %v6284_v39 = vpop.f32.mrf.mxu0 }
 0x1f1   : > { %v2002_v60 = vpop.f32.mrf.mxu1 }
 0x1f2   : > { %v6269_v11 = vadd.f32 %v2091_v48, %v2002_v60  ;;  %v5337_v48 = vld [vmem:[#allocation2 + $0x4c] sm:$0xf] }
 0x1f3   : > { %v2093_v25 = vpop.f32.mrf.mxu2  ;;  %v4909_v21 = vor.u32 %v5337_v48, %v4906_v63 }
 0x1f4   : > { %2737 = vmatmul.bf16.gmra.mxu1 %v4633_v49 }
 0x1f5   : > { %v2137_v31 = vpop.f32.mrf.mxu3 }
 0x1f6   : > { %v6275_v55 = vadd.f32 %v2137_v31, %v6105_v15  ;;  %v4642_v15 = vld [vmem:[#allocation2 + $0xb4] sm:$0xf0] }
 0x1f7   : > { %v4645_v16 = vor.u32 %v5259_v35, %v4642_v15 }
 0x1f8   : > { %2831 = vmatmul.bf16.gmra.mxu2 %v4649_v41  ;;  %v4408_v41 = vld [vmem:[#allocation2 + $0x128] sm:$0xf] }
 0x1f9   : > { %v2004_v4 = vpop.f32.mrf.mxu1 }
 0x1fa   : > { %v6279_v44 = vadd.f32 %v2093_v25, %v2004_v4  ;;  %2179 = vmatmul.bf16.gmra.mxu3 %v4397_v47  ;;  %v5321_v47 = vld [vmem:[#allocation2 + $0x130] sm:$0xf0]  ;;  %v4918_v4 = vld [vmem:[#allocation2 + $0x6c] sm:$0xf0] }
 0x1fb   : > { %3428 = vmatmul.bf16.gmra.mxu0 %v4909_v21  ;;  %v2096_v60 = vpop.f32.mrf.mxu2  ;;  %v4661_v21 = vor.u32 %v5264_v53, %v4660_v28  ;;  %v4654_v28 = vld [vmem:[#allocation2 + $0xcc] sm:$0xf0]  ;;  %v2620_v53 = vadd.f32 %v6100_v9, %v6250_v7  ;;  %v4930_v7 = vld [vmem:[#allocation2 + $0x84] sm:$0xf0] }
 0x1fd   : > { %v2140_v10 = vpop.f32.mrf.mxu3 }
 0x1fe   : > { %v6282_v49 = vadd.f32 %v2140_v10, %v6118_v42  ;;  %v5461_v42 = vld [vmem:[%s6824_s5 + $0x38] sm:$0xff]  ;;  %v5340_v10 = vld [vmem:[#allocation2 + $0x64] sm:$0xf] }
 0x1ff   : > { %3777 = vmatpush.bf16.msra.mxu2 %v5461_v42 }
 0x201   : > { %v2007_v31 = vpop.f32.mrf.mxu1 }
 0x202   : > { %v6286_v29 = vadd.f32 %v2096_v60, %v2007_v31  ;;  %v4409_v60 = vor.u32 %v5321_v47, %v4408_v41  ;;  %v4921_v31 = vor.u32 %v5340_v10, %v4918_v4  ;;  %v5262_v41 = vld [vmem:[#allocation2 + $0xc4] sm:$0xf] }
 0x203   : > { %v2098_v25 = vpop.f32.mrf.mxu2  ;;  %v4657_v42 = vor.u32 %v5262_v41, %v4654_v28 }
 0x204   : > { %2742 = vmatmul.bf16.gmra.mxu1 %v4645_v16  ;;  %v6296_v16 = vpop.f32.mrf.mxu0 }
 0x205   : > { %v2142_v63 = vpop.f32.mrf.mxu3 }
 0x206   : > { %v6292_v48 = vadd.f32 %v2142_v63, %v6130_v61  ;;  %v5432_v61 = vld [vmem:[%s6822_s3 + $0x190] sm:$0xff] }
 0x207   : > { %3331 = vmatpush.bf16.msra.mxu3 %v5432_v61  ;;  %v2622_v61 = vadd.f32 %v6112_v22, %v6257_v32  ;;  %v2625_v22 = vadd.f32 %v6128_v58, %v6267_v17  ;;  %v4942_v58 = vld [vmem:[#allocation2 + $0x9c] sm:$0xf0] }
 0x208   : > { %2836 = vmatmul.bf16.gmra.mxu2 %v4661_v21  ;;  %v4420_v21 = vld [vmem:[#allocation2 + $0x140] sm:$0xf] }
 0x209   : > { %v2009_v15 = vpop.f32.mrf.mxu1 }
 0x20a   : > { %v6294_v35 = vadd.f32 %v2098_v25, %v2009_v15  ;;  %2184 = vmatmul.bf16.gmra.mxu3 %v4409_v60  ;;  %v5324_v60 = vld [vmem:[#allocation2 + $0x148] sm:$0xf0] }
 0x20b   : > { %3433 = vmatmul.bf16.gmra.mxu0 %v4921_v31  ;;  %v2797_v0 = vpop.f32.mrf.mxu2  ;;  %v4672_v31 = vld [vmem:[#allocation2 + $0xe0] sm:$0xf]  ;;  %v4421_v28 = vor.u32 %v5324_v60, %v4420_v21  ;;  %v5265_v21 = vld [vmem:[#allocation2 + $0xdc] sm:$0xf] }
 0x20d   : > { %v2145_v46 = vpop.f32.mrf.mxu3 }
 0x20e   : > { %v6302_v63 = vadd.f32 %v2145_v46, %v6136_v2  ;;  %v5448_v2 = vld [vmem:[%s6822_s3 + $0x210] sm:$0xff]  ;;  %v6311_v46 = vpop.f32.mrf.mxu0 }
 0x20f   : > { %3509 = vmatpush.bf16.msra.mxu1 %v5448_v2 }
 0x211   : > { %v2708_v25 = vpop.f32.mrf.mxu1 }
 0x212   : > { %v2709_v47 = vadd.f32 %v2708_v25, %v2620_v53  ;;  %v5343_v53 = vld [vmem:[#allocation2 + $0x7c] sm:$0xf] }
 0x213   : > { %v2799_v10 = vpop.f32.mrf.mxu2  ;;  %v4933_v41 = vor.u32 %v5343_v53, %v4930_v7  ;;  %v5327_v7 = vld [vmem:[#allocation2 + $0x160] sm:$0xf0] }
 0x214   : > { %v6306_v4 = vadd.f32 %v2797_v0, %v2709_v47  ;;  %2747 = vmatmul.bf16.gmra.mxu1 %v4657_v42  ;;  %v4673_v0 = vor.u32 %v5267_v13, %v4672_v31 }
 0x215   : > { %v2147_v15 = vpop.f32.mrf.mxu3 }
 0x216   : > { %6836 = vst [vmem:[#allocation8_spill] sm:$0xff] %v6306_v4  ;;  %v6314_v9 = vadd.f32 %v2147_v15, %v6142_v23  ;;  %v4666_v15 = vld [vmem:[#allocation2 + $0xe4] sm:$0xf0]  ;;  %v6323_v13 = vpop.f32.mrf.mxu0 }
 0x217   : > { %v4669_v31 = vor.u32 %v5265_v21, %v4666_v15 }
 0x218   : > { %2841 = vmatmul.bf16.gmra.mxu2 %v4673_v0 }
 0x219   : > { %v2710_v25 = vpop.f32.mrf.mxu1 }
 0x21a   : > { %v2711_v47 = vadd.f32 %v2710_v25, %v2622_v61  ;;  %2189 = vmatmul.bf16.gmra.mxu3 %v4421_v28  ;;  %v4684_v28 = vld [vmem:[#allocation2 + $0xf8] sm:$0xf] }
 0x21b   : > { %3438 = vmatmul.bf16.gmra.mxu0 %v4933_v41  ;;  %v2802_v4 = vpop.f32.mrf.mxu2  ;;  %v5346_v41 = vld [vmem:[#allocation2 + $0x94] sm:$0xf] }
 0x21c   : > { %v6318_v42 = vadd.f32 %v2799_v10, %v2711_v47  ;;  %v4432_v10 = vld [vmem:[#allocation2 + $0x158] sm:$0xf]  ;;  %v4945_v15 = vor.u32 %v5346_v41, %v4942_v58  ;;  %v4444_v58 = vld [vmem:[#allocation2 + $0x170] sm:$0xf]  ;;  %v5273_v41 = vld [vmem:[#allocation2 + $0x118] sm:$0xf0] }
 0x21d   : > { %v2150_v56 = vpop.f32.mrf.mxu3  ;;  %v4433_v25 = vor.u32 %v5327_v7, %v4432_v10  ;;  %v2630_v10 = vadd.f32 %v6140_v18, %v6282_v49  ;;  %v4954_v49 = vld [vmem:[#allocation2 + $0xb4] sm:$0xf0] }
 0x21e   : > { %v6321_v23 = vadd.f32 %v2150_v56, %v6151_v37  ;;  %v5270_v37 = vld [vmem:[#allocation2 + $0x100] sm:$0xf0]  ;;  %v5460_v56 = vld [vmem:[%s6824_s5 + $0x30] sm:$0xff] }
 0x21f   : > { %3778 = vmatpush.bf16.msra.mxu2 %v5460_v56  ;;  %v4685_v17 = vor.u32 %v5270_v37, %v4684_v28 }
 0x221   : > { %v2713_v32 = vpop.f32.mrf.mxu1 }
 0x222   : > { %v2714_v60 = vadd.f32 %v2713_v32, %v2625_v22  ;;  %v6337_v22 = vpop.f32.mrf.mxu0 }
 0x223   : > { %v2804_v0 = vpop.f32.mrf.mxu2 }
 0x224   : > { %v6327_v2 = vadd.f32 %v2802_v4, %v2714_v60  ;;  %2752 = vmatmul.bf16.gmra.mxu1 %v4669_v31  ;;  %v2627_v4 = vadd.f32 %v6134_v26, %v6275_v55  ;;  %v5431_v31 = vld [vmem:[%s6822_s3 + $0x188] sm:$0xff]  ;;  %v4678_v55 = vld [vmem:[#allocation2 + $0xfc] sm:$0xf0] }
 0x225   : > { %v2152_v61 = vpop.f32.mrf.mxu3  ;;  %3332 = vmatpush.bf16.msra.mxu3 %v5431_v31 }
 0x226   : > { %v6333_v53 = vadd.f32 %v2152_v61, %v6163_v54  ;;  %v5268_v61 = vld [vmem:[#allocation2 + $0xf4] sm:$0xf] }
 0x227   : > { %v4681_v37 = vor.u32 %v5268_v61, %v4678_v55 }
 0x228   : > { %2846 = vmatmul.bf16.gmra.mxu2 %v4685_v17  ;;  %v5330_v17 = vld [vmem:[#allocation2 + $0x178] sm:$0xf0] }
 0x229   : > { %v2715_v47 = vpop.f32.mrf.mxu1 }
 0x22a   : > { %v2716_v32 = vadd.f32 %v2715_v47, %v2627_v4  ;;  %2194 = vmatmul.bf16.gmra.mxu3 %v4433_v25  ;;  %v5447_v47 = vld [vmem:[%s6822_s3 + $0x208] sm:$0xff] }
 0x22b   : > { %3443 = vmatmul.bf16.gmra.mxu0 %v4945_v15  ;;  %v2807_v54 = vpop.f32.mrf.mxu2  ;;  %3510 = vmatpush.bf16.msra.mxu1 %v5447_v47 }
 0x22c   : > { %v6339_v21 = vadd.f32 %v2804_v0, %v2716_v32  ;;  %v6349_v0 = vpop.f32.mrf.mxu0  ;;  %v2632_v32 = vadd.f32 %v6149_v34, %v6292_v48  ;;  %v4690_v48 = vld [vmem:[#allocation2 + $0x114] sm:$0xf0] }
 0x22d   : > { %v2155_v60 = vpop.f32.mrf.mxu3 }
 0x22e   : > { %v6345_v26 = vadd.f32 %v2155_v60, %v6170_v33  ;;  %v4696_v33 = vld [vmem:[#allocation2 + $0x110] sm:$0xf]  ;;  %v5349_v60 = vld [vmem:[#allocation2 + $0xac] sm:$0xf] }
 0x22f   : > { %v4697_v15 = vor.u32 %v5273_v41, %v4696_v33  ;;  %v4957_v55 = vor.u32 %v5349_v60, %v4954_v49  ;;  %v5333_v49 = vld [vmem:[#allocation2 + $0x190] sm:$0xf0] }
 0x230   : > { %v5276_v60 = vld [vmem:[#allocation2 + $0x130] sm:$0xf0] }
 0x231   : > { %v2718_v7 = vpop.f32.mrf.mxu1 }
 0x232   : > { %v2719_v28 = vadd.f32 %v2718_v7, %v2630_v10  ;;  %v5430_v7 = vld [vmem:[%s6822_s3 + $0x180] sm:$0xff] }
 0x233   : > { %v2809_v4 = vpop.f32.mrf.mxu2  ;;  %3333 = vmatpush.bf16.msra.mxu3 %v5430_v7 }
 0x234   : > { %v6351_v56 = vadd.f32 %v2807_v54, %v2719_v28  ;;  %2757 = vmatmul.bf16.gmra.mxu1 %v4681_v37  ;;  %v4445_v54 = vor.u32 %v5330_v17, %v4444_v58  ;;  %v6366_v37 = vpop.f32.mrf.mxu0  ;;  %v2635_v58 = vadd.f32 %v6161_v50, %v6302_v63  ;;  %v4966_v50 = vld [vmem:[#allocation2 + $0xcc] sm:$0xf0] }
 0x235   : > { %v2157_v25 = vpop.f32.mrf.mxu3 }
 0x236   : > { %v6357_v18 = vadd.f32 %v2157_v25, %v6177_v30  ;;  %v5271_v25 = vld [vmem:[#allocation2 + $0x10c] sm:$0xf] }
 0x237   : > { %v4693_v41 = vor.u32 %v5271_v25, %v4690_v48 }
 0x238   : > { %2851 = vmatmul.bf16.gmra.mxu2 %v4697_v15 }
 0x239   : > { %v2720_v31 = vpop.f32.mrf.mxu1 }
 0x23a   : > { %v2721_v10 = vadd.f32 %v2720_v31, %v2632_v32  ;;  %2199 = vmatmul.bf16.gmra.mxu3 %v4445_v54  ;;  %v4708_v54 = vld [vmem:[#allocation2 + $0x128] sm:$0xf] }
 0x23b   : > { %3448 = vmatmul.bf16.gmra.mxu0 %v4957_v55  ;;  %v2812_v61 = vpop.f32.mrf.mxu2  ;;  %v4709_v55 = vor.u32 %v5276_v60, %v4708_v54 }
 0x23c   : > { %v6364_v30 = vadd.f32 %v2809_v4, %v2721_v10  ;;  %v4456_v4 = vld [vmem:[#allocation2 + $0x188] sm:$0xf]  ;;  %v6381_v63 = vpop.f32.mrf.mxu0  ;;  %v2637_v10 = vadd.f32 %v6168_v27, %v6314_v9  ;;  %v5274_v9 = vld [vmem:[#allocation2 + $0x124] sm:$0xf] }
 0x23d   : > { %v2160_v28 = vpop.f32.mrf.mxu3  ;;  %v4457_v7 = vor.u32 %v5333_v49, %v4456_v4 }
 0x23e   : > { %v6369_v34 = vadd.f32 %v2160_v28, %v6185_v43  ;;  %v5459_v43 = vld [vmem:[%s6824_s5 + $0x28] sm:$0xff] }
 0x23f   : > { %3779 = vmatpush.bf16.msra.mxu2 %v5459_v43  ;;  %v5279_v43 = vld [vmem:[#allocation2 + $0x148] sm:$0xf0] }
 0x241   : > { %v2723_v17 = vpop.f32.mrf.mxu1 }
 0x242   : > { %v2724_v33 = vadd.f32 %v2723_v17, %v2635_v58 }
 0x243   : > { %v2814_v15 = vpop.f32.mrf.mxu2 }
 0x244   : > { %v6373_v47 = vadd.f32 %v2812_v61, %v2724_v33  ;;  %2762 = vmatmul.bf16.gmra.mxu1 %v4693_v41  ;;  %v5352_v61 = vld [vmem:[#allocation2 + $0xc4] sm:$0xf]  ;;  %v4702_v41 = vld [vmem:[#allocation2 + $0x12c] sm:$0xf0]  ;;  %v6392_v4 = vpop.f32.mrf.mxu0 }
 0x245   : > { %v2162_v32 = vpop.f32.mrf.mxu3  ;;  %v4969_v48 = vor.u32 %v5352_v61, %v4966_v50  ;;  %v4705_v54 = vor.u32 %v5274_v9, %v4702_v41 }
 0x246   : > { %v6379_v31 = vadd.f32 %v2162_v32, %v6198_v5  ;;  %v2640_v32 = vadd.f32 %v6175_v20, %v6321_v23  ;;  %v5446_v20 = vld [vmem:[%s6822_s3 + $0x200] sm:$0xff] }
 0x247   : > { %3511 = vmatpush.bf16.msra.mxu1 %v5446_v20 }
 0x248   : > { %2856 = vmatmul.bf16.gmra.mxu2 %v4709_v55 }
 0x249   : > { %v2725_v28 = vpop.f32.mrf.mxu1 }
 0x24a   : > { %v2726_v58 = vadd.f32 %v2725_v28, %v2637_v10  ;;  %2204 = vmatmul.bf16.gmra.mxu3 %v4457_v7  ;;  %v5335_v10 = vld [vmem:[#allocation2 + $0x38] sm:$0xf0]  ;;  %v4978_v7 = vld [vmem:[#allocation2 + $0xe4] sm:$0xf0]  ;;  %v2642_v28 = vadd.f32 %v6187_v45, %v6333_v53  ;;  %v2645_v45 = vadd.f32 %v6200_v6, %v6345_v26  ;;  %v4990_v26 = vld [vmem:[#allocation2 + $0xfc] sm:$0xf0] }
 0x24b   : > { %3453 = vmatmul.bf16.gmra.mxu0 %v4969_v48  ;;  %v2817_v5 = vpop.f32.mrf.mxu2 }
 0x24c   : > { %v6385_v17 = vadd.f32 %v2814_v15, %v2726_v58  ;;  %v4720_v15 = vld [vmem:[#allocation2 + $0x140] sm:$0xf]  ;;  %v5355_v58 = vld [vmem:[#allocation2 + $0xdc] sm:$0xf] }
 0x24d   : > { %v2165_v25 = vpop.f32.mrf.mxu3  ;;  %v4721_v61 = vor.u32 %v5279_v43, %v4720_v15 }
 0x24e   : > { %v6388_v33 = vadd.f32 %v2165_v25, %v6208_v19  ;;  %v4892_v19 = vld [vmem:[#allocation2 + $0x30] sm:$0xf]  ;;  %v4981_v25 = vor.u32 %v5355_v58, %v4978_v7 }
 0x24f   : > { %v4893_v48 = vor.u32 %v5335_v10, %v4892_v19  ;;  %v4904_v19 = vld [vmem:[#allocation2 + $0x48] sm:$0xf]  ;;  %v5338_v10 = vld [vmem:[#allocation2 + $0x50] sm:$0xf0] }
 0x251   : > { %v2728_v27 = vpop.f32.mrf.mxu1 }
 0x252   : > { %v2729_v49 = vadd.f32 %v2728_v27, %v2640_v32  ;;  %v6408_v32 = vpop.f32.mrf.mxu0 }
 0x253   : > { %v6396_v50 = vpop.f32.mrf.mxu2 }
 0x254   : > { %v6394_v60 = vadd.f32 %v2817_v5, %v2729_v49  ;;  %2767 = vmatmul.bf16.gmra.mxu1 %v4705_v54  ;;  %v5277_v49 = vld [vmem:[#allocation2 + $0x13c] sm:$0xf]  ;;  %v4714_v54 = vld [vmem:[#allocation2 + $0x144] sm:$0xf0] }
 0x255   : > { %v2167_v55 = vpop.f32.mrf.mxu3  ;;  %v4717_v43 = vor.u32 %v5277_v49, %v4714_v54 }
 0x256   : > { %v6402_v23 = vadd.f32 %v2167_v55, %v6221_v52 }
 0x258   : > { %2861 = vmatmul.bf16.gmra.mxu2 %v4721_v61  ;;  %v4732_v61 = vld [vmem:[#allocation2 + $0x158] sm:$0xf] }
 0x259   : > { %v2730_v5 = vpop.f32.mrf.mxu1 }
 0x25a   : > { %v6406_v41 = vadd.f32 %v2730_v5, %v2642_v28  ;;  %3334 = vmatmul.bf16.vlgmr.msra.gmra.mxu3 %v4893_v48  ;;  %v5282_v28 = vld [vmem:[#allocation2 + $0x160] sm:$0xf0]  ;;  %v6422_v48 = vpop.f32.mrf.mxu0  ;;  %v2647_v5 = vadd.f32 %v6213_v62, %v6357_v18  ;;  %v2650_v62 = vadd.f32 %v6232_v3, %v6369_v34  ;;  %v2652_v3 = vadd.f32 %v6245_v8, %v6379_v31 }
 0x25b   : > { %3458 = vmatmul.bf16.gmra.mxu0 %v4981_v25  ;;  %v2822_v27 = vpop.f32.mrf.mxu2  ;;  %v4733_v58 = vor.u32 %v5282_v28, %v4732_v61  ;;  %v4905_v25 = vor.u32 %v5338_v10, %v4904_v19  ;;  %v4916_v28 = vld [vmem:[#allocation2 + $0x60] sm:$0xf]  ;;  %v2655_v8 = vadd.f32 %v6254_v12, %v6388_v33  ;;  %v5014_v12 = vld [vmem:[#allocation2 + $0x12c] sm:$0xf0]  ;;  %v2657_v33 = vadd.f32 %v6264_v57, %v6402_v23 }
 0x25d   : > { %v2170_v52 = vpop.f32.mrf.mxu3 }
 0x25e   : > { %v6411_v9 = vadd.f32 %v2170_v52, %v6237_v38  ;;  %v5458_v38 = vld [vmem:[%s6824_s5 + $0x20] sm:$0xff] }
 0x25f   : > { %3780 = vmatpush.bf16.msra.mxu2 %v5458_v38 }
 0x260   : > { %v2660_v57 = vadd.f32 %v6277_v40, %v6411_v9 }
 0x261   : > { %v2733_v53 = vpop.f32.mrf.mxu1 }
 0x262   : > { %v2734_v15 = vadd.f32 %v2733_v53, %v2645_v45 }
 0x263   : > { %v6417_v20 = vpop.f32.mrf.mxu2 }
 0x264   : > { %v6415_v55 = vadd.f32 %v2822_v27, %v2734_v15  ;;  %2772 = vmatmul.bf16.gmra.mxu1 %v4717_v43  ;;  %v5358_v27 = vld [vmem:[#allocation2 + $0xf4] sm:$0xf]  ;;  %v4726_v43 = vld [vmem:[#allocation2 + $0x15c] sm:$0xf0] }
 0x265   : > { %v2172_v7 = vpop.f32.mrf.mxu3  ;;  %v4993_v49 = vor.u32 %v5358_v27, %v4990_v26  ;;  %v5280_v15 = vld [vmem:[#allocation2 + $0x154] sm:$0xf]  ;;  %v5002_v27 = vld [vmem:[#allocation2 + $0x114] sm:$0xf0] }
 0x266   : > { %v6425_v6 = vadd.f32 %v2172_v7, %v6247_v51  ;;  %v6434_v7 = vpop.f32.mrf.mxu0  ;;  %v4729_v10 = vor.u32 %v5280_v15, %v4726_v43 }
 0x268   : > { %2866 = vmatmul.bf16.gmra.mxu2 %v4733_v58  ;;  %v4744_v58 = vld [vmem:[#allocation2 + $0x170] sm:$0xf]  ;;  %v2662_v40 = vadd.f32 %v6284_v39, %v6425_v6 }
 0x269   : > { %v2735_v52 = vpop.f32.mrf.mxu1 }
 0x26a   : > { %v6429_v54 = vadd.f32 %v2735_v52, %v2647_v5  ;;  %3339 = vmatmul.bf16.gmra.mxu3 %v4905_v25  ;;  %v5341_v5 = vld [vmem:[#allocation2 + $0x68] sm:$0xf0] }
 0x26b   : > { %3463 = vmatmul.bf16.gmra.mxu0 %v4993_v49  ;;  %v2827_v45 = vpop.f32.mrf.mxu2  ;;  %v4917_v34 = vor.u32 %v5341_v5, %v4916_v28  ;;  %v5361_v49 = vld [vmem:[#allocation2 + $0x10c] sm:$0xf] }
 0x26d   : > { %v2175_v53 = vpop.f32.mrf.mxu3 }
 0x26e   : > { %v6432_v51 = vadd.f32 %v2175_v53, %v6252_v1  ;;  %v5285_v1 = vld [vmem:[#allocation2 + $0x178] sm:$0xf0]  ;;  %v5005_v53 = vor.u32 %v5361_v49, %v5002_v27  ;;  %v6447_v15 = vpop.f32.mrf.mxu0 }
 0x26f   : > { %v4745_v52 = vor.u32 %v5285_v1, %v4744_v58 }
 0x271   : > { %v2738_v18 = vpop.f32.mrf.mxu1 }
 0x272   : > { %v2739_v19 = vadd.f32 %v2738_v18, %v2650_v62 }
 0x273   : > { %v6440_v38 = vpop.f32.mrf.mxu2 }
 0x274   : > { %v6438_v61 = vadd.f32 %v2827_v45, %v2739_v19  ;;  %2777 = vmatmul.bf16.gmra.mxu1 %v4729_v10  ;;  %v5283_v19 = vld [vmem:[#allocation2 + $0x16c] sm:$0xf]  ;;  %v4738_v10 = vld [vmem:[#allocation2 + $0x174] sm:$0xf0] }
 0x275   : > { %v2177_v26 = vpop.f32.mrf.mxu3 }
 0x276   : > { %v6443_v25 = vadd.f32 %v2177_v26, %v6259_v24  ;;  %v4741_v26 = vor.u32 %v5283_v19, %v4738_v10  ;;  %v6456_v58 = vpop.f32.mrf.mxu0 }
 0x278   : > { %2871 = vmatmul.bf16.gmra.mxu2 %v4745_v52  ;;  %v4928_v52 = vld [vmem:[#allocation2 + $0x78] sm:$0xf] }
 0x279   : > { %v2740_v45 = vpop.f32.mrf.mxu1 }
 0x27a   : > { %v6449_v43 = vadd.f32 %v2740_v45, %v2652_v3  ;;  %3344 = vmatmul.bf16.gmra.mxu3 %v4917_v34  ;;  %v5344_v3 = vld [vmem:[#allocation2 + $0x80] sm:$0xf0] }
 0x27b   : > { %3468 = vmatmul.bf16.gmra.mxu0 %v5005_v53  ;;  %v2832_v62 = vpop.f32.mrf.mxu2  ;;  %v4929_v49 = vor.u32 %v5344_v3, %v4928_v52  ;;  %v5364_v45 = vld [vmem:[#allocation2 + $0x124] sm:$0xf] }
 0x27d   : > { %v2180_v18 = vpop.f32.mrf.mxu3 }
 0x27e   : > { %v6452_v24 = vadd.f32 %v2180_v18, %v6269_v11  ;;  %v5457_v11 = vld [vmem:[%s6824_s5 + $0x18] sm:$0xff] }
 0x27f   : > { %3781 = vmatpush.bf16.msra.mxu2 %v5457_v11 }
 0x281   : > { %v2743_v31 = vpop.f32.mrf.mxu1 }
 0x282   : > { %v2744_v28 = vadd.f32 %v2743_v31, %v2655_v8  ;;  %v6472_v8 = vpop.f32.mrf.mxu0  ;;  %v4900_v31 = vld [vmem:[#allocation2 + $0x38] sm:$0xf] }
 0x283   : > { %v6460_v5 = vpop.f32.mrf.mxu2 }
 0x284   : > { %v6458_v1 = vadd.f32 %v2832_v62, %v2744_v28  ;;  %2782 = vmatmul.bf16.gmra.mxu1 %v4741_v26  ;;  %v5017_v62 = vor.u32 %v5364_v45, %v5014_v12  ;;  %v5336_v28 = vld [vmem:[#allocation2 + $0x40] sm:$0xf0]  ;;  %v4940_v12 = vld [vmem:[#allocation2 + $0x90] sm:$0xf]  ;;  %v5026_v45 = vld [vmem:[#allocation2 + $0x144] sm:$0xf0] }
 0x285   : > { %v2182_v27 = vpop.f32.mrf.mxu3 }
 0x286   : > { %v6466_v34 = vadd.f32 %v2182_v27, %v6279_v44  ;;  %v4901_v27 = vor.u32 %v5336_v28, %v4900_v31 }
 0x289   : > { %v2745_v53 = vpop.f32.mrf.mxu1 }
 0x28a   : > { %v6470_v18 = vadd.f32 %v2745_v53, %v2657_v33  ;;  %3349 = vmatmul.bf16.gmra.mxu3 %v4929_v49  ;;  %v5347_v33 = vld [vmem:[#allocation2 + $0x98] sm:$0xf0]  ;;  %v6486_v53 = vpop.f32.mrf.mxu0 }
 0x28b   : > { %3473 = vmatmul.bf16.gmra.mxu0 %v5017_v62  ;;  %v2837_v19 = vpop.f32.mrf.mxu2  ;;  %v4941_v9 = vor.u32 %v5347_v33, %v4940_v12 }
 0x28d   : > { %v2185_v10 = vpop.f32.mrf.mxu3 }
 0x28e   : > { %v6475_v44 = vadd.f32 %v2185_v10, %v6286_v29  ;;  %v5367_v29 = vld [vmem:[#allocation2 + $0x13c] sm:$0xf] }
 0x291   : > { %v2748_v23 = vpop.f32.mrf.mxu1 }
 0x292   : > { %v2749_v26 = vadd.f32 %v2748_v23, %v2660_v57  ;;  %v5339_v23 = vld [vmem:[#allocation2 + $0x58] sm:$0xf0] }
 0x293   : > { %v6481_v3 = vpop.f32.mrf.mxu2 }
 0x294   : > { %v6479_v52 = vadd.f32 %v2837_v19, %v2749_v26  ;;  %3512 = vmatmul.bf16.vlgmr.msra.gmra.mxu1 %v4901_v27  ;;  %v5029_v19 = vor.u32 %v5367_v29, %v5026_v45  ;;  %v2665_v26 = vadd.f32 %v6296_v16, %v6432_v51  ;;  %v4952_v45 = vld [vmem:[#allocation2 + $0xa8] sm:$0xf]  ;;  %v5370_v16 = vld [vmem:[#allocation2 + $0x154] sm:$0xf]  ;;  %v5038_v51 = vld [vmem:[#allocation2 + $0x15c] sm:$0xf0] }
 0x295   : > { %v2187_v11 = vpop.f32.mrf.mxu3 }
 0x296   : > { %v6484_v49 = vadd.f32 %v2187_v11, %v6294_v35  ;;  %v4912_v35 = vld [vmem:[#allocation2 + $0x50] sm:$0xf]  ;;  %v6497_v11 = vpop.f32.mrf.mxu0 }
 0x297   : > { %v4913_v6 = vor.u32 %v5339_v23, %v4912_v35 }
 0x299   : > { %v2750_v62 = vpop.f32.mrf.mxu1 }
 0x29a   : > { %v6490_v10 = vadd.f32 %v2750_v62, %v2662_v40  ;;  %3354 = vmatmul.bf16.gmra.mxu3 %v4941_v9  ;;  %v5350_v40 = vld [vmem:[#allocation2 + $0xb0] sm:$0xf0]  ;;  %v2667_v62 = vadd.f32 %v6311_v46, %v6443_v25 }
 0x29b   : > { %3478 = vmatmul.bf16.gmra.mxu0 %v5029_v19  ;;  %v2842_v31 = vpop.f32.mrf.mxu2  ;;  %v4953_v19 = vor.u32 %v5350_v40, %v4952_v45 }
 0x29d   : > { %v2190_v28 = vpop.f32.mrf.mxu3 }
 0x29e   : > { %v6493_v57 = vadd.f32 %v2190_v28, %v6166_v59  ;;  %v5456_v59 = vld [vmem:[%s6824_s5 + $0x10] sm:$0xff]  ;;  %v5041_v28 = vor.u32 %v5370_v16, %v5038_v51  ;;  %v6513_v23 = vpop.f32.mrf.mxu0  ;;  %v4964_v51 = vld [vmem:[#allocation2 + $0xc0] sm:$0xf] }
 0x29f   : > { %3782 = vmatpush.bf16.msra.mxu2 %v5456_v59 }
 0x2a1   : > { %v2753_v27 = vpop.f32.mrf.mxu1 }
 0x2a2   : > { %v2754_v39 = vadd.f32 %v2753_v27, %v2665_v26 }
 0x2a3   : > { %v6501_v33 = vpop.f32.mrf.mxu2 }
 0x2a4   : > { %v6499_v12 = vadd.f32 %v2842_v31, %v2754_v39  ;;  %3517 = vmatmul.bf16.gmra.mxu1 %v4913_v6  ;;  %v4924_v39 = vld [vmem:[#allocation2 + $0x68] sm:$0xf]  ;;  %v5342_v6 = vld [vmem:[#allocation2 + $0x70] sm:$0xf0] }
 0x2a5   : > { %v2192_v29 = vpop.f32.mrf.mxu3  ;;  %v4925_v45 = vor.u32 %v5342_v6, %v4924_v39 }
 0x2a6   : > { %v6507_v9 = vadd.f32 %v2192_v29, %v6173_v14  ;;  %v2670_v29 = vadd.f32 %v6323_v13, %v6452_v24  ;;  %v2672_v13 = vadd.f32 %v6337_v22, %v6466_v34 }
 0x2a9   : > { %v2755_v31 = vpop.f32.mrf.mxu1 }
 0x2aa   : > { %v6511_v35 = vadd.f32 %v2755_v31, %v2667_v62  ;;  %3359 = vmatmul.bf16.gmra.mxu3 %v4953_v19  ;;  %v5353_v62 = vld [vmem:[#allocation2 + $0xc8] sm:$0xf0]  ;;  %v6839_v19 = vld [vmem:[#allocation3_spill] sm:$0xff] }
 0x2ab   : > { %3483 = vmatmul.bf16.gmra.mxu0 %v5041_v28  ;;  %v2847_v26 = vpop.f32.mrf.mxu2  ;;  %v5050_v28 = vld [vmem:[#allocation2 + $0x174] sm:$0xf0]  ;;  %v4965_v24 = vor.u32 %v5353_v62, %v4964_v51 }
 0x2ad   : > { %v2195_v27 = vpop.f32.mrf.mxu3 }
 0x2ae   : > { %v6516_v14 = vadd.f32 %v2195_v27, %v6183_v36  ;;  %v5373_v36 = vld [vmem:[#allocation2 + $0x16c] sm:$0xf]  ;;  %v6527_v27 = vpop.f32.mrf.mxu0 }
 0x2b1   : > { %v2758_v46 = vpop.f32.mrf.mxu1 }
 0x2b2   : > { %v2759_v25 = vadd.f32 %v2758_v46, %v2670_v29 }
 0x2b3   : > { %v6522_v59 = vpop.f32.mrf.mxu2 }
 0x2b4   : > { %v6520_v40 = vadd.f32 %v2847_v26, %v2759_v25  ;;  %3522 = vmatmul.bf16.gmra.mxu1 %v4925_v45  ;;  %6838 = vst [vmem:[#allocation10_spill] sm:$0xff] %v6522_v59  ;;  %v5053_v26 = vor.u32 %v5373_v36, %v5050_v28  ;;  %v6841_v25 = vld [vmem:[#allocation4_spill] sm:$0xff]  ;;  %v2675_v59 = vadd.f32 %v6349_v0, %v6475_v44  ;;  %v5376_v0 = vld [vmem:[#allocation2 + $0x184] sm:$0xf]  ;;  %v5062_v44 = vld [vmem:[#allocation2 + $0x18c] sm:$0xf0] }
 0x2b5   : > { %v2197_v16 = vpop.f32.mrf.mxu3 }
 0x2b6   : > { %6837 = vst [vmem:[#allocation9_spill] sm:$0xff] %v6520_v40  ;;  %v6525_v31 = vadd.f32 %v2197_v16, %v6839_v19  ;;  %v4936_v16 = vld [vmem:[#allocation2 + $0x80] sm:$0xf]  ;;  %v5345_v19 = vld [vmem:[#allocation2 + $0x88] sm:$0xf0]  ;;  %v6538_v40 = vpop.f32.mrf.mxu0 }
 0x2b7   : > { %v4937_v51 = vor.u32 %v5345_v19, %v4936_v16  ;;  %v5065_v16 = vor.u32 %v5376_v0, %v5062_v44  ;;  %v4988_v44 = vld [vmem:[#allocation2 + $0xf0] sm:$0xf] }
 0x2b9   : > { %v2760_v39 = vpop.f32.mrf.mxu1 }
 0x2ba   : > { %v6531_v6 = vadd.f32 %v2760_v39, %v2672_v13  ;;  %3364 = vmatmul.bf16.gmra.mxu3 %v4965_v24  ;;  %v4976_v13 = vld [vmem:[#allocation2 + $0xd8] sm:$0xf]  ;;  %v5356_v24 = vld [vmem:[#allocation2 + $0xe0] sm:$0xf0]  ;;  %v5455_v39 = vld [vmem:[%s6824_s5 + $0x8] sm:$0xff] }
 0x2bb   : > { %3488 = vmatmul.bf16.gmra.mxu0 %v5053_v26  ;;  %v2852_v29 = vpop.f32.mrf.mxu2  ;;  %v6844_v26 = vld [vmem:[#allocation5_spill] sm:$0xff]  ;;  %3783 = vmatpush.bf16.msra.mxu2 %v5455_v39  ;;  %v2680_v39 = vadd.f32 %v6381_v63, %v6493_v57 }
 0x2bc   : > { %6840 = vst [vmem:[#allocation3_spill] sm:$0xff] %v6531_v6 }
 0x2bd   : > { %v2200_v46 = vpop.f32.mrf.mxu3 }
 0x2be   : > { %v6534_v45 = vadd.f32 %v2200_v46, %v6841_v25 }
 0x2c1   : > { %v2763_v22 = vpop.f32.mrf.mxu1 }
 0x2c2   : > { %v2764_v34 = vadd.f32 %v2763_v22, %v2675_v59  ;;  %v2677_v59 = vadd.f32 %v6366_v37, %v6484_v49  ;;  %v6554_v22 = vpop.f32.mrf.mxu0 }
 0x2c3   : > { %v6542_v36 = vpop.f32.mrf.mxu2 }
 0x2c4   : > { %v6540_v62 = vadd.f32 %v2852_v29, %v2764_v34  ;;  %3527 = vmatmul.bf16.gmra.mxu1 %v4937_v51  ;;  %6843 = vst [vmem:[#allocation11_spill] sm:$0xff] %v6542_v36  ;;  %v4977_v29 = vor.u32 %v5356_v24, %v4976_v13  ;;  %v6846_v36 = vld [vmem:[#allocation6_spill] sm:$0xff] }
 0x2c5   : > { %v2202_v28 = vpop.f32.mrf.mxu3 }
 0x2c6   : > { %6842 = vst [vmem:[#allocation4_spill] sm:$0xff] %v6540_v62  ;;  %v6548_v46 = vadd.f32 %v2202_v28, %v6844_v26  ;;  %v4948_v26 = vld [vmem:[#allocation2 + $0x98] sm:$0xf]  ;;  %v5348_v62 = vld [vmem:[#allocation2 + $0xa0] sm:$0xf0] }
 0x2c7   : > { %v4949_v49 = vor.u32 %v5348_v62, %v4948_v26  ;;  %v5351_v62 = vld [vmem:[#allocation2 + $0xb8] sm:$0xf0] }
 0x2c9   : > { %v2765_v25 = vpop.f32.mrf.mxu1 }
 0x2ca   : > { %v6552_v19 = vadd.f32 %v2765_v25, %v2677_v59  ;;  %3369 = vmatmul.bf16.gmra.mxu3 %v4977_v29  ;;  %v5359_v59 = vld [vmem:[#allocation2 + $0xf8] sm:$0xf0]  ;;  %v6847_v29 = vld [vmem:[#allocation7_spill] sm:$0xff] }
 0x2cb   : > { %3493 = vmatmul.bf16.gmra.mxu0 %v5065_v16  ;;  %v2857_v34 = vpop.f32.mrf.mxu2  ;;  %v4989_v16 = vor.u32 %v5359_v59, %v4988_v44  ;;  %v5362_v44 = vld [vmem:[#allocation2 + $0x110] sm:$0xf0]  ;;  %v5454_v59 = vld [vmem:[%s6824_s5] sm:$0xff] }
 0x2cc   : > { %6845 = vst [vmem:[#allocation5_spill] sm:$0xff] %v6552_v19  ;;  %3784 = vmatpush.bf16.msra.mxu2 %v5454_v59 }
 0x2cd   : > { %v2205_v51 = vpop.f32.mrf.mxu3 }
 0x2ce   : > { %v2206_v28 = vadd.f32 %v2205_v51, %v6846_v36  ;;  %v2682_v36 = vadd.f32 %v6392_v4, %v6507_v9  ;;  %v5000_v9 = vld [vmem:[#allocation2 + $0x108] sm:$0xf] }
 0x2d1   : > { %v2768_v6 = vpop.f32.mrf.mxu1 }
 0x2d2   : > { %v2769_v37 = vadd.f32 %v2768_v6, %v2680_v39  ;;  %v4960_v6 = vld [vmem:[#allocation2 + $0xb0] sm:$0xf] }
 0x2d3   : > { %v6561_v24 = vpop.f32.mrf.mxu2 }
 0x2d4   : > { %v6559_v13 = vadd.f32 %v2857_v34, %v2769_v37  ;;  %3532 = vmatmul.bf16.gmra.mxu1 %v4949_v49  ;;  %v2685_v34 = vadd.f32 %v6408_v32, %v6516_v14  ;;  %v4961_v37 = vor.u32 %v5351_v62, %v4960_v6  ;;  %v5001_v32 = vor.u32 %v5362_v44, %v5000_v9  ;;  %v5354_v6 = vld [vmem:[#allocation2 + $0xd0] sm:$0xf0]  ;;  %v5365_v9 = vld [vmem:[#allocation2 + $0x128] sm:$0xf0] }
 0x2d5   : > { %v2207_v0 = vpop.f32.mrf.mxu3  ;;  %v2690_v62 = vadd.f32 %v6434_v7, %v6534_v45  ;;  %v2692_v44 = vadd.f32 %v6447_v15, %v6548_v46  ;;  %v4984_v45 = vld [vmem:[#allocation2 + $0xe0] sm:$0xf]  ;;  %v5024_v46 = vld [vmem:[#allocation2 + $0x138] sm:$0xf] }
 0x2d6   : > { %v2208_v25 = vadd.f32 %v2207_v0, %v6847_v29  ;;  %v2687_v29 = vadd.f32 %v6422_v48, %v6525_v31  ;;  %v5012_v31 = vld [vmem:[#allocation2 + $0x120] sm:$0xf] }
 0x2d7   : > { %v5013_v59 = vor.u32 %v5365_v9, %v5012_v31  ;;  %v5368_v31 = vld [vmem:[#allocation2 + $0x140] sm:$0xf0] }
 0x2d8   : > { %v2697_v9 = vadd.f32 %v6472_v8, %v2208_v25 }
 0x2d9   : > { %v2770_v51 = vpop.f32.mrf.mxu1 }
 0x2da   : > { %v6566_v19 = vadd.f32 %v2770_v51, %v2682_v36  ;;  %3374 = vmatmul.bf16.gmra.mxu3 %v4989_v16 }
 0x2db   : > { %v2862_v63 = vpop.f32.mrf.mxu2 }
 0x2dd   : > { %v3335_v57 = vpop.f32.mrf.mxu3 }
 0x2e1   : > { %v2773_v26 = vpop.f32.mrf.mxu1 }
 0x2e2   : > { %v2774_v39 = vadd.f32 %v2773_v26, %v2685_v34 }
 0x2e3   : > { %v6572_v0 = vpop.f32.mrf.mxu2 }
 0x2e4   : > { %v6570_v49 = vadd.f32 %v2862_v63, %v2774_v39  ;;  %3537 = vmatmul.bf16.gmra.mxu1 %v4961_v37  ;;  %v4972_v63 = vld [vmem:[#allocation2 + $0xc8] sm:$0xf] }
 0x2e5   : > { %v3337_v4 = vpop.f32.mrf.mxu3  ;;  %v4973_v39 = vor.u32 %v5354_v6, %v4972_v63  ;;  %v2695_v63 = vadd.f32 %v6456_v58, %v2206_v28  ;;  %v4996_v28 = vld [vmem:[#allocation2 + $0xf8] sm:$0xf] }
 0x2e9   : > { %v2775_v14 = vpop.f32.mrf.mxu1 }
 0x2ea   : > { %v6579_v36 = vadd.f32 %v2775_v14, %v2687_v29  ;;  %3379 = vmatmul.bf16.gmra.mxu3 %v5001_v32 }
 0x2eb   : > { %v2867_v51 = vpop.f32.mrf.mxu2 }
 0x2ed   : > { %v6581_v16 = vpop.f32.mrf.mxu3 }
 0x2f1   : > { %v2778_v34 = vpop.f32.mrf.mxu1 }
 0x2f2   : > { %v2779_v26 = vadd.f32 %v2778_v34, %v2690_v62 }
 0x2f3   : > { %v6591_v29 = vpop.f32.mrf.mxu2 }
 0x2f4   : > { %v6585_v37 = vadd.f32 %v2867_v51, %v2779_v26  ;;  %3542 = vmatmul.bf16.gmra.mxu1 %v4973_v39  ;;  %6848 = vst [vmem:[#allocation6_spill] sm:$0xff] %v6591_v29  ;;  %v5357_v51 = vld [vmem:[#allocation2 + $0xe8] sm:$0xf0]  ;;  %v6605_v29 = vpop.f32.mrf.mxu0 }
 0x2f5   : > { %v6587_v48 = vpop.f32.mrf.mxu3  ;;  %v4985_v34 = vor.u32 %v5357_v51, %v4984_v45  ;;  %v5360_v45 = vld [vmem:[#allocation2 + $0x100] sm:$0xf0] }
 0x2f9   : > { %v2780_v32 = vpop.f32.mrf.mxu1 }
 0x2fa   : > { %v6593_v14 = vadd.f32 %v2780_v32, %v2692_v44  ;;  %3384 = vmatmul.bf16.gmra.mxu3 %v5013_v59  ;;  %v5025_v44 = vor.u32 %v5368_v31, %v5024_v46  ;;  %v3427_v46 = vadd.f32 %v6497_v11, %v3337_v4  ;;  %v6852_v31 = vld [vmem:[#allocation8_spill] sm:$0xff] }
 0x2fb   : > { %v2872_v26 = vpop.f32.mrf.mxu2 }
 0x2fc   : > { %6849 = vst [vmem:[#allocation7_spill] sm:$0xff] %v6593_v14  ;;  %v6610_v8 = vpop.f32.mrf.mxu0 }
 0x2fd   : > { %v6595_v7 = vpop.f32.mrf.mxu3 }
 0x301   : > { %v2783_v6 = vpop.f32.mrf.mxu1 }
 0x302   : > { %v2784_v62 = vadd.f32 %v2783_v6, %v2695_v63  ;;  %v3425_v63 = vadd.f32 %v6486_v53, %v3335_v57  ;;  %v4997_v6 = vor.u32 %v5360_v45, %v4996_v28 }
 0x304   : > { %v6598_v39 = vadd.f32 %v2872_v26, %v2784_v62  ;;  %3547 = vmatmul.bf16.gmra.mxu1 %v4985_v34  ;;  %v5036_v34 = vld [vmem:[#allocation2 + $0x150] sm:$0xf]  ;;  %v5371_v26 = vld [vmem:[#allocation2 + $0x158] sm:$0xf0]  ;;  %v6624_v11 = vpop.f32.mrf.mxu0 }
 0x305   : > { %v6600_v15 = vpop.f32.mrf.mxu3 }
 0x306   : > { %6850 = vst [vmem:[#allocation12_spill] sm:$0xff] %v6598_v39 }
 0x309   : > { %v2785_v59 = vpop.f32.mrf.mxu1 }
 0x30a   : > { %v6603_v32 = vadd.f32 %v2785_v59, %v2697_v9  ;;  %3389 = vmatmul.bf16.gmra.mxu3 %v5025_v44  ;;  %v6619_v44 = vld [vmem:[%s6823_s4] ss:$0 sm:$0xff]  ;;  %v5037_v59 = vor.u32 %v5371_v26, %v5036_v34  ;;  %v3430_v34 = vadd.f32 %v6513_v23, %v6581_v16 }
 0x30c   : > { %6851 = vst [vmem:[#allocation13_spill] sm:$0xff] %v6603_v32 }
 0x30d   : > { %v6607_v58 = vpop.f32.mrf.mxu3 }
 0x311   : > { %v3513_v51 = vpop.f32.mrf.mxu1 }
 0x312   : > { %v3514_v62 = vadd.f32 %v3513_v51, %v3425_v63  ;;  %v5008_v63 = vld [vmem:[#allocation2 + $0x110] sm:$0xf] }
 0x314   : > { %3552 = vmatmul.bf16.gmra.mxu1 %v4997_v6  ;;  %v3593_v9 = vadd.f32 %v3514_v62, %v6852_v31  ;;  %v5363_v6 = vld [vmem:[#allocation2 + $0x118] sm:$0xf0] }
 0x315   : > { %v6612_v25 = vpop.f32.mrf.mxu3 }
 0x316   : > { %v3629_v28 = vadd.f32 %v6619_v44, %v3593_v9  ;;  %v5374_v9 = vld [vmem:[#allocation2 + $0x170] sm:$0xf0] }
 0x318   : > { %v3661_v4 = vmax.f32 %v3629_v28, 0.0 }
 0x319   : > { %v3515_v53 = vpop.f32.mrf.mxu1 }
 0x31a   : > { %v3516_v57 = vadd.f32 %v3515_v53, %v3427_v46  ;;  %3394 = vmatmul.bf16.gmra.mxu3 %v5037_v59  ;;  %v5009_v46 = vor.u32 %v5363_v6, %v5008_v63  ;;  %v3432_v53 = vadd.f32 %v6527_v27, %v6587_v48  ;;  %v5020_v63 = vld [vmem:[#allocation2 + $0x128] sm:$0xf]  ;;  %v5366_v6 = vld [vmem:[#allocation2 + $0x130] sm:$0xf0] }
 0x31c   : > { %v3594_v45 = vadd.f32 %v3516_v57, %v6318_v42  ;;  %v5048_v42 = vld [vmem:[#allocation2 + $0x168] sm:$0xf] }
 0x31d   : > { %v6626_v31 = vpop.f32.mrf.mxu3  ;;  %v5049_v28 = vor.u32 %v5374_v9, %v5048_v42  ;;  %v3437_v42 = vadd.f32 %v6554_v22, %v6600_v15 }
 0x31e   : > { %v3630_v51 = vadd.f32 %v6619_v44, %v3594_v45 }
 0x320   : > { %v3662_v62 = vmax.f32 %v3630_v51, 0.0  ;;  %v6633_v51 = vpop.f32.mrf.mxu0 }
 0x321   : > { %v3518_v32 = vpop.f32.mrf.mxu1 }
 0x322   : > { %v3693_v26 = vpack.c.bf16 %v3662_v62, %v3661_v4  ;;  %v3519_v59 = vadd.f32 %v3518_v32, %v3430_v34  ;;  %v5021_v62 = vor.u32 %v5366_v6, %v5020_v63  ;;  %v5369_v63 = vld [vmem:[#allocation2 + $0x148] sm:$0xf0] }
 0x324   : > { %3557 = vmatmul.bf16.gmra.mxu1 %v5009_v46  ;;  %3785 = vmatmul.bf16.vlgmr.msra.gmra.mxu2 %v3693_v26  ;;  %v3595_v57 = vadd.f32 %v3519_v59, %v6327_v2  ;;  %v3435_v2 = vadd.f32 %v6538_v40, %v6595_v7 }
 0x325   : > { %v6635_v14 = vpop.f32.mrf.mxu3 }
 0x326   : > { %v3631_v23 = vadd.f32 %v6619_v44, %v3595_v57 }
 0x328   : > { %v3663_v4 = vmax.f32 %v3631_v23, 0.0  ;;  %v6642_v26 = vpop.f32.mrf.mxu0 }
 0x329   : > { %v3520_v45 = vpop.f32.mrf.mxu1 }
 0x32a   : > { %v3521_v39 = vadd.f32 %v3520_v45, %v3432_v53  ;;  %3399 = vmatmul.bf16.gmra.mxu3 %v5049_v28 }
 0x32c   : > { %v3596_v16 = vadd.f32 %v3521_v39, %v6339_v21  ;;  %v5060_v21 = vld [vmem:[#allocation2 + $0x180] sm:$0xf]  ;;  %v5377_v39 = vld [vmem:[#allocation2 + $0x188] sm:$0xf0] }
 0x32d   : > { %v6644_v59 = vpop.f32.mrf.mxu3  ;;  %v5061_v53 = vor.u32 %v5377_v39, %v5060_v21 }
 0x32e   : > { %v3632_v32 = vadd.f32 %v6619_v44, %v3596_v16 }
 0x330   : > { %v3664_v27 = vmax.f32 %v3632_v32, 0.0  ;;  %v6651_v45 = vpop.f32.mrf.mxu0  ;;  %v5032_v32 = vld [vmem:[#allocation2 + $0x140] sm:$0xf] }
 0x331   : > { %v3523_v48 = vpop.f32.mrf.mxu1 }
 0x332   : > { %v3694_v34 = vpack.c.bf16 %v3664_v27, %v3663_v4  ;;  %v3524_v46 = vadd.f32 %v3523_v48, %v3435_v2  ;;  %v5033_v4 = vor.u32 %v5369_v63, %v5032_v32  ;;  %v3442_v2 = vadd.f32 %v6610_v8, %v6612_v25  ;;  %v5072_v63 = vld [vmem:[#allocation2 + $0x198] sm:$0xf] }
 0x333   : > { %v3445_v8 = vadd.f32 %v6624_v11, %v6626_v31 }
 0x334   : > { %3562 = vmatmul.bf16.gmra.mxu1 %v5021_v62  ;;  %3790 = vmatmul.bf16.gmra.mxu2 %v3694_v34  ;;  %v3597_v9 = vadd.f32 %v3524_v46, %v6351_v56  ;;  %v3440_v56 = vadd.f32 %v6605_v29, %v6607_v58 }
 0x335   : > { %v6654_v16 = vpop.f32.mrf.mxu3 }
 0x336   : > { %v3633_v40 = vadd.f32 %v6619_v44, %v3597_v9  ;;  %v5372_v9 = vld [vmem:[#allocation2 + $0x160] sm:$0xf0] }
 0x338   : > { %v3665_v6 = vmax.f32 %v3633_v40, 0.0 }
 0x339   : > { %v3525_v57 = vpop.f32.mrf.mxu1 }
 0x33a   : > { %v3526_v28 = vadd.f32 %v3525_v57, %v3437_v42  ;;  %3404 = vmatmul.bf16.gmra.mxu3 %v5061_v53  ;;  %v5044_v42 = vld [vmem:[#allocation2 + $0x158] sm:$0xf] }
 0x33c   : > { %v3598_v7 = vadd.f32 %v3526_v28, %v6364_v30  ;;  %v6658_v30 = vpop.f32.mrf.mxu0 }
 0x33d   : > { %v6663_v34 = vpop.f32.mrf.mxu3 }
 0x33e   : > { %v3634_v23 = vadd.f32 %v6619_v44, %v3598_v7 }
 0x340   : > { %v3666_v22 = vmax.f32 %v3634_v23, 0.0 }
 0x341   : > { %v3528_v15 = vpop.f32.mrf.mxu1 }
 0x342   : > { %v3695_v27 = vpack.c.bf16 %v3666_v22, %v3665_v6  ;;  %v3529_v48 = vadd.f32 %v3528_v15, %v3440_v56  ;;  %v5380_v6 = vld [vmem:[#allocation2 + $0x1a0] sm:$0xf0]  ;;  %v2820_v56 = vadd.f32 %v6396_v50, %v6406_v41  ;;  %v3450_v50 = vadd.f32 %v6642_v26, %v6644_v59 }
 0x343   : > { %v5073_v15 = vor.u32 %v5380_v6, %v5072_v63 }
 0x344   : > { %3567 = vmatmul.bf16.gmra.mxu1 %v5033_v4  ;;  %3795 = vmatmul.bf16.gmra.mxu2 %v3695_v27  ;;  %v3599_v62 = vadd.f32 %v3529_v48, %v6373_v47  ;;  %v3456_v40 = vpop.f32.mrf.mxu0  ;;  %v5045_v47 = vor.u32 %v5372_v9, %v5044_v42 }
 0x345   : > { %v3367_v7 = vpop.f32.mrf.mxu3 }
 0x346   : > { %v3635_v39 = vadd.f32 %v6619_v44, %v3599_v62  ;;  %v5056_v62 = vld [vmem:[#allocation2 + $0x170] sm:$0xf] }
 0x348   : > { %v3667_v53 = vmax.f32 %v3635_v39, 0.0 }
 0x349   : > { %v3530_v46 = vpop.f32.mrf.mxu1 }
 0x34a   : > { %v3531_v21 = vadd.f32 %v3530_v46, %v3442_v2  ;;  %3409 = vmatmul.bf16.gmra.mxu3 %v5073_v15  ;;  %v5379_v46 = vld [vmem:[#allocation2 + $0x19c] sm:$0xf] }
 0x34c   : > { %v3600_v29 = vadd.f32 %v3531_v21, %v6385_v17  ;;  %v3447_v17 = vadd.f32 %v6633_v51, %v6635_v14  ;;  %v3459_v11 = vpop.f32.mrf.mxu0  ;;  %v5375_v14 = vld [vmem:[#allocation2 + $0x178] sm:$0xf0]  ;;  %v5074_v21 = vld [vmem:[#allocation2 + $0x1a4] sm:$0xf0] }
 0x34d   : > { %v3370_v48 = vpop.f32.mrf.mxu3  ;;  %v5057_v41 = vor.u32 %v5375_v14, %v5056_v62 }
 0x34e   : > { %v3636_v58 = vadd.f32 %v6619_v44, %v3600_v29  ;;  %v5077_v29 = vor.u32 %v5379_v46, %v5074_v21  ;;  %v5080_v46 = vld [vmem:[#allocation2 + $0x1a0] sm:$0xf] }
 0x350   : > { %v3668_v57 = vmax.f32 %v3636_v58, 0.0  ;;  %3498 = vmatmul.bf16.gmra.mxu0 %v5077_v29 }
 0x351   : > { %v3533_v28 = vpop.f32.mrf.mxu1 }
 0x352   : > { %v3696_v25 = vpack.c.bf16 %v3668_v57, %v3667_v53  ;;  %v3534_v23 = vadd.f32 %v3533_v28, %v3445_v8  ;;  %v3452_v57 = vadd.f32 %v6651_v45, %v6654_v16 }
 0x354   : > { %3572 = vmatmul.bf16.gmra.mxu1 %v5045_v47  ;;  %3800 = vmatmul.bf16.gmra.mxu2 %v3696_v25  ;;  %v3601_v32 = vadd.f32 %v3534_v23, %v6394_v60  ;;  %v3461_v9 = vpop.f32.mrf.mxu0  ;;  %v2825_v47 = vadd.f32 %v6417_v20, %v6429_v54  ;;  %v3457_v20 = vadd.f32 %v3456_v40, %v3367_v7 }
 0x355   : > { %v3372_v53 = vpop.f32.mrf.mxu3  ;;  %v3460_v7 = vadd.f32 %v3459_v11, %v3370_v48 }
 0x356   : > { %v3637_v31 = vadd.f32 %v6619_v44, %v3601_v32  ;;  %v5378_v32 = vld [vmem:[#allocation2 + $0x190] sm:$0xf0] }
 0x358   : > { %v3669_v51 = vmax.f32 %v3637_v31, 0.0 }
 0x359   : > { %v3535_v22 = vpop.f32.mrf.mxu1 }
 0x35a   : > { %v3536_v4 = vadd.f32 %v3535_v22, %v3447_v17  ;;  %v5068_v17 = vld [vmem:[#allocation2 + $0x188] sm:$0xf] }
 0x35b   : > { %v5069_v45 = vor.u32 %v5378_v32, %v5068_v17 }
 0x35c   : > { %v3602_v27 = vadd.f32 %v3536_v4, %v2820_v56  ;;  %v3464_v63 = vpop.f32.mrf.mxu0 }
 0x35d   : > { %v3375_v15 = vpop.f32.mrf.mxu3 }
 0x35e   : > { %v3638_v2 = vadd.f32 %v6619_v44, %v3602_v27  ;;  %v2830_v27 = vadd.f32 %v6440_v38, %v6449_v43  ;;  %v3462_v43 = vadd.f32 %v3461_v9, %v3372_v53  ;;  %v3465_v17 = vadd.f32 %v3464_v63, %v3375_v15  ;;  %v6703_v63 = vpop.f32.mrf.mxu2 }
 0x360   : > { %v3670_v60 = vmax.f32 %v3638_v2, 0.0 }
 0x361   : > { %v3538_v39 = vpop.f32.mrf.mxu1 }
 0x362   : > { %v3697_v58 = vpack.c.bf16 %v3670_v60, %v3669_v51  ;;  %v3539_v42 = vadd.f32 %v3538_v39, %v3450_v50 }
 0x364   : > { %3577 = vmatmul.bf16.gmra.mxu1 %v5057_v41  ;;  %3805 = vmatmul.bf16.gmra.mxu2 %v3697_v58  ;;  %v3603_v28 = vadd.f32 %v3539_v42, %v6415_v55  ;;  %v3455_v55 = vadd.f32 %v6658_v30, %v6663_v34  ;;  %v3466_v2 = vpop.f32.mrf.mxu0  ;;  %v5381_v30 = vld [vmem:[#allocation2 + $0x1a8] sm:$0xf0] }
 0x365   : > { %v3377_v14 = vpop.f32.mrf.mxu3  ;;  %v5081_v29 = vor.u32 %v5381_v30, %v5080_v46  ;;  %v2845_v46 = vadd.f32 %v6501_v33, %v6511_v35 }
 0x366   : > { %v3639_v26 = vadd.f32 %v6619_v44, %v3603_v28  ;;  %v3467_v53 = vadd.f32 %v3466_v2, %v3377_v14  ;;  %v6709_v14 = vld [vmem:[%s6825_s6] ss:$0 sm:$0xff] }
 0x368   : > { %v3671_v6 = vmax.f32 %v3639_v26, 0.0 }
 0x369   : > { %v3540_v8 = vpop.f32.mrf.mxu1 }
 0x36a   : > { %v3541_v25 = vadd.f32 %v3540_v8, %v3452_v57  ;;  %v2835_v57 = vadd.f32 %v6460_v5, %v6470_v18 }
 0x36c   : > { %v3604_v59 = vadd.f32 %v3541_v25, %v2825_v47  ;;  %v3469_v50 = vpop.f32.mrf.mxu0 }
 0x36d   : > { %v3380_v38 = vpop.f32.mrf.mxu3 }
 0x36e   : > { %v3640_v23 = vadd.f32 %v6619_v44, %v3604_v59 }
 0x370   : > { %v3672_v22 = vmax.f32 %v3640_v23, 0.0 }
 0x371   : > { %v3543_v56 = vpop.f32.mrf.mxu1 }
 0x372   : > { %v3698_v16 = vpack.c.bf16 %v3672_v22, %v3671_v6  ;;  %v3544_v4 = vadd.f32 %v3543_v56, %v3455_v55  ;;  %v2840_v22 = vadd.f32 %v6481_v3, %v6490_v10 }
 0x374   : > { %3582 = vmatmul.bf16.gmra.mxu1 %v5069_v45  ;;  %3810 = vmatmul.bf16.gmra.mxu2 %v3698_v16  ;;  %v3605_v54 = vadd.f32 %v3544_v4, %v6438_v61  ;;  %v3471_v25 = vpop.f32.mrf.mxu0 }
 0x375   : > { %v3382_v48 = vpop.f32.mrf.mxu3 }
 0x376   : > { %v3641_v51 = vadd.f32 %v6619_v44, %v3605_v54  ;;  %v3472_v3 = vadd.f32 %v3471_v25, %v3382_v48 }
 0x378   : > { %v3673_v21 = vmax.f32 %v3641_v51, 0.0  ;;  %v5463_v51 = vld [vmem:[%s5762_s22] sm:$0xff]  }
 0x379   : > { %v3545_v31 = vpop.f32.mrf.mxu1 }
 0x37a   : > { %v3546_v62 = vadd.f32 %v3545_v31, %v3457_v20  ;;  %v3470_v31 = vadd.f32 %v3469_v50, %v3380_v38 }
 0x37c   : > { %v3606_v60 = vadd.f32 %v3546_v62, %v2830_v27 }
 0x37d   : > { %v3385_v5 = vpop.f32.mrf.mxu3 }
 0x37e   : > { %v3642_v34 = vadd.f32 %v6619_v44, %v3606_v60 }
 0x380   : > { %v3674_v39 = vmax.f32 %v3642_v34, 0.0 }
 0x381   : > { %v3548_v40 = vpop.f32.mrf.mxu1 }
 0x382   : > { %v3699_v61 = vpack.c.bf16 %v3674_v39, %v3673_v21  ;;  %v3549_v41 = vadd.f32 %v3548_v40, %v3460_v7 }
 0x384   : > { %3587 = vmatmul.bf16.gmra.mxu1 %v5081_v29  ;;  %3815 = vmatmul.bf16.gmra.mxu2 %v3699_v61  ;;  %v3607_v58 = vadd.f32 %v3549_v41, %v6458_v1  ;;  %v3474_v1 = vpop.f32.mrf.mxu0  ;;  %v5464_v29 = vunpack.c.l.bf16 %v5463_v51  ;;  %v5465_v61 = vunpack.c.h.bf16 %v5463_v51 }
 0x385   : > { %v3387_v27 = vpop.f32.mrf.mxu3  ;;  %v3475_v35 = vadd.f32 %v3474_v1, %v3385_v5  ;;  %v6854_v1 = vld [vmem:[#allocation3_spill] sm:$0xff] }
 0x386   : > { %v3643_v8 = vadd.f32 %v6619_v44, %v3607_v58 }
 0x388   : > { %v3675_v26 = vmax.f32 %v3643_v8, 0.0 }
 0x389   : > { %v3550_v42 = vpop.f32.mrf.mxu1 }
 0x38a   : > { %v3551_v28 = vadd.f32 %v3550_v42, %v3462_v43 }
 0x38c   : > { %v3608_v47 = vadd.f32 %v3551_v28, %v2835_v57  ;;  %v3476_v54 = vpop.f32.mrf.mxu0 }
 0x38d   : > { %v3390_v7 = vpop.f32.mrf.mxu3 }
 0x38e   : > { %v3644_v11 = vadd.f32 %v6619_v44, %v3608_v47 }
 0x390   : > { %v3676_v59 = vmax.f32 %v3644_v11, 0.0 }
 0x391   : > { %v3553_v23 = vpop.f32.mrf.mxu1 }
 0x392   : > { %v3700_v32 = vpack.c.bf16 %v3676_v59, %v3675_v26  ;;  %v3554_v9 = vadd.f32 %v3553_v23, %v3465_v17  ;;  %v3477_v59 = vadd.f32 %v3476_v54, %v3387_v27  ;;  %v6853_v23 = vld [vmem:[#allocation9_spill] sm:$0xff] }
 0x394   : > { %3820 = vmatmul.bf16.gmra.mxu2 %v3700_v32  ;;  %v3609_v6 = vadd.f32 %v3554_v9, %v6479_v52  ;;  %v3479_v34 = vpop.f32.mrf.mxu0  ;;  %v5606_v32 = vld [vmem:[%s5762_s22 + $0x8] sm:$0xff]  }
 0x395   : > { %v3392_v48 = vpop.f32.mrf.mxu3 }
 0x396   : > { %v3645_v55 = vadd.f32 %v6619_v44, %v3609_v6 }
 0x398   : > { %v3677_v15 = vmax.f32 %v3645_v55, 0.0 }
 0x399   : > { %v3555_v18 = vpop.f32.mrf.mxu1 }
 0x39a   : > { %v3556_v56 = vadd.f32 %v3555_v18, %v3467_v53  ;;  %v6855_v53 = vld [vmem:[#allocation10_spill] sm:$0xff] }
 0x39b   : > { %v2850_v6 = vadd.f32 %v6855_v53, %v6854_v1 }
 0x39c   : > { %v3610_v45 = vadd.f32 %v3556_v56, %v2840_v22  ;;  %v3481_v25 = vpop.f32.mrf.mxu0  ;;  %v5468_v56 = vunpack.c.l.bf16 %v5606_v32 }
 0x39d   : > { %v3395_v27 = vpop.f32.mrf.mxu3 }
 0x39e   : > { %v3646_v16 = vadd.f32 %v6619_v44, %v3610_v45 }
 0x3a0   : > { %v3678_v4 = vmax.f32 %v3646_v16, 0.0  ;;  %v5469_v16 = vunpack.c.h.bf16 %v5606_v32 }
 0x3a1   : > { %v3558_v20 = vpop.f32.mrf.mxu1 }
 0x3a2   : > { %v3701_v52 = vpack.c.bf16 %v3678_v4, %v3677_v15  ;;  %v3559_v2 = vadd.f32 %v3558_v20, %v3470_v31 }
 0x3a4   : > { %3825 = vmatmul.bf16.gmra.mxu2 %v3701_v52  ;;  %v3611_v10 = vadd.f32 %v3559_v2, %v6499_v12  ;;  %v3484_v4 = vpop.f32.mrf.mxu0 }
 0x3a6   : > { %v3647_v21 = vadd.f32 %v6619_v44, %v3611_v10 }
 0x3a7   : > { %v3786_v62 = vpop.f32.mrf.mxu2 }
 0x3a8   : > { %v3787_v39 = vadd.f32 %v6709_v14, %v3786_v62  ;;  %v3679_v41 = vmax.f32 %v3647_v21, 0.0  ;;  %v3480_v62 = vadd.f32 %v3479_v34, %v3390_v7  ;;  %v3397_v34 = vpop.f32.mrf.mxu3 }
 0x3a9   : > { %v3560_v60 = vpop.f32.mrf.mxu1 }
 0x3aa   : > { %v3561_v30 = vadd.f32 %v3560_v60, %v3472_v3  ;;  %v3930_v38 = vadd.f32 %v5464_v29, %v3787_v39  ;;  %v3482_v39 = vadd.f32 %v3481_v25, %v3392_v48  ;;  %v6856_v29 = vld [vmem:[#allocation4_spill] sm:$0xff] }
 0x3ac   : > { %v3612_v40 = vadd.f32 %v3561_v30, %v2845_v46  ;;  %v3962_v28 = vmax.f32 %v3930_v38, 0.0 }
 0x3ae   : > { %v3648_v12 = vadd.f32 %v6619_v44, %v3612_v40 }
 0x3af   : > { %v3788_v50 = vpop.f32.mrf.mxu2 }
 0x3b0   : > { %v3680_v43 = vmax.f32 %v3648_v12, 0.0  ;;  %v3789_v58 = vadd.f32 %v6709_v14, %v3788_v50  ;;  %v5607_v12 = vld [vmem:[%s5762_s22 + $0x10] sm:$0xff]   ;;  %v6857_v50 = vld [vmem:[#allocation5_spill] sm:$0xff] }
 0x3b1   : > { %v3563_v33 = vpop.f32.mrf.mxu1 }
 0x3b2   : > { %v3931_v42 = vadd.f32 %v5465_v61, %v3789_v58  ;;  %v3702_v57 = vpack.c.bf16 %v3680_v43, %v3679_v41  ;;  %v3564_v47 = vadd.f32 %v3563_v33, %v3475_v35  ;;  %v6858_v41 = vld [vmem:[#allocation11_spill] sm:$0xff]  ;;  %v3486_v43 = vpop.f32.mrf.mxu0  ;;  %v5472_v35 = vunpack.c.l.bf16 %v5607_v12 }
 0x3b3   : > { %v2855_v38 = vadd.f32 %v6858_v41, %v6857_v50 }
 0x3b4   : > { %v3963_v8 = vmax.f32 %v3931_v42, 0.0  ;;  %3830 = vmatmul.bf16.gmra.mxu2 %v3702_v57  ;;  %v3613_v17 = vadd.f32 %v3564_v47, %v6853_v23 }
 0x3b6   : > { %v5529_v11 = vpack.c.bf16 %v3963_v8, %v3962_v28  ;;  %v3649_v18 = vadd.f32 %v6619_v44, %v3613_v17  ;;  %v5473_v28 = vunpack.c.h.bf16 %v5607_v12 }
 0x3b7   : > { %v3791_v26 = vpop.f32.mrf.mxu2 }
 0x3b8   : > { %5530 = vst [vmem:[%s6723_s21] sm:$0xff] %v5529_v11   ;;  %v3792_v22 = vadd.f32 %v6709_v14, %v3791_v26  ;;  %v3681_v20 = vmax.f32 %v3649_v18, 0.0 }
 0x3b9   : > { %v3565_v9 = vpop.f32.mrf.mxu1 }
 0x3ba   : > { %v3566_v5 = vadd.f32 %v3565_v9, %v3477_v59  ;;  %v3932_v54 = vadd.f32 %v5468_v56, %v3792_v22  ;;  %v3485_v59 = vadd.f32 %v3484_v4, %v3395_v27  ;;  %v3489_v32 = vpop.f32.mrf.mxu0  ;;  %v3487_v22 = vadd.f32 %v3486_v43, %v3397_v34  ;;  %v5609_v43 = vld [vmem:[%s5762_s22 + $0x20] sm:$0xff]  }
 0x3bb   : > { %v2865_v34 = vadd.f32 %v6572_v0, %v6579_v36 }
 0x3bc   : > { %v3614_v55 = vadd.f32 %v3566_v5, %v2850_v6  ;;  %v3964_v51 = vmax.f32 %v3932_v54, 0.0  ;;  %v3400_v6 = vpop.f32.mrf.mxu3 }
 0x3be   : > { %v3650_v45 = vadd.f32 %v6619_v44, %v3614_v55  ;;  %v5608_v55 = vld [vmem:[%s5762_s22 + $0x18] sm:$0xff]  }
 0x3bf   : > { %v3793_v15 = vpop.f32.mrf.mxu2  ;;  %v5476_v54 = vunpack.c.l.bf16 %v5608_v55 }
 0x3c0   : > { %v3682_v31 = vmax.f32 %v3650_v45, 0.0  ;;  %v3794_v52 = vadd.f32 %v6709_v14, %v3793_v15 }
 0x3c1   : > { %v3568_v2 = vpop.f32.mrf.mxu1 }
 0x3c2   : > { %v3933_v3 = vadd.f32 %v5469_v16, %v3794_v52  ;;  %v3703_v10 = vpack.c.bf16 %v3682_v31, %v3681_v20  ;;  %v3569_v46 = vadd.f32 %v3568_v2, %v3480_v62  ;;  %v2860_v16 = vadd.f32 %v6561_v24, %v6566_v19  ;;  %v3491_v52 = vpop.f32.mrf.mxu0 }
 0x3c3   : > { %v5477_v2 = vunpack.c.h.bf16 %v5608_v55  ;;  %v3490_v24 = vadd.f32 %v3489_v32, %v3400_v6  ;;  %v6859_v55 = vld [vmem:[#allocation7_spill] sm:$0xff] }
 0x3c4   : > { %v3965_v60 = vmax.f32 %v3933_v3, 0.0  ;;  %3835 = vmatmul.bf16.gmra.mxu2 %v3703_v10  ;;  %v3615_v40 = vadd.f32 %v3569_v46, %v6856_v29  ;;  %v3402_v62 = vpop.f32.mrf.mxu3 }
 0x3c5   : > { %v3492_v50 = vadd.f32 %v3491_v52, %v3402_v62 }
 0x3c6   : > { %v5534_v30 = vpack.c.bf16 %v3965_v60, %v3964_v51  ;;  %v3651_v7 = vadd.f32 %v6619_v44, %v3615_v40 }
 0x3c7   : > { %v3796_v21 = vpop.f32.mrf.mxu2 }
 0x3c8   : > { %5621 = vst [vmem:[%s6723_s21 + $0x8] sm:$0xff] %v5534_v30   ;;  %v3797_v33 = vadd.f32 %v6709_v14, %v3796_v21  ;;  %v3683_v47 = vmax.f32 %v3651_v7, 0.0 }
 0x3c9   : > { %v3570_v61 = vpop.f32.mrf.mxu1 }
 0x3ca   : > { %v3571_v58 = vadd.f32 %v3570_v61, %v3482_v39  ;;  %v3934_v25 = vadd.f32 %v5472_v35, %v3797_v33  ;;  %v3494_v61 = vpop.f32.mrf.mxu0 }
 0x3cc   : > { %v3616_v42 = vadd.f32 %v3571_v58, %v2855_v38  ;;  %v3966_v9 = vmax.f32 %v3934_v25, 0.0  ;;  %v3405_v38 = vpop.f32.mrf.mxu3 }
 0x3cd   : > { %v3495_v0 = vadd.f32 %v3494_v61, %v3405_v38 }
 0x3ce   : > { %v3652_v57 = vadd.f32 %v6619_v44, %v3616_v42  ;;  %v5480_v42 = vunpack.c.l.bf16 %v5609_v43 }
 0x3cf   : > { %v3798_v8 = vpop.f32.mrf.mxu2 }
 0x3d0   : > { %v3684_v11 = vmax.f32 %v3652_v57, 0.0  ;;  %v3799_v48 = vadd.f32 %v6709_v14, %v3798_v8  ;;  %v5481_v8 = vunpack.c.h.bf16 %v5609_v43  ;;  %v5611_v43 = vld [vmem:[%s5762_s22 + $0x30] sm:$0xff]  }
 0x3d1   : > { %v3573_v26 = vpop.f32.mrf.mxu1 }
 0x3d2   : > { %v3935_v23 = vadd.f32 %v5473_v28, %v3799_v48  ;;  %v3704_v17 = vpack.c.bf16 %v3684_v11, %v3683_v47  ;;  %v3574_v53 = vadd.f32 %v3573_v26, %v3485_v59 }
 0x3d4   : > { %v3967_v1 = vmax.f32 %v3935_v23, 0.0  ;;  %3840 = vmatmul.bf16.gmra.mxu2 %v3704_v17  ;;  %v3617_v56 = vadd.f32 %v3574_v53, %v6559_v13  ;;  %v3496_v23 = vpop.f32.mrf.mxu0  ;;  %v3407_v17 = vpop.f32.mrf.mxu3 }
 0x3d6   : > { %v5539_v5 = vpack.c.bf16 %v3967_v1, %v3966_v9  ;;  %v3653_v4 = vadd.f32 %v6619_v44, %v3617_v56 }
 0x3d7   : > { %v3801_v18 = vpop.f32.mrf.mxu2 }
 0x3d8   : > { %5622 = vst [vmem:[%s6723_s21 + $0x10] sm:$0xff] %v5539_v5   ;;  %v3802_v20 = vadd.f32 %v6709_v14, %v3801_v18  ;;  %v3685_v10 = vmax.f32 %v3653_v4, 0.0  ;;  %v3497_v5 = vadd.f32 %v3496_v23, %v3407_v17 }
 0x3d9   : > { %v3575_v45 = vpop.f32.mrf.mxu1 }
 0x3da   : > { %v3576_v15 = vadd.f32 %v3575_v45, %v3487_v22  ;;  %v3936_v13 = vadd.f32 %v5476_v54, %v3802_v20  ;;  %v5610_v22 = vld [vmem:[%s5762_s22 + $0x28] sm:$0xff]  }
 0x3db   : > { %v6860_v45 = vld [vmem:[#allocation6_spill] sm:$0xff]  ;;  %v5484_v52 = vunpack.c.l.bf16 %v5610_v22  ;;  %v5485_v62 = vunpack.c.h.bf16 %v5610_v22 }
 0x3dc   : > { %v3618_v31 = vadd.f32 %v3576_v15, %v2860_v16  ;;  %v3968_v21 = vmax.f32 %v3936_v13, 0.0  ;;  %v2870_v16 = vadd.f32 %v6860_v45, %v6859_v55  ;;  %v3410_v4 = vpop.f32.mrf.mxu3  ;;  %v3499_v20 = vpop.f32.mrf.mxu0 }
 0x3de   : > { %v3654_v27 = vadd.f32 %v6619_v44, %v3618_v31 }
 0x3df   : > { %v3803_v3 = vpop.f32.mrf.mxu2 }
 0x3e0   : > { %v3686_v51 = vmax.f32 %v3654_v27, 0.0  ;;  %v3804_v60 = vadd.f32 %v6709_v14, %v3803_v3  ;;  %v3500_v3 = vadd.f32 %v3499_v20, %v3410_v4 }
 0x3e1   : > { %v3578_v19 = vpop.f32.mrf.mxu1 }
 0x3e2   : > { %v3937_v46 = vadd.f32 %v5477_v2, %v3804_v60  ;;  %v3705_v30 = vpack.c.bf16 %v3686_v51, %v3685_v10  ;;  %v3579_v29 = vadd.f32 %v3578_v19, %v3490_v24 }
 0x3e4   : > { %v3969_v39 = vmax.f32 %v3937_v46, 0.0  ;;  %3845 = vmatmul.bf16.gmra.mxu2 %v3705_v30  ;;  %v3619_v41 = vadd.f32 %v3579_v29, %v6570_v49  ;;  %v3412_v29 = vpop.f32.mrf.mxu3 }
 0x3e6   : > { %v5544_v40 = vpack.c.bf16 %v3969_v39, %v3968_v21  ;;  %v3655_v33 = vadd.f32 %v6619_v44, %v3619_v41  ;;  %v6861_v41 = vld [vmem:[#allocation12_spill] sm:$0xff] }
 0x3e7   : > { %v3806_v12 = vpop.f32.mrf.mxu2 }
 0x3e8   : > { %5623 = vst [vmem:[%s6723_s21 + $0x18] sm:$0xff] %v5544_v40   ;;  %v3807_v35 = vadd.f32 %v6709_v14, %v3806_v12  ;;  %v3687_v25 = vmax.f32 %v3655_v33, 0.0  ;;  %v3501_v40 = vpop.f32.mrf.mxu0 }
 0x3e9   : > { %v3580_v58 = vpop.f32.mrf.mxu1 }
 0x3ea   : > { %v3581_v7 = vadd.f32 %v3580_v58, %v3492_v50  ;;  %v3938_v11 = vadd.f32 %v5480_v42, %v3807_v35  ;;  %v3502_v50 = vadd.f32 %v3501_v40, %v3412_v29 }
 0x3ec   : > { %v3620_v57 = vadd.f32 %v3581_v7, %v2865_v34  ;;  %v3970_v32 = vmax.f32 %v3938_v11, 0.0  ;;  %v6862_v34 = vld [vmem:[#allocation13_spill] sm:$0xff] }
 0x3ed   : > { %v2875_v7 = vadd.f32 %v6703_v63, %v6862_v34 }
 0x3ee   : > { %v3656_v28 = vadd.f32 %v6619_v44, %v3620_v57  ;;  %v5488_v57 = vunpack.c.l.bf16 %v5611_v43 }
 0x3ef   : > { %v3808_v47 = vpop.f32.mrf.mxu2 }
 0x3f0   : > { %v3688_v49 = vmax.f32 %v3656_v28, 0.0  ;;  %v3809_v48 = vadd.f32 %v6709_v14, %v3808_v47  ;;  %v5489_v47 = vunpack.c.h.bf16 %v5611_v43 }
 0x3f1   : > { %v3583_v26 = vpop.f32.mrf.mxu1 }
 0x3f2   : > { %v3939_v36 = vadd.f32 %v5481_v8, %v3809_v48  ;;  %v3706_v59 = vpack.c.bf16 %v3688_v49, %v3687_v25  ;;  %v3584_v1 = vadd.f32 %v3583_v26, %v3495_v0 }
 0x3f4   : > { %v3971_v9 = vmax.f32 %v3939_v36, 0.0  ;;  %3850 = vmatmul.bf16.gmra.mxu2 %v3706_v59  ;;  %v3621_v18 = vadd.f32 %v3584_v1, %v6585_v37 }
 0x3f6   : > { %v5549_v53 = vpack.c.bf16 %v3971_v9, %v3970_v32  ;;  %v3657_v54 = vadd.f32 %v6619_v44, %v3621_v18  ;;  %v5612_v32 = vld [vmem:[%s5762_s22 + $0x38] sm:$0xff]  }
 0x3f7   : > { %v3811_v6 = vpop.f32.mrf.mxu2  ;;  %v5492_v9 = vunpack.c.l.bf16 %v5612_v32  ;;  %v5493_v1 = vunpack.c.h.bf16 %v5612_v32 }
 0x3f8   : > { %5624 = vst [vmem:[%s6723_s21 + $0x20] sm:$0xff] %v5549_v53   ;;  %v3812_v31 = vadd.f32 %v6709_v14, %v3811_v6  ;;  %v3689_v37 = vmax.f32 %v3657_v54, 0.0 }
 0x3f9   : > { %v3585_v56 = vpop.f32.mrf.mxu1 }
 0x3fa   : > { %v3586_v15 = vadd.f32 %v3585_v56, %v3497_v5  ;;  %v3940_v13 = vadd.f32 %v5484_v52, %v3812_v31 }
 0x3fc   : > { %v3622_v27 = vadd.f32 %v3586_v15, %v2870_v16  ;;  %v3972_v30 = vmax.f32 %v3940_v13, 0.0  ;;  %v5613_v16 = vld [vmem:[%s5762_s22 + $0x40] sm:$0xff]  }
 0x3fd   : > { %v5496_v4 = vunpack.c.l.bf16 %v5613_v16  ;;  %v5497_v20 = vunpack.c.h.bf16 %v5613_v16 }
 0x3fe   : > { %v3658_v2 = vadd.f32 %v6619_v44, %v3622_v27 }
 0x3ff   : > { %v3813_v10 = vpop.f32.mrf.mxu2 }
 0x400   : > { %v3690_v51 = vmax.f32 %v3658_v2, 0.0  ;;  %v3814_v60 = vadd.f32 %v6709_v14, %v3813_v10 }
 0x401   : > { %v3588_v19 = vpop.f32.mrf.mxu1 }
 0x402   : > { %v3941_v24 = vadd.f32 %v5485_v62, %v3814_v60  ;;  %v3707_v46 = vpack.c.bf16 %v3690_v51, %v3689_v37  ;;  %v3589_v39 = vadd.f32 %v3588_v19, %v3500_v3  ;;  %v5614_v37 = vld [vmem:[%s5762_s22 + $0x48] sm:$0xff]  }
 0x403   : > { %v5500_v51 = vunpack.c.l.bf16 %v5614_v37  ;;  %v5501_v60 = vunpack.c.h.bf16 %v5614_v37 }
 0x404   : > { %v3973_v21 = vmax.f32 %v3941_v24, 0.0  ;;  %3855 = vmatmul.bf16.gmra.mxu2 %v3707_v46  ;;  %v3623_v38 = vadd.f32 %v3589_v39, %v6861_v41 }
 0x406   : > { %v5554_v12 = vpack.c.bf16 %v3973_v21, %v3972_v30  ;;  %v3659_v35 = vadd.f32 %v6619_v44, %v3623_v38 }
 0x407   : > { %v3816_v61 = vpop.f32.mrf.mxu2 }
 0x408   : > { %5625 = vst [vmem:[%s6723_s21 + $0x28] sm:$0xff] %v5554_v12   ;;  %v3817_v42 = vadd.f32 %v6709_v14, %v3816_v61  ;;  %v3691_v11 = vmax.f32 %v3659_v35, 0.0  ;;  %v5615_v12 = vld [vmem:[%s5762_s22 + $0x50] sm:$0xff]  }
 0x409   : > { %v3590_v58 = vpop.f32.mrf.mxu1  ;;  %v5505_v41 = vunpack.c.h.bf16 %v5615_v12 }
 0x40a   : > { %v3591_v33 = vadd.f32 %v3590_v58, %v3502_v50  ;;  %v3942_v49 = vadd.f32 %v5488_v57, %v3817_v42  ;;  %v5504_v50 = vunpack.c.l.bf16 %v5615_v12  ;;  %v5616_v57 = vld [vmem:[%s5762_s22 + $0x58] sm:$0xff]  }
 0x40c   : > { %v3624_v28 = vadd.f32 %v3591_v33, %v2875_v7  ;;  %v3974_v36 = vmax.f32 %v3942_v49, 0.0 }
 0x40e   : > { %v3660_v8 = vadd.f32 %v6619_v44, %v3624_v28 }
 0x40f   : > { %v3818_v25 = vpop.f32.mrf.mxu2 }
 0x410   : > { %v3692_v48 = vmax.f32 %v3660_v8, 0.0  ;;  %v3819_v26 = vadd.f32 %v6709_v14, %v3818_v25  ;;  %v5508_v8 = vunpack.c.l.bf16 %v5616_v57 }
 0x412   : > { %v3943_v0 = vadd.f32 %v5489_v47, %v3819_v26  ;;  %v3708_v63 = vpack.c.bf16 %v3692_v48, %v3691_v11  ;;  %v5509_v47 = vunpack.c.h.bf16 %v5616_v57 }
 0x414   : > { %v3975_v59 = vmax.f32 %v3943_v0, 0.0  ;;  %3860 = vmatmul.bf16.gmra.mxu2 %v3708_v63 }
 0x416   : > { %v5559_v23 = vpack.c.bf16 %v3975_v59, %v3974_v36  ;;  %v5617_v59 = vld [vmem:[%s5762_s22 + $0x60] sm:$0xff]  }
 0x417   : > { %v3821_v17 = vpop.f32.mrf.mxu2  ;;  %v5513_v32 = vunpack.c.h.bf16 %v5617_v59 }
 0x418   : > { %5626 = vst [vmem:[%s6723_s21 + $0x30] sm:$0xff] %v5559_v23   ;;  %v3822_v44 = vadd.f32 %v6709_v14, %v3821_v17  ;;  %v5512_v17 = vunpack.c.l.bf16 %v5617_v59 }
 0x41a   : > { %v3944_v6 = vadd.f32 %v5492_v9, %v3822_v44 }
 0x41c   : > { %v3976_v22 = vmax.f32 %v3944_v6, 0.0 }
 0x41f   : > { %v3823_v53 = vpop.f32.mrf.mxu2 }
 0x420   : > { %v3824_v5 = vadd.f32 %v6709_v14, %v3823_v53 }
 0x422   : > { %v3945_v18 = vadd.f32 %v5493_v1, %v3824_v5 }
 0x424   : > { %v3977_v56 = vmax.f32 %v3945_v18, 0.0 }
 0x426   : > { %v5564_v55 = vpack.c.bf16 %v3977_v56, %v3976_v22  ;;  %v5618_v56 = vld [vmem:[%s5762_s22 + $0x68] sm:$0xff]  }
 0x427   : > { %v3826_v45 = vpop.f32.mrf.mxu2  ;;  %v5517_v16 = vunpack.c.h.bf16 %v5618_v56 }
 0x428   : > { %5627 = vst [vmem:[%s6723_s21 + $0x38] sm:$0xff] %v5564_v55   ;;  %v3827_v15 = vadd.f32 %v6709_v14, %v3826_v45  ;;  %v5516_v45 = vunpack.c.l.bf16 %v5618_v56 }
 0x42a   : > { %v3946_v31 = vadd.f32 %v5496_v4, %v3827_v15 }
 0x42c   : > { %v3978_v2 = vmax.f32 %v3946_v31, 0.0 }
 0x42f   : > { %v3828_v54 = vpop.f32.mrf.mxu2 }
 0x430   : > { %v3829_v52 = vadd.f32 %v6709_v14, %v3828_v54 }
 0x432   : > { %v3947_v27 = vadd.f32 %v5497_v20, %v3829_v52 }
 0x434   : > { %v3979_v62 = vmax.f32 %v3947_v27, 0.0 }
 0x436   : > { %v5569_v3 = vpack.c.bf16 %v3979_v62, %v3978_v2  ;;  %v5619_v62 = vld [vmem:[%s5762_s22 + $0x70] sm:$0xff]  }
 0x437   : > { %v3831_v10 = vpop.f32.mrf.mxu2  ;;  %v5521_v37 = vunpack.c.h.bf16 %v5619_v62 }
 0x438   : > { %5628 = vst [vmem:[%s6723_s21 + $0x40] sm:$0xff] %v5569_v3   ;;  %v3832_v13 = vadd.f32 %v6709_v14, %v3831_v10  ;;  %v5520_v10 = vunpack.c.l.bf16 %v5619_v62 }
 0x43a   : > { %v3948_v24 = vadd.f32 %v5500_v51, %v3832_v13 }
 0x43c   : > { %v3980_v21 = vmax.f32 %v3948_v24, 0.0 }
 0x43f   : > { %v3833_v19 = vpop.f32.mrf.mxu2 }
 0x440   : > { %v3834_v46 = vadd.f32 %v6709_v14, %v3833_v19 }
 0x442   : > { %v3949_v30 = vadd.f32 %v5501_v60, %v3834_v46 }
 0x444   : > { %v3981_v39 = vmax.f32 %v3949_v30, 0.0 }
 0x446   : > { %v5574_v29 = vpack.c.bf16 %v3981_v39, %v3980_v21  ;;  %v5620_v39 = vld [vmem:[%s5762_s22 + $0x78] sm:$0xff]  }
 0x447   : > { %v3836_v40 = vpop.f32.mrf.mxu2  ;;  %v5525_v12 = vunpack.c.h.bf16 %v5620_v39 }
 0x448   : > { %5629 = vst [vmem:[%s6723_s21 + $0x48] sm:$0xff] %v5574_v29   ;;  %v3837_v61 = vadd.f32 %v6709_v14, %v3836_v40  ;;  %v5524_v40 = vunpack.c.l.bf16 %v5620_v39 }
 0x44a   : > { %v3950_v43 = vadd.f32 %v5504_v50, %v3837_v61 }
 0x44c   : > { %v3982_v7 = vmax.f32 %v3950_v43, 0.0 }
 0x44f   : > { %v3838_v38 = vpop.f32.mrf.mxu2 }
 0x450   : > { %v3839_v58 = vadd.f32 %v6709_v14, %v3838_v38 }
 0x452   : > { %v3951_v34 = vadd.f32 %v5505_v41, %v3839_v58 }
 0x454   : > { %v3983_v33 = vmax.f32 %v3951_v34, 0.0 }
 0x456   : > { %v5579_v35 = vpack.c.bf16 %v3983_v33, %v3982_v7 }
 0x457   : > { %v3841_v42 = vpop.f32.mrf.mxu2 }
 0x458   : > { %5630 = vst [vmem:[%s6723_s21 + $0x50] sm:$0xff] %v5579_v35   ;;  %v3842_v28 = vadd.f32 %v6709_v14, %v3841_v42 }
 0x45a   : > { %v3952_v11 = vadd.f32 %v5508_v8, %v3842_v28 }
 0x45c   : > { %v3984_v26 = vmax.f32 %v3952_v11, 0.0 }
 0x45f   : > { %v3843_v25 = vpop.f32.mrf.mxu2 }
 0x460   : > { %v3844_v49 = vadd.f32 %v6709_v14, %v3843_v25 }
 0x462   : > { %v3953_v48 = vadd.f32 %v5509_v47, %v3844_v49 }
 0x464   : > { %v3985_v0 = vmax.f32 %v3953_v48, 0.0 }
 0x466   : > { %v5584_v63 = vpack.c.bf16 %v3985_v0, %v3984_v26 }
 0x467   : > { %v3846_v36 = vpop.f32.mrf.mxu2 }
 0x468   : > { %5631 = vst [vmem:[%s6723_s21 + $0x58] sm:$0xff] %v5584_v63   ;;  %v3847_v23 = vadd.f32 %v6709_v14, %v3846_v36 }
 0x46a   : > { %v3954_v9 = vadd.f32 %v5512_v17, %v3847_v23 }
 0x46c   : > { %v3986_v6 = vmax.f32 %v3954_v9, 0.0 }
 0x46f   : > { %v3848_v44 = vpop.f32.mrf.mxu2 }
 0x470   : > { %v3849_v1 = vadd.f32 %v6709_v14, %v3848_v44 }
 0x472   : > { %v3955_v53 = vadd.f32 %v5513_v32, %v3849_v1 }
 0x474   : > { %v3987_v5 = vmax.f32 %v3955_v53, 0.0 }
 0x476   : > { %v5589_v18 = vpack.c.bf16 %v3987_v5, %v3986_v6 }
 0x477   : > { %v3851_v22 = vpop.f32.mrf.mxu2 }
 0x478   : > { %5632 = vst [vmem:[%s6723_s21 + $0x60] sm:$0xff] %v5589_v18   ;;  %v3852_v55 = vadd.f32 %v6709_v14, %v3851_v22 }
 0x47a   : > { %v3956_v4 = vadd.f32 %v5516_v45, %v3852_v55 }
 0x47c   : > { %v3988_v31 = vmax.f32 %v3956_v4, 0.0 }
 0x47f   : > { %v3853_v15 = vpop.f32.mrf.mxu2 }
 0x480   : > { %v3854_v20 = vadd.f32 %v6709_v14, %v3853_v15 }
 0x482   : > { %v3957_v54 = vadd.f32 %v5517_v16, %v3854_v20 }
 0x484   : > { %v3989_v52 = vmax.f32 %v3957_v54, 0.0 }
 0x486   : > { %v5594_v27 = vpack.c.bf16 %v3989_v52, %v3988_v31 }
 0x487   : > { %v3856_v2 = vpop.f32.mrf.mxu2 }
 0x488   : > { %5633 = vst [vmem:[%s6723_s21 + $0x68] sm:$0xff] %v5594_v27   ;;  %v3857_v3 = vadd.f32 %v6709_v14, %v3856_v2 }
 0x48a   : > { %v3958_v51 = vadd.f32 %v5520_v10, %v3857_v3 }
 0x48c   : > { %v3990_v24 = vmax.f32 %v3958_v51, 0.0 }
 0x48f   : > { %v3858_v13 = vpop.f32.mrf.mxu2 }
 0x490   : > { %v3859_v60 = vadd.f32 %v6709_v14, %v3858_v13 }
 0x492   : > { %v3959_v19 = vadd.f32 %v5521_v37, %v3859_v60 }
 0x494   : > { %v3991_v46 = vmax.f32 %v3959_v19, 0.0 }
 0x496   : > { %v5599_v30 = vpack.c.bf16 %v3991_v46, %v3990_v24 }
 0x497   : > { %v3861_v21 = vpop.f32.mrf.mxu2 }
 0x498   : > { %5634 = vst [vmem:[%s6723_s21 + $0x70] sm:$0xff] %v5599_v30   ;;  %v3862_v29 = vadd.f32 %v6709_v14, %v3861_v21 }
 0x49a   : > { %v3960_v50 = vadd.f32 %v5524_v40, %v3862_v29 }
 0x49c   : > { %v3992_v43 = vmax.f32 %v3960_v50, 0.0 }
 0x49f   : > { %v3863_v61 = vpop.f32.mrf.mxu2 }
 0x4a0   : > { %v3864_v41 = vadd.f32 %v6709_v14, %v3863_v61 }
 0x4a2   : > { %v3961_v38 = vadd.f32 %v5525_v12, %v3864_v41 }
 0x4a4   : > { %v3993_v58 = vmax.f32 %v3961_v38, 0.0 }
 0x4a6   : > { %v5604_v34 = vpack.c.bf16 %v3993_v58, %v3992_v43 }
 0x4a8   : > { %5635 = vst [vmem:[%s6723_s21 + $0x78] sm:$0xff] %v5604_v34  }
 0x4a9 PF: > { %s17_s24 = sadd.s32 1, %s5679_s24  }
 0x4aa   : > { %p14_p4 = scmp.ge.s32.totalorder %s17_s24, 4  }
 0x4ac   :  { %16 = sbr.rel (!%p14_p4) target bundleno = 1 (0x1), region = 83 }

</bundles_post_ra>
